<compile_context>
chip_gen: v6e
topology: v6e:2x2x1
jax: 0.10.0
libtpu: 0.0.40
codegen_flags: <defaults>
</compile_context>

<pallas_src>
import math

import jax
import jax.numpy as jnp
from jax import lax
from jax.experimental import pallas as pl
from jax.experimental.pallas import tpu as pltpu

DTYPE = jnp.float32


# -----------------------------------------------------------------------------
# 1-D linear interpolation matrix for scale-factor-2, align_corners=True
# (exactly PyTorch's source mapping: src = dst * (n_in-1)/(n_out-1)).
# -----------------------------------------------------------------------------
def interp_matrix_align_corners(n_in, n_out, dtype=DTYPE):
    if n_in == 1:
        return jnp.ones((n_out, 1), dtype)
    pos = jnp.arange(n_out, dtype=jnp.float32) * ((n_in - 1) / (n_out - 1))
    i0 = jnp.floor(pos).astype(jnp.int32)
    i1 = jnp.minimum(i0 + 1, n_in - 1)
    w = (pos - i0.astype(jnp.float32)).astype(dtype)
    return (jax.nn.one_hot(i0, n_in, dtype=dtype) * (1.0 - w)[:, None]
            + jax.nn.one_hot(i1, n_in, dtype=dtype) * w[:, None])


# -----------------------------------------------------------------------------
# Fused Pallas kernel: 1x1 conv + bias + 2x bilinear (align_corners) upsample
# -----------------------------------------------------------------------------
def _upsampling_kernel(x_ref, kconv_ref, bias_ref, uh_ref, kw_ref, o_ref):
    # x_ref   : (H,  W*Cin)
    # kconv   : (W*Cin, W*Cout)    = kron(I_W, Wmat)
    # bias    : (1, W*Cout)
    # uh      : (2H, H)            row interpolation matrix
    # kw      : (W*Cout, 2W*Cout)  = kron(Uw^T, I_Cout)
    # o_ref   : (2H, 2W*Cout)
    y = jnp.dot(x_ref[...], kconv_ref[...], preferred_element_type=jnp.float32)
    y = y + bias_ref[...]
    z = jnp.dot(uh_ref[...], y, preferred_element_type=jnp.float32)
    o_ref[...] = jnp.dot(z, kw_ref[...],
                         preferred_element_type=jnp.float32).astype(o_ref.dtype)


def upsampling_forward(x_nchw, wmat, bias):
    """Forward of the PyTorch `Upsampling` block (bilinear branch).

    x_nchw : (B, Cin, H, W)
    wmat   : (Cin, Cout)  -- Conv2d 1x1 weight, i.e. weight[:, :, 0, 0].T
    bias   : (Cout,)
    returns (B, Cout, 2H, 2W)
    """
    B, Cin, H, W = x_nchw.shape
    Cout = wmat.shape[1]
    Ho, Wo = 2 * H, 2 * W

    # NCHW -> NHWC -> (B, H, W*Cin).  The reshape is a free contiguous view.
    x_flat = jnp.transpose(x_nchw, (0, 2, 3, 1)).reshape(B, H, W * Cin)

    # Trace-time constants (stay resident in VMEM across the batch grid).
    kconv = jnp.kron(jnp.eye(W, dtype=DTYPE), wmat.astype(DTYPE))   # (W*Cin, W*Cout)
    bias_row = jnp.tile(bias.astype(DTYPE), W).reshape(1, W * Cout)
    uh = interp_matrix_align_corners(H, Ho)                         # (2H, H)
    uw = interp_matrix_align_corners(W, Wo)                         # (2W, W)
    kw = jnp.kron(uw.T, jnp.eye(Cout, dtype=DTYPE))                 # (W*Cout, 2W*Cout)

    # TODO(synk): for very large W*C (deep encoder stages) the kron-expanded
    # operands would not fit VMEM; that regime needs a K-tiled grid instead.
    out_flat = pl.pallas_call(
        _upsampling_kernel,
        out_shape=jax.ShapeDtypeStruct((B, Ho, Wo * Cout), DTYPE),
        grid_spec=pltpu.PrefetchScalarGridSpec(
            num_scalar_prefetch=0,
            grid=(B,),
            in_specs=[
                pl.BlockSpec((None, H, W * Cin), lambda b: (b, 0, 0)),
                pl.BlockSpec((W * Cin, W * Cout), lambda b: (0, 0)),
                pl.BlockSpec((1, W * Cout), lambda b: (0, 0)),
                pl.BlockSpec((Ho, H), lambda b: (0, 0)),
                pl.BlockSpec((W * Cout, Wo * Cout), lambda b: (0, 0)),
            ],
            out_specs=pl.BlockSpec((None, Ho, Wo * Cout), lambda b: (b, 0, 0)),
        ),
        compiler_params=pltpu.CompilerParams(
            dimension_semantics=("parallel",),
            vmem_limit_bytes=32 * 1024 * 1024),
    )(x_flat, kconv, bias_row, uh, kw)

    out = out_flat.reshape(B, Ho, Wo, Cout)      # free contiguous view
    return jnp.transpose(out, (0, 3, 1, 2))      # NHWC -> NCHW


# -----------------------------------------------------------------------------
# Pure-JAX reference (independent path: einsum conv + gather-based bilinear)
# -----------------------------------------------------------------------------
def _bilinear2x_align_corners_ref(x_nhwc):
    def interp(y, axis, n_in):
        n_out = 2 * n_in
        if n_in == 1:
            return jnp.repeat(y, n_out, axis=axis)
        pos = jnp.arange(n_out, dtype=jnp.float32) * ((n_in - 1) / (n_out - 1))
        i0 = jnp.floor(pos).astype(jnp.int32)
        i1 = jnp.minimum(i0 + 1, n_in - 1)
        w = pos - i0.astype(jnp.float32)
        y0 = jnp.take(y, i0, axis=axis)
        y1 = jnp.take(y, i1, axis=axis)
        shape = [1] * y.ndim
        shape[axis] = n_out
        w = w.reshape(shape).astype(y.dtype)
        return y0 * (1.0 - w) + y1 * w

    _, H, W, _ = x_nhwc.shape
    x = interp(x_nhwc, 1, H)
    x = interp(x, 2, W)
    return x


def upsampling_reference(x_nchw, wmat, bias):
    x = jnp.transpose(x_nchw, (0, 2, 3, 1))
    y = jnp.einsum("bhwc,cd->bhwd", x, wmat,
                   precision=lax.Precision.HIGHEST) + bias
    y = _bilinear2x_align_corners_ref(y)
    return jnp.transpose(y, (0, 3, 1, 2))


# -----------------------------------------------------------------------------
def init_params(key, in_ch, out_ch):
    # Mimics PyTorch Conv2d default init scale (uniform +- 1/sqrt(fan_in)).
    kw_, kb_ = jax.random.split(key)
    bound = 1.0 / math.sqrt(in_ch)
    wmat = jax.random.uniform(kw_, (in_ch, out_ch), DTYPE, -bound, bound)
    bias = jax.random.uniform(kb_, (out_ch,), DTYPE, -bound, bound)
    return wmat, bias


# TODO(synk): the bilinear=False branch (ConvTranspose2d with float channel
# counts) is unused by the default constructor and is not implemented.
if __name__ == "__main__":
    key = jax.random.PRNGKey(0)

    # (B, out_ch, H, W); in_ch defaults to 2 * out_ch like the PyTorch module.
    configs = [
        (2, 32, 16, 16),
        (1, 16, 8, 8),
    ]

    fwd = jax.jit(upsampling_forward)
    ref = jax.jit(upsampling_reference)

    for (B, out_ch, H, W) in configs:
        in_ch = 2 * out_ch
        key, kp, kx = jax.random.split(key, 3)
        wmat, bias = init_params(kp, in_ch, out_ch)
        x = jax.random.normal(kx, (B, in_ch, H, W), DTYPE)

        y = jax.block_until_ready(fwd(x, wmat, bias))
        y_ref = jax.block_until_ready(ref(x, wmat, bias))

        assert y.shape == (B, out_ch, 2 * H, 2 * W), y.shape
        assert bool(jnp.all(jnp.isfinite(y)))
        max_err = float(jnp.max(jnp.abs(y - y_ref)))
        assert max_err < 1e-3, max_err

    print("KERNEL_OK")
</pallas_src>

<mosaic_0001>
module attributes {stable_mosaic.version = 11 : i64} {
  func.func @_upsampling_kernel(%arg0: i32, %arg1: memref<1x16x1024xf32, #tpu.memory_space<vmem>>, %arg2: memref<1024x512xf32, #tpu.memory_space<vmem>>, %arg3: memref<1x512xf32, #tpu.memory_space<vmem>>, %arg4: memref<32x16xf32, #tpu.memory_space<vmem>>, %arg5: memref<512x1024xf32, #tpu.memory_space<vmem>>, %arg6: memref<1x32x1024xf32, #tpu.memory_space<vmem>>) attributes {dimension_semantics = [#tpu.dimension_semantics<parallel>], iteration_bounds = array<i64: 2>, scalar_prefetch = 0 : i64, scratch_operands = 0 : i64, tpu.core_type = #tpu.core_type<tc>, window_params = [{transform_indices = @transform_0, window_bounds = array<i64: 1, 16, 1024>}, {pipeline_mode = #tpu.pipeline_mode<synchronous>, transform_indices = @transform_1, window_bounds = array<i64: 1024, 512>}, {pipeline_mode = #tpu.pipeline_mode<synchronous>, transform_indices = @transform_2, window_bounds = array<i64: 1, 512>}, {pipeline_mode = #tpu.pipeline_mode<synchronous>, transform_indices = @transform_3, window_bounds = array<i64: 32, 16>}, {pipeline_mode = #tpu.pipeline_mode<synchronous>, transform_indices = @transform_4, window_bounds = array<i64: 512, 1024>}, {transform_indices = @transform_5, window_bounds = array<i64: 1, 32, 1024>}]} {
    %c0 = arith.constant 0 : index
    %c0_0 = arith.constant 0 : index
    %c0_1 = arith.constant 0 : index
    %0 = vector.load %arg1[%c0, %c0_0, %c0_1] : memref<1x16x1024xf32, #tpu.memory_space<vmem>>, vector<1x16x1024xf32>
    %1 = vector.shape_cast %0 : vector<1x16x1024xf32> to vector<16x1024xf32>
    %c0_2 = arith.constant 0 : index
    %c0_3 = arith.constant 0 : index
    %2 = vector.load %arg2[%c0_2, %c0_3] : memref<1024x512xf32, #tpu.memory_space<vmem>>, vector<1024x512xf32>
    %cst = arith.constant dense<0.000000e+00> : vector<16x512xf32>
    %3 = tpu.matmul %1, %2, %cst {dimension_numbers = #tpu.dot_dimension_numbers<[1], [0], [0], [1], [0, 0, 1, 1], [], []>} : vector<16x1024xf32>, vector<1024x512xf32>, vector<16x512xf32> -> vector<16x512xf32>
    %c0_4 = arith.constant 0 : index
    %c0_5 = arith.constant 0 : index
    %4 = vector.load %arg3[%c0_4, %c0_5] : memref<1x512xf32, #tpu.memory_space<vmem>>, vector<1x512xf32>
    %5 = vector.broadcast %4 : vector<1x512xf32> to vector<16x512xf32>
    %6 = arith.addf %3, %5 : vector<16x512xf32>
    %c0_6 = arith.constant 0 : index
    %c0_7 = arith.constant 0 : index
    %7 = vector.load %arg4[%c0_6, %c0_7] : memref<32x16xf32, #tpu.memory_space<vmem>>, vector<32x16xf32>
    %cst_8 = arith.constant dense<0.000000e+00> : vector<32x512xf32>
    %8 = tpu.matmul %7, %6, %cst_8 {dimension_numbers = #tpu.dot_dimension_numbers<[1], [0], [0], [1], [0, 0, 1, 1], [], []>} : vector<32x16xf32>, vector<16x512xf32>, vector<32x512xf32> -> vector<32x512xf32>
    %c0_9 = arith.constant 0 : index
    %c0_10 = arith.constant 0 : index
    %9 = vector.load %arg5[%c0_9, %c0_10] : memref<512x1024xf32, #tpu.memory_space<vmem>>, vector<512x1024xf32>
    %cst_11 = arith.constant dense<0.000000e+00> : vector<32x1024xf32>
    %10 = tpu.matmul %8, %9, %cst_11 {dimension_numbers = #tpu.dot_dimension_numbers<[1], [0], [0], [1], [0, 0, 1, 1], [], []>} : vector<32x512xf32>, vector<512x1024xf32>, vector<32x1024xf32> -> vector<32x1024xf32>
    %c0_12 = arith.constant 0 : index
    %c0_13 = arith.constant 0 : index
    %c0_14 = arith.constant 0 : index
    %11 = vector.load %arg6[%c0_12, %c0_13, %c0_14] : memref<1x32x1024xf32, #tpu.memory_space<vmem>>, vector<1x32x1024xf32>
    %12 = vector.shape_cast %11 : vector<1x32x1024xf32> to vector<32x1024xf32>
    %13 = vector.shape_cast %10 : vector<32x1024xf32> to vector<1x32x1024xf32>
    tpu.vector_store %arg6[%c0_12, %c0_13, %c0_14], %13 {strides = array<i32>} : memref<1x32x1024xf32, #tpu.memory_space<vmem>>, vector<1x32x1024xf32>,
    return
  }
  func.func @transform_0(%arg0: i32) -> (i32, i32, i32) {
    %c0_i32 = arith.constant 0 : i32
    %c0_i32_0 = arith.constant 0 : i32
    %c0_i32_1 = arith.constant 0 : i32
    return %arg0, %c0_i32, %c0_i32_0 : i32, i32, i32
  }
  func.func @transform_1(%arg0: i32) -> (i32, i32) {
    %c0_i32 = arith.constant 0 : i32
    %c0_i32_0 = arith.constant 0 : i32
    %c0_i32_1 = arith.constant 0 : i32
    return %c0_i32, %c0_i32_0 : i32, i32
  }
  func.func @transform_2(%arg0: i32) -> (i32, i32) {
    %c0_i32 = arith.constant 0 : i32
    %c0_i32_0 = arith.constant 0 : i32
    %c0_i32_1 = arith.constant 0 : i32
    return %c0_i32, %c0_i32_0 : i32, i32
  }
  func.func @transform_3(%arg0: i32) -> (i32, i32) {
    %c0_i32 = arith.constant 0 : i32
    %c0_i32_0 = arith.constant 0 : i32
    %c0_i32_1 = arith.constant 0 : i32
    return %c0_i32, %c0_i32_0 : i32, i32
  }
  func.func @transform_4(%arg0: i32) -> (i32, i32) {
    %c0_i32 = arith.constant 0 : i32
    %c0_i32_0 = arith.constant 0 : i32
    %c0_i32_1 = arith.constant 0 : i32
    return %c0_i32, %c0_i32_0 : i32, i32
  }
  func.func @transform_5(%arg0: i32) -> (i32, i32, i32) {
    %c0_i32 = arith.constant 0 : i32
    %c0_i32_0 = arith.constant 0 : i32
    %c0_i32_1 = arith.constant 0 : i32
    return %arg0, %c0_i32, %c0_i32_0 : i32, i32, i32
  }
}

</mosaic_0001>

<bundles_post_ra>
// kernel: tile.8
= control target key start
LH: loop header
LB: loop body
LE: loop exit
PB: predicated region body
PF: predicated region fallthrough
CT: control target
= control target key end

     0   :  { %s28_s0 = inlined_call_operand.vmem [shape: f32[32], index: 0, kind: input, shape index: {}]   ;;  %s29_s1 = inlined_call_operand.vmem [shape: f32[16,32], index: 1, kind: output, shape index: {}]  }
   0x1   :  { %v4_v0 = vld [vmem:[%s28_s0] ss:$0 sm:$0xff] }
   0x2   :  { %5 = vst [vmem:[%s29_s1] sm:$0xff] %v4_v0  ;;  %8 = vst [vmem:[%s29_s1 + $0x8] sm:$0xff] %v4_v0 }

// kernel: tile.9
= control target key start
LH: loop header
LB: loop body
LE: loop exit
PB: predicated region body
PF: predicated region fallthrough
CT: control target
= control target key end

     0   :  { %s62_s8 = smov 96   ;;  %vm3_vm0 = vcmask 261120   ;;  %s64_s15 = smov 64   ;;  %vm9_vm1 = vcmask 1048320   ;;  %vm15_vm2 = vcmask 785920   ;;  %vm21_vm3 = vcmask 523520   ;;  %s99_s0 = inlined_call_operand.vmem [shape: f32[16,32], index: 0, kind: input, shape index: {}]   ;;  %s100_s1 = inlined_call_operand.vmem [shape: f32[1,512], index: 1, kind: output, shape index: {}]  }
   0x1   :  { %v53_v0 = vld [vmem:[%s99_s0 + $0x3] ss:$4 sm:$0xf]   ;;  %v54_v1 = vld [vmem:[%s99_s0 + $0x2] ss:$4 sm:$0xf]  }
   0x2   :  { %7 = vrot.lane.b32.xlu0 %v53_v0, %s62_s8  ;;  %v55_v2 = vld [vmem:[%s99_s0 + $0x1] ss:$4 sm:$0xf]   ;;  %v2_v3 = vld [vmem:[%s99_s0] ss:$4 sm:$0xf]  }
   0x3   :  { %s63_s0 = smov 32   ;;  %4 = vst.msk [vmem:[#allocation0] ss:$8 sm:$0xf] %vm3_vm0, %v2_v3  }
   0x4   :  { %19 = vrot.lane.b32.xlu1 %v55_v2, %s63_s0 }
   0x6   :  { %13 = vrot.lane.b32.xlu0 %v54_v1, %s64_s15 }
  0x74   :  { %v8_v4 = vpop.permute.xlu0 %7  }
  0x75   :  { %10 = vst.msk [vmem:[#allocation0] ss:$8 sm:$0xf] %vm9_vm1, %v8_v4  }
  0x76   :  { %v20_v5 = vpop.permute.xlu1 %19  }
  0x78   :  { %v14_v6 = vpop.permute.xlu0 %13  }
  0x79   :  { %16 = vst.msk [vmem:[#allocation0] ss:$8 sm:$0xf] %vm15_vm2, %v14_v6  }
  0x7a   :  { %22 = vst.msk [vmem:[#allocation0] ss:$8 sm:$0xf] %vm21_vm3, %v20_v5  }
  0x81   :  { %v27_v7 = vld [vmem:[#allocation0] sm:$0x1]  ;;  %v32_v8 = vld [vmem:[#allocation0 + $0x8] sm:$0x1]  ;;  %v38_v9 = vld [vmem:[#allocation0 + $0x10] sm:$0x1] }
  0x82   :  { %30 = vst [vmem:[%s100_s1] sm:$0x1] %v27_v7  ;;  %56 = vst [vmem:[%s100_s1 + $0x1] sm:$0x1] %v32_v8  ;;  %v45_v10 = vld [vmem:[#allocation0 + $0x18] sm:$0x1] }
  0x83   :  { %57 = vst [vmem:[%s100_s1 + $0x2] sm:$0x1] %v38_v9  ;;  %58 = vst [vmem:[%s100_s1 + $0x3] sm:$0x1] %v45_v10 }

// kernel: upsampling_forward.1
= control target key start
LH: loop header
LB: loop body
LE: loop exit
PB: predicated region body
PF: predicated region fallthrough
CT: control target
= control target key end

     0   :  { %s2981_s18 = smov 0   ;;  %s6310_s0 = inlined_call_operand.vmem [shape: f32[2,16,1024], index: 0, kind: input, shape index: {}]   ;;  %s6311_s1 = inlined_call_operand.vmem [shape: f32[1024,512], index: 1, kind: input, shape index: {}]   ;;  %s6312_s2 = inlined_call_operand.vmem [shape: f32[1,512], index: 2, kind: input, shape index: {}]   ;;  %s6313_s3 = inlined_call_operand.vmem [shape: f32[32,16], index: 3, kind: input, shape index: {}]   ;;  %s6314_s4 = inlined_call_operand.vmem [shape: f32[512,1024], index: 4, kind: input, shape index: {}]   ;;  %s6315_s5 = inlined_call_operand.vmem [shape: f32[2,32,1024], index: 5, kind: output, shape index: {}]  }
   0x1 LB: > { %s2897_s19 = sadd.s32 4294967295, %s2948_s18   ;;  %p2901_p0 = scmp.ge.s32.totalorder %s2948_s18, 1  ;;  %s2948_s18 = sphi %s2981_s18, %s15_s18  }
   0x2   : > { %p187_p1 = scmp.lt.s32.totalorder %s2948_s18, 3 }
   0x4   : > { %p188_p2 = pnand %p2901_p0, %p187_p1 }
   0x5   : > { %p3291_p3 = scmp.lt.s32.totalorder (!%p188_p2), %s2897_s19, 1 }
   0x6   : > { %191 = sbr.rel (%p188_p2) target bundleno = 1093 (0x445), region = 40 }
   0xb   : > { %v302_v0 = vld [vmem:[%s6311_s1 + $0x1e8] sm:$0xff]  ;;  %v301_v2 = vld [vmem:[%s6311_s1 + $0x1e0] sm:$0xff]  ;;  %s6318_s19 = smov (!%p3291_p3, %s2897_s19), 1  ;;  %vm1395_vm0 = vcmask 130048  }
   0xc   : > { %v430_v1 = vld [vmem:[%s6311_s1 + $0x5e8] sm:$0xff]  ;;  %775 = vmatprep.subr.mxu0 %v302_v0  ;;  %v429_v3 = vld [vmem:[%s6311_s1 + $0x5e0] sm:$0xff]  ;;  %s2916_s23 = sshll.u32 %s6318_s19, 7  ;;  %s2917_s8 = sshll.u32 %s6318_s19, 8 }
   0xd   : > { %852 = vmatprep.subr.mxu1 %v430_v1  ;;  %v298_v4 = vld [vmem:[%s6311_s1 + $0x1c8] sm:$0xff]  ;;  %776 = vmatpush1.msra.mxu0 %v301_v2  ;;  %v297_v6 = vld [vmem:[%s6311_s1 + $0x1c0] sm:$0xff]  ;;  %s3371_s13 = scalar_lea.vmem %s6310_s0, %s2916_s23  ;;  %s6254_s19 = scalar_lea.vmem %s6315_s5, %s2917_s8 }
   0xe   : > { %v426_v5 = vld [vmem:[%s6311_s1 + $0x5c8] sm:$0xff]  ;;  %853 = vmatpush1.msra.mxu1 %v429_v3  ;;  %v425_v7 = vld [vmem:[%s6311_s1 + $0x5c0] sm:$0xff]  ;;  %777 = vmatprep.subr.mxu0 %v298_v4 }
   0xf   : > { %v294_v8 = vld [vmem:[%s6311_s1 + $0x1a8] sm:$0xff]  ;;  %854 = vmatprep.subr.mxu1 %v426_v5  ;;  %v293_v10 = vld [vmem:[%s6311_s1 + $0x1a0] sm:$0xff]  ;;  %778 = vmatpush1.msra.mxu0 %v297_v6 }
  0x10   : > { %v422_v9 = vld [vmem:[%s6311_s1 + $0x5a8] sm:$0xff]  ;;  %v421_v11 = vld [vmem:[%s6311_s1 + $0x5a0] sm:$0xff]  ;;  %855 = vmatpush1.msra.mxu1 %v425_v7  ;;  %779 = vmatprep.subr.mxu0 %v294_v8 }
  0x11   : > { %v290_v12 = vld [vmem:[%s6311_s1 + $0x188] sm:$0xff]  ;;  %856 = vmatprep.subr.mxu1 %v422_v9  ;;  %v289_v14 = vld [vmem:[%s6311_s1 + $0x180] sm:$0xff]  ;;  %780 = vmatpush1.msra.mxu0 %v293_v10 }
  0x12   : > { %v418_v13 = vld [vmem:[%s6311_s1 + $0x588] sm:$0xff]  ;;  %v417_v15 = vld [vmem:[%s6311_s1 + $0x580] sm:$0xff]  ;;  %857 = vmatpush1.msra.mxu1 %v421_v11  ;;  %781 = vmatprep.subr.mxu0 %v290_v12 }
  0x13   : > { %v286_v16 = vld [vmem:[%s6311_s1 + $0x168] sm:$0xff]  ;;  %858 = vmatprep.subr.mxu1 %v418_v13  ;;  %v285_v18 = vld [vmem:[%s6311_s1 + $0x160] sm:$0xff]  ;;  %782 = vmatpush1.msra.mxu0 %v289_v14 }
  0x14   : > { %v414_v17 = vld [vmem:[%s6311_s1 + $0x568] sm:$0xff]  ;;  %v413_v19 = vld [vmem:[%s6311_s1 + $0x560] sm:$0xff]  ;;  %859 = vmatpush1.msra.mxu1 %v417_v15  ;;  %783 = vmatprep.subr.mxu0 %v286_v16 }
  0x15   : > { %v282_v20 = vld [vmem:[%s6311_s1 + $0x148] sm:$0xff]  ;;  %860 = vmatprep.subr.mxu1 %v414_v17  ;;  %v281_v22 = vld [vmem:[%s6311_s1 + $0x140] sm:$0xff]  ;;  %784 = vmatpush1.msra.mxu0 %v285_v18 }
  0x16   : > { %v410_v21 = vld [vmem:[%s6311_s1 + $0x548] sm:$0xff]  ;;  %v409_v23 = vld [vmem:[%s6311_s1 + $0x540] sm:$0xff]  ;;  %861 = vmatpush1.msra.mxu1 %v413_v19  ;;  %785 = vmatprep.subr.mxu0 %v282_v20 }
  0x17   : > { %v278_v24 = vld [vmem:[%s6311_s1 + $0x128] sm:$0xff]  ;;  %862 = vmatprep.subr.mxu1 %v410_v21  ;;  %v277_v26 = vld [vmem:[%s6311_s1 + $0x120] sm:$0xff]  ;;  %786 = vmatpush1.msra.mxu0 %v281_v22 }
  0x18   : > { %v406_v25 = vld [vmem:[%s6311_s1 + $0x528] sm:$0xff]  ;;  %v405_v27 = vld [vmem:[%s6311_s1 + $0x520] sm:$0xff]  ;;  %863 = vmatpush1.msra.mxu1 %v409_v23  ;;  %787 = vmatprep.subr.mxu0 %v278_v24 }
  0x19   : > { %v274_v28 = vld [vmem:[%s6311_s1 + $0x108] sm:$0xff]  ;;  %864 = vmatprep.subr.mxu1 %v406_v25  ;;  %v273_v30 = vld [vmem:[%s6311_s1 + $0x100] sm:$0xff]  ;;  %788 = vmatpush1.msra.mxu0 %v277_v26 }
  0x1a   : > { %v402_v29 = vld [vmem:[%s6311_s1 + $0x508] sm:$0xff]  ;;  %v401_v31 = vld [vmem:[%s6311_s1 + $0x500] sm:$0xff]  ;;  %865 = vmatpush1.msra.mxu1 %v405_v27  ;;  %789 = vmatprep.subr.mxu0 %v274_v28 }
  0x1b   : > { %v270_v32 = vld [vmem:[%s6311_s1 + $0xe8] sm:$0xff]  ;;  %866 = vmatprep.subr.mxu1 %v402_v29  ;;  %v269_v34 = vld [vmem:[%s6311_s1 + $0xe0] sm:$0xff]  ;;  %790 = vmatpush1.msra.mxu0 %v273_v30 }
  0x1c   : > { %v398_v33 = vld [vmem:[%s6311_s1 + $0x4e8] sm:$0xff]  ;;  %v397_v35 = vld [vmem:[%s6311_s1 + $0x4e0] sm:$0xff]  ;;  %867 = vmatpush1.msra.mxu1 %v401_v31  ;;  %791 = vmatprep.subr.mxu0 %v270_v32 }
  0x1d   : > { %v266_v36 = vld [vmem:[%s6311_s1 + $0xc8] sm:$0xff]  ;;  %868 = vmatprep.subr.mxu1 %v398_v33  ;;  %v265_v38 = vld [vmem:[%s6311_s1 + $0xc0] sm:$0xff]  ;;  %792 = vmatpush1.msra.mxu0 %v269_v34 }
  0x1e   : > { %v394_v37 = vld [vmem:[%s6311_s1 + $0x4c8] sm:$0xff]  ;;  %v393_v39 = vld [vmem:[%s6311_s1 + $0x4c0] sm:$0xff]  ;;  %869 = vmatpush1.msra.mxu1 %v397_v35  ;;  %793 = vmatprep.subr.mxu0 %v266_v36 }
  0x1f   : > { %v262_v40 = vld [vmem:[%s6311_s1 + $0xa8] sm:$0xff]  ;;  %870 = vmatprep.subr.mxu1 %v394_v37  ;;  %v261_v42 = vld [vmem:[%s6311_s1 + $0xa0] sm:$0xff]  ;;  %794 = vmatpush1.msra.mxu0 %v265_v38 }
  0x20   : > { %v390_v41 = vld [vmem:[%s6311_s1 + $0x4a8] sm:$0xff]  ;;  %v389_v43 = vld [vmem:[%s6311_s1 + $0x4a0] sm:$0xff]  ;;  %871 = vmatpush1.msra.mxu1 %v393_v39  ;;  %795 = vmatprep.subr.mxu0 %v262_v40 }
  0x21   : > { %v258_v44 = vld [vmem:[%s6311_s1 + $0x88] sm:$0xff]  ;;  %872 = vmatprep.subr.mxu1 %v390_v41  ;;  %v257_v46 = vld [vmem:[%s6311_s1 + $0x80] sm:$0xff]  ;;  %796 = vmatpush1.msra.mxu0 %v261_v42 }
  0x22   : > { %v386_v45 = vld [vmem:[%s6311_s1 + $0x488] sm:$0xff]  ;;  %v385_v47 = vld [vmem:[%s6311_s1 + $0x480] sm:$0xff]  ;;  %873 = vmatpush1.msra.mxu1 %v389_v43  ;;  %797 = vmatprep.subr.mxu0 %v258_v44 }
  0x23   : > { %v254_v48 = vld [vmem:[%s6311_s1 + $0x68] sm:$0xff]  ;;  %874 = vmatprep.subr.mxu1 %v386_v45  ;;  %v253_v50 = vld [vmem:[%s6311_s1 + $0x60] sm:$0xff]  ;;  %798 = vmatpush1.msra.mxu0 %v257_v46 }
  0x24   : > { %v382_v49 = vld [vmem:[%s6311_s1 + $0x468] sm:$0xff]  ;;  %v381_v51 = vld [vmem:[%s6311_s1 + $0x460] sm:$0xff]  ;;  %875 = vmatpush1.msra.mxu1 %v385_v47  ;;  %799 = vmatprep.subr.mxu0 %v254_v48 }
  0x25   : > { %v250_v52 = vld [vmem:[%s6311_s1 + $0x48] sm:$0xff]  ;;  %876 = vmatprep.subr.mxu1 %v382_v49  ;;  %v249_v54 = vld [vmem:[%s6311_s1 + $0x40] sm:$0xff]  ;;  %800 = vmatpush1.msra.mxu0 %v253_v50 }
  0x26   : > { %v378_v53 = vld [vmem:[%s6311_s1 + $0x448] sm:$0xff]  ;;  %v377_v55 = vld [vmem:[%s6311_s1 + $0x440] sm:$0xff]  ;;  %877 = vmatpush1.msra.mxu1 %v381_v51  ;;  %801 = vmatprep.subr.mxu0 %v250_v52 }
  0x27   : > { %v246_v56 = vld [vmem:[%s6311_s1 + $0x28] sm:$0xff]  ;;  %878 = vmatprep.subr.mxu1 %v378_v53  ;;  %v245_v58 = vld [vmem:[%s6311_s1 + $0x20] sm:$0xff]  ;;  %802 = vmatpush1.msra.mxu0 %v249_v54 }
  0x28   : > { %v374_v57 = vld [vmem:[%s6311_s1 + $0x428] sm:$0xff]  ;;  %v373_v59 = vld [vmem:[%s6311_s1 + $0x420] sm:$0xff]  ;;  %879 = vmatpush1.msra.mxu1 %v377_v55  ;;  %803 = vmatprep.subr.mxu0 %v246_v56 }
  0x29   : > { %v242_v60 = vld [vmem:[%s6311_s1 + $0x8] sm:$0xff]  ;;  %880 = vmatprep.subr.mxu1 %v374_v57  ;;  %v241_v62 = vld [vmem:[%s6311_s1] sm:$0xff]  ;;  %804 = vmatpush1.msra.mxu0 %v245_v58 }
  0x2a   : > { %v370_v61 = vld [vmem:[%s6311_s1 + $0x408] sm:$0xff]  ;;  %v369_v63 = vld [vmem:[%s6311_s1 + $0x400] sm:$0xff]  ;;  %881 = vmatpush1.msra.mxu1 %v373_v59  ;;  %805 = vmatprep.subr.mxu0 %v242_v60 }
  0x2b   : > { %v366_v0 = vld [vmem:[%s6311_s1 + $0x3e8] sm:$0xff]  ;;  %882 = vmatprep.subr.mxu1 %v370_v61  ;;  %v365_v2 = vld [vmem:[%s6311_s1 + $0x3e0] sm:$0xff]  ;;  %806 = vmatpush1.msra.mxu0 %v241_v62 }
  0x2c   : > { %v494_v1 = vld [vmem:[%s6311_s1 + $0x7e8] sm:$0xff]  ;;  %v493_v3 = vld [vmem:[%s6311_s1 + $0x7e0] sm:$0xff]  ;;  %883 = vmatpush1.msra.mxu1 %v369_v63  ;;  %807 = vmatprep.subr.mxu0 %v366_v0 }
  0x2d   : > { %v362_v4 = vld [vmem:[%s6311_s1 + $0x3c8] sm:$0xff]  ;;  %884 = vmatprep.subr.mxu1 %v494_v1  ;;  %v361_v6 = vld [vmem:[%s6311_s1 + $0x3c0] sm:$0xff]  ;;  %808 = vmatpush2.msra.mxu0 %v365_v2  ;;  %v228_v2 = vld [vmem:[%s3371_s13 + $0x18] sm:$0xff] }
  0x2e   : > { %v490_v5 = vld [vmem:[%s6311_s1 + $0x7c8] sm:$0xff]  ;;  %v489_v7 = vld [vmem:[%s6311_s1 + $0x7c0] sm:$0xff]  ;;  %885 = vmatpush2.msra.mxu1 %v493_v3  ;;  %809 = vmatprep.subr.mxu0 %v362_v4 }
  0x2f   : > { %v358_v8 = vld [vmem:[%s6311_s1 + $0x3a8] sm:$0xff]  ;;  %886 = vmatprep.subr.mxu1 %v490_v5  ;;  %v357_v10 = vld [vmem:[%s6311_s1 + $0x3a0] sm:$0xff]  ;;  %810 = vmatpush2.msra.mxu0 %v361_v6  ;;  %v227_v5 = vld [vmem:[%s3371_s13 + $0x10] sm:$0xff] }
  0x30   : > { %v486_v9 = vld [vmem:[%s6311_s1 + $0x7a8] sm:$0xff]  ;;  %v485_v11 = vld [vmem:[%s6311_s1 + $0x7a0] sm:$0xff]  ;;  %887 = vmatpush2.msra.mxu1 %v489_v7  ;;  %811 = vmatprep.subr.mxu0 %v358_v8 }
  0x31   : > { %v354_v12 = vld [vmem:[%s6311_s1 + $0x388] sm:$0xff]  ;;  %888 = vmatprep.subr.mxu1 %v486_v9  ;;  %v353_v14 = vld [vmem:[%s6311_s1 + $0x380] sm:$0xff]  ;;  %812 = vmatpush2.msra.mxu0 %v357_v10 }
  0x32   : > { %v482_v13 = vld [vmem:[%s6311_s1 + $0x788] sm:$0xff]  ;;  %v481_v15 = vld [vmem:[%s6311_s1 + $0x780] sm:$0xff]  ;;  %889 = vmatpush2.msra.mxu1 %v485_v11  ;;  %813 = vmatprep.subr.mxu0 %v354_v12 }
  0x33   : > { %v350_v16 = vld [vmem:[%s6311_s1 + $0x368] sm:$0xff]  ;;  %890 = vmatprep.subr.mxu1 %v482_v13  ;;  %v349_v18 = vld [vmem:[%s6311_s1 + $0x360] sm:$0xff]  ;;  %814 = vmatpush2.msra.mxu0 %v353_v14 }
  0x34   : > { %v478_v17 = vld [vmem:[%s6311_s1 + $0x768] sm:$0xff]  ;;  %v477_v19 = vld [vmem:[%s6311_s1 + $0x760] sm:$0xff]  ;;  %891 = vmatpush2.msra.mxu1 %v481_v15  ;;  %815 = vmatprep.subr.mxu0 %v350_v16 }
  0x35   : > { %v346_v20 = vld [vmem:[%s6311_s1 + $0x348] sm:$0xff]  ;;  %892 = vmatprep.subr.mxu1 %v478_v17  ;;  %v345_v22 = vld [vmem:[%s6311_s1 + $0x340] sm:$0xff]  ;;  %816 = vmatpush2.msra.mxu0 %v349_v18 }
  0x36   : > { %v474_v21 = vld [vmem:[%s6311_s1 + $0x748] sm:$0xff]  ;;  %v473_v23 = vld [vmem:[%s6311_s1 + $0x740] sm:$0xff]  ;;  %893 = vmatpush2.msra.mxu1 %v477_v19  ;;  %817 = vmatprep.subr.mxu0 %v346_v20 }
  0x37   : > { %v342_v24 = vld [vmem:[%s6311_s1 + $0x328] sm:$0xff]  ;;  %894 = vmatprep.subr.mxu1 %v474_v21  ;;  %v341_v26 = vld [vmem:[%s6311_s1 + $0x320] sm:$0xff]  ;;  %818 = vmatpush2.msra.mxu0 %v345_v22 }
  0x38   : > { %v470_v25 = vld [vmem:[%s6311_s1 + $0x728] sm:$0xff]  ;;  %v469_v27 = vld [vmem:[%s6311_s1 + $0x720] sm:$0xff]  ;;  %895 = vmatpush2.msra.mxu1 %v473_v23  ;;  %819 = vmatprep.subr.mxu0 %v342_v24 }
  0x39   : > { %v338_v28 = vld [vmem:[%s6311_s1 + $0x308] sm:$0xff]  ;;  %896 = vmatprep.subr.mxu1 %v470_v25  ;;  %v337_v30 = vld [vmem:[%s6311_s1 + $0x300] sm:$0xff]  ;;  %820 = vmatpush2.msra.mxu0 %v341_v26 }
  0x3a   : > { %v466_v29 = vld [vmem:[%s6311_s1 + $0x708] sm:$0xff]  ;;  %v465_v31 = vld [vmem:[%s6311_s1 + $0x700] sm:$0xff]  ;;  %897 = vmatpush2.msra.mxu1 %v469_v27  ;;  %821 = vmatprep.subr.mxu0 %v338_v28 }
  0x3b   : > { %v334_v32 = vld [vmem:[%s6311_s1 + $0x2e8] sm:$0xff]  ;;  %898 = vmatprep.subr.mxu1 %v466_v29  ;;  %v333_v34 = vld [vmem:[%s6311_s1 + $0x2e0] sm:$0xff]  ;;  %822 = vmatpush2.msra.mxu0 %v337_v30 }
  0x3c   : > { %v462_v33 = vld [vmem:[%s6311_s1 + $0x6e8] sm:$0xff]  ;;  %v461_v35 = vld [vmem:[%s6311_s1 + $0x6e0] sm:$0xff]  ;;  %899 = vmatpush2.msra.mxu1 %v465_v31  ;;  %823 = vmatprep.subr.mxu0 %v334_v32 }
  0x3d   : > { %v330_v36 = vld [vmem:[%s6311_s1 + $0x2c8] sm:$0xff]  ;;  %900 = vmatprep.subr.mxu1 %v462_v33  ;;  %v329_v38 = vld [vmem:[%s6311_s1 + $0x2c0] sm:$0xff]  ;;  %824 = vmatpush2.msra.mxu0 %v333_v34 }
  0x3e   : > { %v458_v37 = vld [vmem:[%s6311_s1 + $0x6c8] sm:$0xff]  ;;  %v457_v39 = vld [vmem:[%s6311_s1 + $0x6c0] sm:$0xff]  ;;  %901 = vmatpush2.msra.mxu1 %v461_v35  ;;  %825 = vmatprep.subr.mxu0 %v330_v36 }
  0x3f   : > { %v326_v40 = vld [vmem:[%s6311_s1 + $0x2a8] sm:$0xff]  ;;  %902 = vmatprep.subr.mxu1 %v458_v37  ;;  %v325_v42 = vld [vmem:[%s6311_s1 + $0x2a0] sm:$0xff]  ;;  %826 = vmatpush2.msra.mxu0 %v329_v38 }
  0x40   : > { %v454_v41 = vld [vmem:[%s6311_s1 + $0x6a8] sm:$0xff]  ;;  %v453_v43 = vld [vmem:[%s6311_s1 + $0x6a0] sm:$0xff]  ;;  %903 = vmatpush2.msra.mxu1 %v457_v39  ;;  %827 = vmatprep.subr.mxu0 %v326_v40 }
  0x41   : > { %v322_v44 = vld [vmem:[%s6311_s1 + $0x288] sm:$0xff]  ;;  %904 = vmatprep.subr.mxu1 %v454_v41  ;;  %v321_v46 = vld [vmem:[%s6311_s1 + $0x280] sm:$0xff]  ;;  %828 = vmatpush2.msra.mxu0 %v325_v42 }
  0x42   : > { %v450_v45 = vld [vmem:[%s6311_s1 + $0x688] sm:$0xff]  ;;  %v449_v47 = vld [vmem:[%s6311_s1 + $0x680] sm:$0xff]  ;;  %905 = vmatpush2.msra.mxu1 %v453_v43  ;;  %829 = vmatprep.subr.mxu0 %v322_v44 }
  0x43   : > { %v318_v48 = vld [vmem:[%s6311_s1 + $0x268] sm:$0xff]  ;;  %906 = vmatprep.subr.mxu1 %v450_v45  ;;  %v317_v50 = vld [vmem:[%s6311_s1 + $0x260] sm:$0xff]  ;;  %830 = vmatpush2.msra.mxu0 %v321_v46 }
  0x44   : > { %v446_v49 = vld [vmem:[%s6311_s1 + $0x668] sm:$0xff]  ;;  %v445_v51 = vld [vmem:[%s6311_s1 + $0x660] sm:$0xff]  ;;  %907 = vmatpush2.msra.mxu1 %v449_v47  ;;  %831 = vmatprep.subr.mxu0 %v318_v48 }
  0x45   : > { %v314_v52 = vld [vmem:[%s6311_s1 + $0x248] sm:$0xff]  ;;  %908 = vmatprep.subr.mxu1 %v446_v49  ;;  %v313_v54 = vld [vmem:[%s6311_s1 + $0x240] sm:$0xff]  ;;  %832 = vmatpush2.msra.mxu0 %v317_v50 }
  0x46   : > { %v442_v53 = vld [vmem:[%s6311_s1 + $0x648] sm:$0xff]  ;;  %v441_v55 = vld [vmem:[%s6311_s1 + $0x640] sm:$0xff]  ;;  %909 = vmatpush2.msra.mxu1 %v445_v51  ;;  %833 = vmatprep.subr.mxu0 %v314_v52 }
  0x47   : > { %v310_v56 = vld [vmem:[%s6311_s1 + $0x228] sm:$0xff]  ;;  %910 = vmatprep.subr.mxu1 %v442_v53  ;;  %v309_v58 = vld [vmem:[%s6311_s1 + $0x220] sm:$0xff]  ;;  %834 = vmatpush2.msra.mxu0 %v313_v54 }
  0x48   : > { %v438_v57 = vld [vmem:[%s6311_s1 + $0x628] sm:$0xff]  ;;  %v437_v59 = vld [vmem:[%s6311_s1 + $0x620] sm:$0xff]  ;;  %911 = vmatpush2.msra.mxu1 %v441_v55  ;;  %835 = vmatprep.subr.mxu0 %v310_v56 }
  0x49   : > { %v306_v60 = vld [vmem:[%s6311_s1 + $0x208] sm:$0xff]  ;;  %912 = vmatprep.subr.mxu1 %v438_v57  ;;  %v305_v62 = vld [vmem:[%s6311_s1 + $0x200] sm:$0xff]  ;;  %836 = vmatpush2.msra.mxu0 %v309_v58 }
  0x4a   : > { %v434_v61 = vld [vmem:[%s6311_s1 + $0x608] sm:$0xff]  ;;  %913 = vmatpush2.msra.mxu1 %v437_v59  ;;  %v433_v0 = vld [vmem:[%s6311_s1 + $0x600] sm:$0xff]  ;;  %837 = vmatprep.subr.mxu0 %v306_v60 }
  0x4b   : > { %v226_v63 = vld [vmem:[%s3371_s13 + $0x8] sm:$0xff]  ;;  %v225_v1 = vld [vmem:[%s3371_s13] sm:$0xff]  ;;  %914 = vmatprep.subr.mxu1 %v434_v61  ;;  %838 = vmatpush2.msra.mxu0 %v305_v62 }
  0x4c   : > { %v558_v3 = vld [vmem:[%s6311_s1 + $0x9e8] sm:$0xff]  ;;  %839 = vmatprep.mubr.f32.mxu0 %v226_v63  ;;  %915 = vmatpush2.msra.mxu1 %v433_v0  ;;  %v557_v6 = vld [vmem:[%s6311_s1 + $0x9e0] sm:$0xff] }
  0x4d   : > { %v686_v4 = vld [vmem:[%s6311_s1 + $0xde8] sm:$0xff]  ;;  %840 = vmatmul.mubr.f32.vlgmr.msra.gmra.mxu0 %v225_v1  ;;  %v685_v7 = vld [vmem:[%s6311_s1 + $0xde0] sm:$0xff]  ;;  %916 = vmatprep.mubr.f32.mxu1 %v228_v2 }
  0x4e   : > { %929 = vmatprep.subr.mxu0 %v558_v3  ;;  %v554_v8 = vld [vmem:[%s6311_s1 + $0x9c8] sm:$0xff]  ;;  %1006 = vmatprep.subr.mxu1 %v686_v4  ;;  %v553_v10 = vld [vmem:[%s6311_s1 + $0x9c0] sm:$0xff] }
  0x4f   : > { %v682_v9 = vld [vmem:[%s6311_s1 + $0xdc8] sm:$0xff]  ;;  %917 = vmatmul.mubr.f32.vlgmr.msra.gmra.mxu1 %v227_v5  ;;  %v681_v11 = vld [vmem:[%s6311_s1 + $0xdc0] sm:$0xff]  ;;  %930 = vmatpush1.msra.mxu0 %v557_v6 }
  0x50   : > { %1007 = vmatpush1.msra.mxu1 %v685_v7  ;;  %v550_v12 = vld [vmem:[%s6311_s1 + $0x9a8] sm:$0xff]  ;;  %931 = vmatprep.subr.mxu0 %v554_v8  ;;  %v549_v14 = vld [vmem:[%s6311_s1 + $0x9a0] sm:$0xff] }
  0x51   : > { %v678_v13 = vld [vmem:[%s6311_s1 + $0xda8] sm:$0xff]  ;;  %1008 = vmatprep.subr.mxu1 %v682_v9  ;;  %v677_v15 = vld [vmem:[%s6311_s1 + $0xda0] sm:$0xff]  ;;  %932 = vmatpush1.msra.mxu0 %v553_v10 }
  0x52   : > { %1009 = vmatpush1.msra.mxu1 %v681_v11  ;;  %v546_v16 = vld [vmem:[%s6311_s1 + $0x988] sm:$0xff]  ;;  %933 = vmatprep.subr.mxu0 %v550_v12  ;;  %v545_v18 = vld [vmem:[%s6311_s1 + $0x980] sm:$0xff] }
  0x53   : > { %v674_v17 = vld [vmem:[%s6311_s1 + $0xd88] sm:$0xff]  ;;  %1010 = vmatprep.subr.mxu1 %v678_v13  ;;  %v673_v19 = vld [vmem:[%s6311_s1 + $0xd80] sm:$0xff]  ;;  %934 = vmatpush1.msra.mxu0 %v549_v14 }
  0x54   : > { %1011 = vmatpush1.msra.mxu1 %v677_v15  ;;  %v542_v20 = vld [vmem:[%s6311_s1 + $0x968] sm:$0xff]  ;;  %935 = vmatprep.subr.mxu0 %v546_v16  ;;  %v541_v22 = vld [vmem:[%s6311_s1 + $0x960] sm:$0xff] }
  0x55   : > { %v670_v21 = vld [vmem:[%s6311_s1 + $0xd68] sm:$0xff]  ;;  %1012 = vmatprep.subr.mxu1 %v674_v17  ;;  %v669_v23 = vld [vmem:[%s6311_s1 + $0xd60] sm:$0xff]  ;;  %936 = vmatpush1.msra.mxu0 %v545_v18 }
  0x56   : > { %1013 = vmatpush1.msra.mxu1 %v673_v19  ;;  %v538_v24 = vld [vmem:[%s6311_s1 + $0x948] sm:$0xff]  ;;  %937 = vmatprep.subr.mxu0 %v542_v20  ;;  %v537_v26 = vld [vmem:[%s6311_s1 + $0x940] sm:$0xff] }
  0x57   : > { %v666_v25 = vld [vmem:[%s6311_s1 + $0xd48] sm:$0xff]  ;;  %1014 = vmatprep.subr.mxu1 %v670_v21  ;;  %v665_v27 = vld [vmem:[%s6311_s1 + $0xd40] sm:$0xff]  ;;  %938 = vmatpush1.msra.mxu0 %v541_v22 }
  0x58   : > { %1015 = vmatpush1.msra.mxu1 %v669_v23  ;;  %v534_v28 = vld [vmem:[%s6311_s1 + $0x928] sm:$0xff]  ;;  %939 = vmatprep.subr.mxu0 %v538_v24  ;;  %v533_v30 = vld [vmem:[%s6311_s1 + $0x920] sm:$0xff] }
  0x59   : > { %v662_v29 = vld [vmem:[%s6311_s1 + $0xd28] sm:$0xff]  ;;  %1016 = vmatprep.subr.mxu1 %v666_v25  ;;  %v661_v31 = vld [vmem:[%s6311_s1 + $0xd20] sm:$0xff]  ;;  %940 = vmatpush1.msra.mxu0 %v537_v26 }
  0x5a   : > { %1017 = vmatpush1.msra.mxu1 %v665_v27  ;;  %v530_v32 = vld [vmem:[%s6311_s1 + $0x908] sm:$0xff]  ;;  %941 = vmatprep.subr.mxu0 %v534_v28  ;;  %v529_v34 = vld [vmem:[%s6311_s1 + $0x900] sm:$0xff] }
  0x5b   : > { %v658_v33 = vld [vmem:[%s6311_s1 + $0xd08] sm:$0xff]  ;;  %1018 = vmatprep.subr.mxu1 %v662_v29  ;;  %v657_v35 = vld [vmem:[%s6311_s1 + $0xd00] sm:$0xff]  ;;  %942 = vmatpush1.msra.mxu0 %v533_v30 }
  0x5c   : > { %1019 = vmatpush1.msra.mxu1 %v661_v31  ;;  %v526_v36 = vld [vmem:[%s6311_s1 + $0x8e8] sm:$0xff]  ;;  %943 = vmatprep.subr.mxu0 %v530_v32  ;;  %v525_v38 = vld [vmem:[%s6311_s1 + $0x8e0] sm:$0xff] }
  0x5d   : > { %v654_v37 = vld [vmem:[%s6311_s1 + $0xce8] sm:$0xff]  ;;  %1020 = vmatprep.subr.mxu1 %v658_v33  ;;  %v653_v39 = vld [vmem:[%s6311_s1 + $0xce0] sm:$0xff]  ;;  %944 = vmatpush1.msra.mxu0 %v529_v34 }
  0x5e   : > { %1021 = vmatpush1.msra.mxu1 %v657_v35  ;;  %v522_v40 = vld [vmem:[%s6311_s1 + $0x8c8] sm:$0xff]  ;;  %945 = vmatprep.subr.mxu0 %v526_v36  ;;  %v521_v42 = vld [vmem:[%s6311_s1 + $0x8c0] sm:$0xff] }
  0x5f   : > { %v650_v41 = vld [vmem:[%s6311_s1 + $0xcc8] sm:$0xff]  ;;  %1022 = vmatprep.subr.mxu1 %v654_v37  ;;  %v649_v43 = vld [vmem:[%s6311_s1 + $0xcc0] sm:$0xff]  ;;  %946 = vmatpush1.msra.mxu0 %v525_v38 }
  0x60   : > { %1023 = vmatpush1.msra.mxu1 %v653_v39  ;;  %v518_v44 = vld [vmem:[%s6311_s1 + $0x8a8] sm:$0xff]  ;;  %947 = vmatprep.subr.mxu0 %v522_v40  ;;  %v517_v46 = vld [vmem:[%s6311_s1 + $0x8a0] sm:$0xff] }
  0x61   : > { %v646_v45 = vld [vmem:[%s6311_s1 + $0xca8] sm:$0xff]  ;;  %1024 = vmatprep.subr.mxu1 %v650_v41  ;;  %v645_v47 = vld [vmem:[%s6311_s1 + $0xca0] sm:$0xff]  ;;  %948 = vmatpush1.msra.mxu0 %v521_v42 }
  0x62   : > { %1025 = vmatpush1.msra.mxu1 %v649_v43  ;;  %v514_v48 = vld [vmem:[%s6311_s1 + $0x888] sm:$0xff]  ;;  %949 = vmatprep.subr.mxu0 %v518_v44  ;;  %v513_v50 = vld [vmem:[%s6311_s1 + $0x880] sm:$0xff] }
  0x63   : > { %v642_v49 = vld [vmem:[%s6311_s1 + $0xc88] sm:$0xff]  ;;  %1026 = vmatprep.subr.mxu1 %v646_v45  ;;  %v641_v51 = vld [vmem:[%s6311_s1 + $0xc80] sm:$0xff]  ;;  %950 = vmatpush1.msra.mxu0 %v517_v46 }
  0x64   : > { %1027 = vmatpush1.msra.mxu1 %v645_v47  ;;  %v510_v52 = vld [vmem:[%s6311_s1 + $0x868] sm:$0xff]  ;;  %951 = vmatprep.subr.mxu0 %v514_v48  ;;  %v509_v54 = vld [vmem:[%s6311_s1 + $0x860] sm:$0xff] }
  0x65   : > { %v638_v53 = vld [vmem:[%s6311_s1 + $0xc68] sm:$0xff]  ;;  %1028 = vmatprep.subr.mxu1 %v642_v49  ;;  %v637_v55 = vld [vmem:[%s6311_s1 + $0xc60] sm:$0xff]  ;;  %952 = vmatpush1.msra.mxu0 %v513_v50 }
  0x66   : > { %1029 = vmatpush1.msra.mxu1 %v641_v51  ;;  %v506_v56 = vld [vmem:[%s6311_s1 + $0x848] sm:$0xff]  ;;  %953 = vmatprep.subr.mxu0 %v510_v52  ;;  %v505_v58 = vld [vmem:[%s6311_s1 + $0x840] sm:$0xff] }
  0x67   : > { %v634_v57 = vld [vmem:[%s6311_s1 + $0xc48] sm:$0xff]  ;;  %1030 = vmatprep.subr.mxu1 %v638_v53  ;;  %v633_v59 = vld [vmem:[%s6311_s1 + $0xc40] sm:$0xff]  ;;  %954 = vmatpush1.msra.mxu0 %v509_v54 }
  0x68   : > { %1031 = vmatpush1.msra.mxu1 %v637_v55  ;;  %v502_v60 = vld [vmem:[%s6311_s1 + $0x828] sm:$0xff]  ;;  %955 = vmatprep.subr.mxu0 %v506_v56  ;;  %v501_v62 = vld [vmem:[%s6311_s1 + $0x820] sm:$0xff] }
  0x69   : > { %v630_v61 = vld [vmem:[%s6311_s1 + $0xc28] sm:$0xff]  ;;  %1032 = vmatprep.subr.mxu1 %v634_v57  ;;  %v629_v63 = vld [vmem:[%s6311_s1 + $0xc20] sm:$0xff]  ;;  %956 = vmatpush1.msra.mxu0 %v505_v58 }
  0x6a   : > { %1033 = vmatpush1.msra.mxu1 %v633_v59  ;;  %v498_v0 = vld [vmem:[%s6311_s1 + $0x808] sm:$0xff]  ;;  %957 = vmatprep.subr.mxu0 %v502_v60  ;;  %v497_v2 = vld [vmem:[%s6311_s1 + $0x800] sm:$0xff] }
  0x6b   : > { %v626_v1 = vld [vmem:[%s6311_s1 + $0xc08] sm:$0xff]  ;;  %1034 = vmatprep.subr.mxu1 %v630_v61  ;;  %v625_v3 = vld [vmem:[%s6311_s1 + $0xc00] sm:$0xff]  ;;  %958 = vmatpush1.msra.mxu0 %v501_v62  ;;  %v236_v62 = vld [vmem:[%s3371_s13 + $0x58] sm:$0xff] }
  0x6c   : > { %1035 = vmatpush1.msra.mxu1 %v629_v63  ;;  %v622_v4 = vld [vmem:[%s6311_s1 + $0xbe8] sm:$0xff]  ;;  %959 = vmatprep.subr.mxu0 %v498_v0  ;;  %v621_v6 = vld [vmem:[%s6311_s1 + $0xbe0] sm:$0xff] }
  0x6d   : > { %v750_v5 = vld [vmem:[%s6311_s1 + $0xfe8] sm:$0xff]  ;;  %1036 = vmatprep.subr.mxu1 %v626_v1  ;;  %v749_v7 = vld [vmem:[%s6311_s1 + $0xfe0] sm:$0xff]  ;;  %960 = vmatpush1.msra.mxu0 %v497_v2  ;;  %v235_v1 = vld [vmem:[%s3371_s13 + $0x50] sm:$0xff] }
  0x6e   : > { %1037 = vmatpush1.msra.mxu1 %v625_v3  ;;  %v618_v8 = vld [vmem:[%s6311_s1 + $0xbc8] sm:$0xff]  ;;  %961 = vmatprep.subr.mxu0 %v622_v4  ;;  %v617_v10 = vld [vmem:[%s6311_s1 + $0xbc0] sm:$0xff] }
  0x6f   : > { %v746_v9 = vld [vmem:[%s6311_s1 + $0xfc8] sm:$0xff]  ;;  %1038 = vmatprep.subr.mxu1 %v750_v5  ;;  %v745_v11 = vld [vmem:[%s6311_s1 + $0xfc0] sm:$0xff]  ;;  %962 = vmatpush2.msra.mxu0 %v621_v6 }
  0x70   : > { %1039 = vmatpush2.msra.mxu1 %v749_v7  ;;  %v614_v12 = vld [vmem:[%s6311_s1 + $0xba8] sm:$0xff]  ;;  %963 = vmatprep.subr.mxu0 %v618_v8  ;;  %v613_v14 = vld [vmem:[%s6311_s1 + $0xba0] sm:$0xff] }
  0x71   : > { %v742_v13 = vld [vmem:[%s6311_s1 + $0xfa8] sm:$0xff]  ;;  %1040 = vmatprep.subr.mxu1 %v746_v9  ;;  %v741_v15 = vld [vmem:[%s6311_s1 + $0xfa0] sm:$0xff]  ;;  %964 = vmatpush2.msra.mxu0 %v617_v10  ;;  %v232_v10 = vld [vmem:[%s3371_s13 + $0x38] sm:$0xff] }
  0x72   : > { %1041 = vmatpush2.msra.mxu1 %v745_v11  ;;  %v610_v16 = vld [vmem:[%s6311_s1 + $0xb88] sm:$0xff]  ;;  %965 = vmatprep.subr.mxu0 %v614_v12  ;;  %v609_v18 = vld [vmem:[%s6311_s1 + $0xb80] sm:$0xff]  ;;  %v304_v11 = vld [vmem:[%s6311_s1 + $0x1f8] sm:$0xff] }
  0x73   : > { %v738_v17 = vld [vmem:[%s6311_s1 + $0xf88] sm:$0xff]  ;;  %1042 = vmatprep.subr.mxu1 %v742_v13  ;;  %v737_v19 = vld [vmem:[%s6311_s1 + $0xf80] sm:$0xff]  ;;  %966 = vmatpush2.msra.mxu0 %v613_v14  ;;  %v432_v12 = vld [vmem:[%s6311_s1 + $0x5f8] sm:$0xff] }
  0x74   : > { %1043 = vmatpush2.msra.mxu1 %v741_v15  ;;  %v606_v20 = vld [vmem:[%s6311_s1 + $0xb68] sm:$0xff]  ;;  %967 = vmatprep.subr.mxu0 %v610_v16  ;;  %v605_v22 = vld [vmem:[%s6311_s1 + $0xb60] sm:$0xff]  ;;  %v231_v13 = vld [vmem:[%s3371_s13 + $0x30] sm:$0xff] }
  0x75   : > { %v734_v21 = vld [vmem:[%s6311_s1 + $0xf68] sm:$0xff]  ;;  %1044 = vmatprep.subr.mxu1 %v738_v17  ;;  %v733_v23 = vld [vmem:[%s6311_s1 + $0xf60] sm:$0xff]  ;;  %968 = vmatpush2.msra.mxu0 %v609_v18  ;;  %v303_v14 = vld [vmem:[%s6311_s1 + $0x1f0] sm:$0xff] }
  0x76   : > { %1045 = vmatpush2.msra.mxu1 %v737_v19  ;;  %v602_v24 = vld [vmem:[%s6311_s1 + $0xb48] sm:$0xff]  ;;  %969 = vmatprep.subr.mxu0 %v606_v20  ;;  %v601_v26 = vld [vmem:[%s6311_s1 + $0xb40] sm:$0xff]  ;;  %v431_v15 = vld [vmem:[%s6311_s1 + $0x5f0] sm:$0xff] }
  0x77   : > { %v730_v25 = vld [vmem:[%s6311_s1 + $0xf48] sm:$0xff]  ;;  %1046 = vmatprep.subr.mxu1 %v734_v21  ;;  %v729_v27 = vld [vmem:[%s6311_s1 + $0xf40] sm:$0xff]  ;;  %970 = vmatpush2.msra.mxu0 %v605_v22  ;;  %v300_v16 = vld [vmem:[%s6311_s1 + $0x1d8] sm:$0xff] }
  0x78   : > { %1047 = vmatpush2.msra.mxu1 %v733_v23  ;;  %v598_v28 = vld [vmem:[%s6311_s1 + $0xb28] sm:$0xff]  ;;  %971 = vmatprep.subr.mxu0 %v602_v24  ;;  %v597_v30 = vld [vmem:[%s6311_s1 + $0xb20] sm:$0xff]  ;;  %v428_v17 = vld [vmem:[%s6311_s1 + $0x5d8] sm:$0xff] }
  0x79   : > { %v726_v29 = vld [vmem:[%s6311_s1 + $0xf28] sm:$0xff]  ;;  %1048 = vmatprep.subr.mxu1 %v730_v25  ;;  %v725_v31 = vld [vmem:[%s6311_s1 + $0xf20] sm:$0xff]  ;;  %972 = vmatpush2.msra.mxu0 %v601_v26  ;;  %v299_v19 = vld [vmem:[%s6311_s1 + $0x1d0] sm:$0xff] }
  0x7a   : > { %1049 = vmatpush2.msra.mxu1 %v729_v27  ;;  %v594_v32 = vld [vmem:[%s6311_s1 + $0xb08] sm:$0xff]  ;;  %973 = vmatprep.subr.mxu0 %v598_v28  ;;  %v593_v34 = vld [vmem:[%s6311_s1 + $0xb00] sm:$0xff]  ;;  %v427_v20 = vld [vmem:[%s6311_s1 + $0x5d0] sm:$0xff] }
  0x7b   : > { %v722_v33 = vld [vmem:[%s6311_s1 + $0xf08] sm:$0xff]  ;;  %1050 = vmatprep.subr.mxu1 %v726_v29  ;;  %v721_v35 = vld [vmem:[%s6311_s1 + $0xf00] sm:$0xff]  ;;  %974 = vmatpush2.msra.mxu0 %v597_v30  ;;  %v296_v22 = vld [vmem:[%s6311_s1 + $0x1b8] sm:$0xff] }
  0x7c   : > { %1051 = vmatpush2.msra.mxu1 %v725_v31  ;;  %v590_v36 = vld [vmem:[%s6311_s1 + $0xae8] sm:$0xff]  ;;  %975 = vmatprep.subr.mxu0 %v594_v32  ;;  %v589_v38 = vld [vmem:[%s6311_s1 + $0xae0] sm:$0xff]  ;;  %v424_v23 = vld [vmem:[%s6311_s1 + $0x5b8] sm:$0xff] }
  0x7d   : > { %v718_v37 = vld [vmem:[%s6311_s1 + $0xee8] sm:$0xff]  ;;  %1052 = vmatprep.subr.mxu1 %v722_v33  ;;  %v717_v39 = vld [vmem:[%s6311_s1 + $0xee0] sm:$0xff]  ;;  %976 = vmatpush2.msra.mxu0 %v593_v34  ;;  %v240_v24 = vld [vmem:[%s3371_s13 + $0x78] sm:$0xff] }
  0x7e   : > { %1053 = vmatpush2.msra.mxu1 %v721_v35  ;;  %v586_v40 = vld [vmem:[%s6311_s1 + $0xac8] sm:$0xff]  ;;  %977 = vmatprep.subr.mxu0 %v590_v36  ;;  %v585_v42 = vld [vmem:[%s6311_s1 + $0xac0] sm:$0xff]  ;;  %v295_v25 = vld [vmem:[%s6311_s1 + $0x1b0] sm:$0xff] }
  0x7f   : > { %v714_v41 = vld [vmem:[%s6311_s1 + $0xec8] sm:$0xff]  ;;  %1054 = vmatprep.subr.mxu1 %v718_v37  ;;  %v713_v43 = vld [vmem:[%s6311_s1 + $0xec0] sm:$0xff]  ;;  %978 = vmatpush2.msra.mxu0 %v589_v38  ;;  %v423_v26 = vld [vmem:[%s6311_s1 + $0x5b0] sm:$0xff] }
  0x80   : > { %1055 = vmatpush2.msra.mxu1 %v717_v39  ;;  %v582_v44 = vld [vmem:[%s6311_s1 + $0xaa8] sm:$0xff]  ;;  %979 = vmatprep.subr.mxu0 %v586_v40  ;;  %v581_v46 = vld [vmem:[%s6311_s1 + $0xaa0] sm:$0xff]  ;;  %v292_v27 = vld [vmem:[%s6311_s1 + $0x198] sm:$0xff] }
  0x81   : > { %v710_v45 = vld [vmem:[%s6311_s1 + $0xea8] sm:$0xff]  ;;  %1056 = vmatprep.subr.mxu1 %v714_v41  ;;  %v709_v47 = vld [vmem:[%s6311_s1 + $0xea0] sm:$0xff]  ;;  %980 = vmatpush2.msra.mxu0 %v585_v42  ;;  %v3830_v28 = vld [vmem:[%s3371_s13 + $0x70] sm:$0xff] }
  0x82   : > { %1057 = vmatpush2.msra.mxu1 %v713_v43  ;;  %v578_v48 = vld [vmem:[%s6311_s1 + $0xa88] sm:$0xff]  ;;  %981 = vmatprep.subr.mxu0 %v582_v44  ;;  %v577_v50 = vld [vmem:[%s6311_s1 + $0xa80] sm:$0xff]  ;;  %v420_v29 = vld [vmem:[%s6311_s1 + $0x598] sm:$0xff] }
  0x83   : > { %v706_v49 = vld [vmem:[%s6311_s1 + $0xe88] sm:$0xff]  ;;  %1058 = vmatprep.subr.mxu1 %v710_v45  ;;  %v705_v51 = vld [vmem:[%s6311_s1 + $0xe80] sm:$0xff]  ;;  %982 = vmatpush2.msra.mxu0 %v581_v46  ;;  %v291_v30 = vld [vmem:[%s6311_s1 + $0x190] sm:$0xff] }
  0x84   : > { %1059 = vmatpush2.msra.mxu1 %v709_v47  ;;  %v574_v52 = vld [vmem:[%s6311_s1 + $0xa68] sm:$0xff]  ;;  %983 = vmatprep.subr.mxu0 %v578_v48  ;;  %v573_v54 = vld [vmem:[%s6311_s1 + $0xa60] sm:$0xff]  ;;  %v419_v31 = vld [vmem:[%s6311_s1 + $0x590] sm:$0xff] }
  0x85   : > { %v702_v53 = vld [vmem:[%s6311_s1 + $0xe68] sm:$0xff]  ;;  %1060 = vmatprep.subr.mxu1 %v706_v49  ;;  %v701_v55 = vld [vmem:[%s6311_s1 + $0xe60] sm:$0xff]  ;;  %984 = vmatpush2.msra.mxu0 %v577_v50  ;;  %v288_v32 = vld [vmem:[%s6311_s1 + $0x178] sm:$0xff] }
  0x86   : > { %1061 = vmatpush2.msra.mxu1 %v705_v51  ;;  %v234_v56 = vld [vmem:[%s3371_s13 + $0x48] sm:$0xff]  ;;  %985 = vmatprep.subr.mxu0 %v574_v52  ;;  %v233_v59 = vld [vmem:[%s3371_s13 + $0x40] sm:$0xff]  ;;  %v416_v33 = vld [vmem:[%s6311_s1 + $0x578] sm:$0xff] }
  0x87   : > { %v570_v57 = vld [vmem:[%s6311_s1 + $0xa48] sm:$0xff]  ;;  %1062 = vmatprep.subr.mxu1 %v702_v53  ;;  %986 = vmatpush2.msra.mxu0 %v573_v54  ;;  %v569_v60 = vld [vmem:[%s6311_s1 + $0xa40] sm:$0xff]  ;;  %v287_v34 = vld [vmem:[%s6311_s1 + $0x170] sm:$0xff] }
  0x88   : > { %v698_v58 = vld [vmem:[%s6311_s1 + $0xe48] sm:$0xff]  ;;  %1063 = vmatpush2.msra.mxu1 %v701_v55  ;;  %v697_v61 = vld [vmem:[%s6311_s1 + $0xe40] sm:$0xff]  ;;  %845 = vmatprep.mubr.f32.mxu0 %v234_v56  ;;  %v415_v35 = vld [vmem:[%s6311_s1 + $0x570] sm:$0xff] }
  0x89   : > { %987 = vmatprep.subr.mxu0 %v570_v57  ;;  %v566_v63 = vld [vmem:[%s6311_s1 + $0xa28] sm:$0xff]  ;;  %1064 = vmatprep.subr.mxu1 %v698_v58  ;;  %v565_v2 = vld [vmem:[%s6311_s1 + $0xa20] sm:$0xff]  ;;  %v284_v36 = vld [vmem:[%s6311_s1 + $0x158] sm:$0xff] }
  0x8a   : > { %846 = vmatmul.mubr.f32.gmra.mxu0 %v233_v59  ;;  %v694_v0 = vld [vmem:[%s6311_s1 + $0xe28] sm:$0xff]  ;;  %1065 = vmatpush2.msra.mxu1 %v697_v61  ;;  %v693_v3 = vld [vmem:[%s6311_s1 + $0xe20] sm:$0xff]  ;;  %v412_v37 = vld [vmem:[%s6311_s1 + $0x558] sm:$0xff] }
  0x8b   : > { %988 = vmatpush2.msra.mxu0 %v569_v60  ;;  %922 = vmatprep.mubr.f32.mxu1 %v236_v62  ;;  %v562_v4 = vld [vmem:[%s6311_s1 + $0xa08] sm:$0xff]  ;;  %v561_v6 = vld [vmem:[%s6311_s1 + $0xa00] sm:$0xff]  ;;  %v283_v38 = vld [vmem:[%s6311_s1 + $0x150] sm:$0xff] }
  0x8c   : > { %989 = vmatprep.subr.mxu0 %v566_v63  ;;  %v690_v5 = vld [vmem:[%s6311_s1 + $0xe08] sm:$0xff]  ;;  %1066 = vmatprep.subr.mxu1 %v694_v0  ;;  %v689_v8 = vld [vmem:[%s6311_s1 + $0xe00] sm:$0xff]  ;;  %v411_v39 = vld [vmem:[%s6311_s1 + $0x550] sm:$0xff] }
  0x8d   : > { %923 = vmatmul.mubr.f32.gmra.mxu1 %v235_v1  ;;  %v230_v7 = vld [vmem:[%s3371_s13 + $0x28] sm:$0xff]  ;;  %990 = vmatpush2.msra.mxu0 %v565_v2  ;;  %v229_v9 = vld [vmem:[%s3371_s13 + $0x20] sm:$0xff]  ;;  %v280_v40 = vld [vmem:[%s6311_s1 + $0x138] sm:$0xff] }
  0x8e   : > { %1067 = vmatpush2.msra.mxu1 %v693_v3  ;;  %991 = vmatprep.subr.mxu0 %v562_v4  ;;  %v238_v18 = vld [vmem:[%s3371_s13 + $0x68] sm:$0xff]  ;;  %v237_v21 = vld [vmem:[%s3371_s13 + $0x60] sm:$0xff]  ;;  %v408_v41 = vld [vmem:[%s6311_s1 + $0x538] sm:$0xff] }
  0x8f   : > { %1068 = vmatprep.subr.mxu1 %v690_v5  ;;  %992 = vmatpush2.msra.mxu0 %v561_v6  ;;  %v279_v42 = vld [vmem:[%s6311_s1 + $0x130] sm:$0xff]  ;;  %v276_v44 = vld [vmem:[%s6311_s1 + $0x118] sm:$0xff] }
  0x90   : > { %993 = vmatprep.mubr.f32.mxu0 %v230_v7  ;;  %1069 = vmatpush2.msra.mxu1 %v689_v8  ;;  %v407_v43 = vld [vmem:[%s6311_s1 + $0x530] sm:$0xff]  ;;  %v404_v45 = vld [vmem:[%s6311_s1 + $0x518] sm:$0xff] }
  0x91   : > { %994 = vmatmul.mubr.f32.vlgmr.msra.gmra.mxu0 %v229_v9  ;;  %1070 = vmatprep.mubr.f32.mxu1 %v232_v10  ;;  %v275_v46 = vld [vmem:[%s6311_s1 + $0x110] sm:$0xff]  ;;  %v272_v48 = vld [vmem:[%s6311_s1 + $0xf8] sm:$0xff] }
  0x92   : > { %1083 = vmatprep.subr.mxu0 %v304_v11  ;;  %1160 = vmatprep.subr.mxu1 %v432_v12  ;;  %v403_v47 = vld [vmem:[%s6311_s1 + $0x510] sm:$0xff]  ;;  %v400_v49 = vld [vmem:[%s6311_s1 + $0x4f8] sm:$0xff] }
  0x93   : > { %1071 = vmatmul.mubr.f32.vlgmr.msra.gmra.mxu1 %v231_v13  ;;  %1084 = vmatpush1.msra.mxu0 %v303_v14  ;;  %v271_v50 = vld [vmem:[%s6311_s1 + $0xf0] sm:$0xff]  ;;  %v268_v52 = vld [vmem:[%s6311_s1 + $0xd8] sm:$0xff] }
  0x94   : > { %1161 = vmatpush1.msra.mxu1 %v431_v15  ;;  %1085 = vmatprep.subr.mxu0 %v300_v16  ;;  %v399_v51 = vld [vmem:[%s6311_s1 + $0x4f0] sm:$0xff]  ;;  %v396_v53 = vld [vmem:[%s6311_s1 + $0x4d8] sm:$0xff] }
  0x95   : > { %1162 = vmatprep.subr.mxu1 %v428_v17  ;;  %999 = vmatprep.mubr.f32.mxu0 %v238_v18  ;;  %v267_v54 = vld [vmem:[%s6311_s1 + $0xd0] sm:$0xff]  ;;  %v264_v56 = vld [vmem:[%s6311_s1 + $0xb8] sm:$0xff] }
  0x96   : > { %1086 = vmatpush1.msra.mxu0 %v299_v19  ;;  %1163 = vmatpush1.msra.mxu1 %v427_v20  ;;  %v395_v55 = vld [vmem:[%s6311_s1 + $0x4d0] sm:$0xff]  ;;  %v392_v57 = vld [vmem:[%s6311_s1 + $0x4b8] sm:$0xff] }
  0x97   : > { %1000 = vmatmul.mubr.f32.gmra.mxu0 %v237_v21  ;;  %1087 = vmatprep.subr.mxu0 %v296_v22  ;;  %v263_v58 = vld [vmem:[%s6311_s1 + $0xb0] sm:$0xff]  ;;  %v260_v60 = vld [vmem:[%s6311_s1 + $0x98] sm:$0xff] }
  0x98   : > { %1164 = vmatprep.subr.mxu1 %v424_v23  ;;  %1076 = vmatprep.mubr.f32.mxu1 %v240_v24  ;;  %v391_v59 = vld [vmem:[%s6311_s1 + $0x4b0] sm:$0xff]  ;;  %v388_v61 = vld [vmem:[%s6311_s1 + $0x498] sm:$0xff] }
  0x99   : > { %1088 = vmatpush1.msra.mxu0 %v295_v25  ;;  %1165 = vmatpush1.msra.mxu1 %v423_v26  ;;  %v259_v62 = vld [vmem:[%s6311_s1 + $0x90] sm:$0xff]  ;;  %v256_v0 = vld [vmem:[%s6311_s1 + $0x78] sm:$0xff] }
  0x9a   : > { %1089 = vmatprep.subr.mxu0 %v292_v27  ;;  %1077 = vmatmul.mubr.f32.gmra.mxu1 %v3830_v28  ;;  %v387_v63 = vld [vmem:[%s6311_s1 + $0x490] sm:$0xff]  ;;  %v384_v1 = vld [vmem:[%s6311_s1 + $0x478] sm:$0xff] }
  0x9b   : > { %1166 = vmatprep.subr.mxu1 %v420_v29  ;;  %1090 = vmatpush1.msra.mxu0 %v291_v30  ;;  %v255_v2 = vld [vmem:[%s6311_s1 + $0x70] sm:$0xff]  ;;  %v252_v4 = vld [vmem:[%s6311_s1 + $0x58] sm:$0xff] }
  0x9c   : > { %1167 = vmatpush1.msra.mxu1 %v419_v31  ;;  %1091 = vmatprep.subr.mxu0 %v288_v32  ;;  %v383_v3 = vld [vmem:[%s6311_s1 + $0x470] sm:$0xff]  ;;  %v380_v5 = vld [vmem:[%s6311_s1 + $0x458] sm:$0xff] }
  0x9d   : > { %1168 = vmatprep.subr.mxu1 %v416_v33  ;;  %1092 = vmatpush1.msra.mxu0 %v287_v34  ;;  %v251_v6 = vld [vmem:[%s6311_s1 + $0x50] sm:$0xff]  ;;  %v248_v8 = vld [vmem:[%s6311_s1 + $0x38] sm:$0xff] }
  0x9e   : > { %1169 = vmatpush1.msra.mxu1 %v415_v35  ;;  %1093 = vmatprep.subr.mxu0 %v284_v36  ;;  %v379_v7 = vld [vmem:[%s6311_s1 + $0x450] sm:$0xff]  ;;  %v376_v9 = vld [vmem:[%s6311_s1 + $0x438] sm:$0xff] }
  0x9f   : > { %1170 = vmatprep.subr.mxu1 %v412_v37  ;;  %1094 = vmatpush1.msra.mxu0 %v283_v38  ;;  %v247_v10 = vld [vmem:[%s6311_s1 + $0x30] sm:$0xff]  ;;  %v244_v12 = vld [vmem:[%s6311_s1 + $0x18] sm:$0xff] }
  0xa0   : > { %1171 = vmatpush1.msra.mxu1 %v411_v39  ;;  %1095 = vmatprep.subr.mxu0 %v280_v40  ;;  %v375_v11 = vld [vmem:[%s6311_s1 + $0x430] sm:$0xff]  ;;  %v372_v13 = vld [vmem:[%s6311_s1 + $0x418] sm:$0xff] }
  0xa1   : > { %1172 = vmatprep.subr.mxu1 %v408_v41  ;;  %1096 = vmatpush1.msra.mxu0 %v279_v42  ;;  %v243_v14 = vld [vmem:[%s6311_s1 + $0x10] sm:$0xff]  ;;  %v368_v16 = vld [vmem:[%s6311_s1 + $0x3f8] sm:$0xff] }
  0xa2   : > { %1173 = vmatpush1.msra.mxu1 %v407_v43  ;;  %1097 = vmatprep.subr.mxu0 %v276_v44  ;;  %v371_v15 = vld [vmem:[%s6311_s1 + $0x410] sm:$0xff]  ;;  %v496_v17 = vld [vmem:[%s6311_s1 + $0x7f8] sm:$0xff] }
  0xa3   : > { %1174 = vmatprep.subr.mxu1 %v404_v45  ;;  %1098 = vmatpush1.msra.mxu0 %v275_v46  ;;  %v367_v18 = vld [vmem:[%s6311_s1 + $0x3f0] sm:$0xff]  ;;  %v364_v20 = vld [vmem:[%s6311_s1 + $0x3d8] sm:$0xff] }
  0xa4   : > { %1175 = vmatpush1.msra.mxu1 %v403_v47  ;;  %1099 = vmatprep.subr.mxu0 %v272_v48  ;;  %v495_v19 = vld [vmem:[%s6311_s1 + $0x7f0] sm:$0xff]  ;;  %v492_v21 = vld [vmem:[%s6311_s1 + $0x7d8] sm:$0xff] }
  0xa5   : > { %1176 = vmatprep.subr.mxu1 %v400_v49  ;;  %1100 = vmatpush1.msra.mxu0 %v271_v50  ;;  %v363_v22 = vld [vmem:[%s6311_s1 + $0x3d0] sm:$0xff]  ;;  %v360_v24 = vld [vmem:[%s6311_s1 + $0x3b8] sm:$0xff] }
  0xa6   : > { %1177 = vmatpush1.msra.mxu1 %v399_v51  ;;  %1101 = vmatprep.subr.mxu0 %v268_v52  ;;  %v491_v23 = vld [vmem:[%s6311_s1 + $0x7d0] sm:$0xff]  ;;  %v488_v25 = vld [vmem:[%s6311_s1 + $0x7b8] sm:$0xff] }
  0xa7   : > { %1178 = vmatprep.subr.mxu1 %v396_v53  ;;  %1102 = vmatpush1.msra.mxu0 %v267_v54  ;;  %v359_v26 = vld [vmem:[%s6311_s1 + $0x3b0] sm:$0xff]  ;;  %v356_v29 = vld [vmem:[%s6311_s1 + $0x398] sm:$0xff] }
  0xa8   : > { %1179 = vmatpush1.msra.mxu1 %v395_v55  ;;  %1103 = vmatprep.subr.mxu0 %v264_v56  ;;  %v487_v27 = vld [vmem:[%s6311_s1 + $0x7b0] sm:$0xff]  ;;  %v484_v30 = vld [vmem:[%s6311_s1 + $0x798] sm:$0xff] }
  0xa9   : > { %1180 = vmatprep.subr.mxu1 %v392_v57  ;;  %1104 = vmatpush1.msra.mxu0 %v263_v58  ;;  %v355_v31 = vld [vmem:[%s6311_s1 + $0x390] sm:$0xff]  ;;  %v352_v33 = vld [vmem:[%s6311_s1 + $0x378] sm:$0xff] }
  0xaa   : > { %1181 = vmatpush1.msra.mxu1 %v391_v59  ;;  %1105 = vmatprep.subr.mxu0 %v260_v60  ;;  %v483_v32 = vld [vmem:[%s6311_s1 + $0x790] sm:$0xff]  ;;  %v480_v34 = vld [vmem:[%s6311_s1 + $0x778] sm:$0xff] }
  0xab   : > { %1182 = vmatprep.subr.mxu1 %v388_v61  ;;  %1106 = vmatpush1.msra.mxu0 %v259_v62  ;;  %v351_v35 = vld [vmem:[%s6311_s1 + $0x370] sm:$0xff]  ;;  %v348_v37 = vld [vmem:[%s6311_s1 + $0x358] sm:$0xff] }
  0xac   : > { %1183 = vmatpush1.msra.mxu1 %v387_v63  ;;  %1107 = vmatprep.subr.mxu0 %v256_v0  ;;  %v479_v36 = vld [vmem:[%s6311_s1 + $0x770] sm:$0xff]  ;;  %v476_v38 = vld [vmem:[%s6311_s1 + $0x758] sm:$0xff] }
  0xad   : > { %1184 = vmatprep.subr.mxu1 %v384_v1  ;;  %1108 = vmatpush1.msra.mxu0 %v255_v2  ;;  %v347_v39 = vld [vmem:[%s6311_s1 + $0x350] sm:$0xff]  ;;  %v344_v41 = vld [vmem:[%s6311_s1 + $0x338] sm:$0xff] }
  0xae   : > { %1185 = vmatpush1.msra.mxu1 %v383_v3  ;;  %1109 = vmatprep.subr.mxu0 %v252_v4  ;;  %v475_v40 = vld [vmem:[%s6311_s1 + $0x750] sm:$0xff]  ;;  %v472_v42 = vld [vmem:[%s6311_s1 + $0x738] sm:$0xff] }
  0xaf   : > { %1186 = vmatprep.subr.mxu1 %v380_v5  ;;  %1110 = vmatpush1.msra.mxu0 %v251_v6  ;;  %v343_v43 = vld [vmem:[%s6311_s1 + $0x330] sm:$0xff]  ;;  %v340_v45 = vld [vmem:[%s6311_s1 + $0x318] sm:$0xff] }
  0xb0   : > { %1187 = vmatpush1.msra.mxu1 %v379_v7  ;;  %1111 = vmatprep.subr.mxu0 %v248_v8  ;;  %v471_v44 = vld [vmem:[%s6311_s1 + $0x730] sm:$0xff]  ;;  %v468_v46 = vld [vmem:[%s6311_s1 + $0x718] sm:$0xff] }
  0xb1   : > { %1188 = vmatprep.subr.mxu1 %v376_v9  ;;  %1112 = vmatpush1.msra.mxu0 %v247_v10  ;;  %v339_v47 = vld [vmem:[%s6311_s1 + $0x310] sm:$0xff]  ;;  %v336_v49 = vld [vmem:[%s6311_s1 + $0x2f8] sm:$0xff] }
  0xb2   : > { %1189 = vmatpush1.msra.mxu1 %v375_v11  ;;  %1113 = vmatprep.subr.mxu0 %v244_v12  ;;  %v467_v48 = vld [vmem:[%s6311_s1 + $0x710] sm:$0xff]  ;;  %v464_v50 = vld [vmem:[%s6311_s1 + $0x6f8] sm:$0xff] }
  0xb3   : > { %1190 = vmatprep.subr.mxu1 %v372_v13  ;;  %1114 = vmatpush1.msra.mxu0 %v243_v14  ;;  %v335_v51 = vld [vmem:[%s6311_s1 + $0x2f0] sm:$0xff]  ;;  %v332_v53 = vld [vmem:[%s6311_s1 + $0x2d8] sm:$0xff] }
  0xb4   : > { %1191 = vmatpush1.msra.mxu1 %v371_v15  ;;  %1115 = vmatprep.subr.mxu0 %v368_v16  ;;  %v463_v52 = vld [vmem:[%s6311_s1 + $0x6f0] sm:$0xff]  ;;  %v460_v54 = vld [vmem:[%s6311_s1 + $0x6d8] sm:$0xff] }
  0xb5   : > { %1192 = vmatprep.subr.mxu1 %v496_v17  ;;  %1116 = vmatpush2.msra.mxu0 %v367_v18  ;;  %v331_v55 = vld [vmem:[%s6311_s1 + $0x2d0] sm:$0xff]  ;;  %v328_v57 = vld [vmem:[%s6311_s1 + $0x2b8] sm:$0xff]  ;;  %v2927_v18 = vld [vmem:[%s3371_s13 + $0x8] sm:$0xff] }
  0xb6   : > { %1193 = vmatpush2.msra.mxu1 %v495_v19  ;;  %1117 = vmatprep.subr.mxu0 %v364_v20  ;;  %v459_v56 = vld [vmem:[%s6311_s1 + $0x6d0] sm:$0xff]  ;;  %v456_v58 = vld [vmem:[%s6311_s1 + $0x6b8] sm:$0xff]  ;;  %v2928_v20 = vld [vmem:[%s3371_s13] sm:$0xff] }
  0xb7   : > { %1194 = vmatprep.subr.mxu1 %v492_v21  ;;  %1118 = vmatpush2.msra.mxu0 %v363_v22  ;;  %v327_v59 = vld [vmem:[%s6311_s1 + $0x2b0] sm:$0xff]  ;;  %v324_v61 = vld [vmem:[%s6311_s1 + $0x298] sm:$0xff] }
  0xb8   : > { %1195 = vmatpush2.msra.mxu1 %v491_v23  ;;  %1119 = vmatprep.subr.mxu0 %v360_v24  ;;  %v455_v60 = vld [vmem:[%s6311_s1 + $0x6b0] sm:$0xff]  ;;  %v452_v62 = vld [vmem:[%s6311_s1 + $0x698] sm:$0xff] }
  0xb9   : > { %1196 = vmatprep.subr.mxu1 %v488_v25  ;;  %1120 = vmatpush2.msra.mxu0 %v359_v26  ;;  %v323_v63 = vld [vmem:[%s6311_s1 + $0x290] sm:$0xff]  ;;  %v320_v1 = vld [vmem:[%s6311_s1 + $0x278] sm:$0xff] }
  0xba   : > { %1197 = vmatpush2.msra.mxu1 %v487_v27  ;;  %1121 = vmatprep.subr.mxu0 %v356_v29  ;;  %v451_v0 = vld [vmem:[%s6311_s1 + $0x690] sm:$0xff]  ;;  %v448_v2 = vld [vmem:[%s6311_s1 + $0x678] sm:$0xff] }
  0xbb   : > { %1198 = vmatprep.subr.mxu1 %v484_v30  ;;  %1122 = vmatpush2.msra.mxu0 %v355_v31  ;;  %v319_v3 = vld [vmem:[%s6311_s1 + $0x270] sm:$0xff]  ;;  %v316_v5 = vld [vmem:[%s6311_s1 + $0x258] sm:$0xff] }
  0xbc   : > { %1199 = vmatpush2.msra.mxu1 %v483_v32  ;;  %1123 = vmatprep.subr.mxu0 %v352_v33  ;;  %v447_v4 = vld [vmem:[%s6311_s1 + $0x670] sm:$0xff]  ;;  %v444_v6 = vld [vmem:[%s6311_s1 + $0x658] sm:$0xff] }
  0xbd   : > { %1200 = vmatprep.subr.mxu1 %v480_v34  ;;  %1124 = vmatpush2.msra.mxu0 %v351_v35  ;;  %v315_v7 = vld [vmem:[%s6311_s1 + $0x250] sm:$0xff]  ;;  %v312_v9 = vld [vmem:[%s6311_s1 + $0x238] sm:$0xff] }
  0xbe   : > { %1201 = vmatpush2.msra.mxu1 %v479_v36  ;;  %1125 = vmatprep.subr.mxu0 %v348_v37  ;;  %v443_v8 = vld [vmem:[%s6311_s1 + $0x650] sm:$0xff]  ;;  %v440_v10 = vld [vmem:[%s6311_s1 + $0x638] sm:$0xff] }
  0xbf   : > { %1202 = vmatprep.subr.mxu1 %v476_v38  ;;  %1126 = vmatpush2.msra.mxu0 %v347_v39  ;;  %v311_v11 = vld [vmem:[%s6311_s1 + $0x230] sm:$0xff]  ;;  %v308_v13 = vld [vmem:[%s6311_s1 + $0x218] sm:$0xff] }
  0xc0   : > { %1203 = vmatpush2.msra.mxu1 %v475_v40  ;;  %1127 = vmatprep.subr.mxu0 %v344_v41  ;;  %v439_v12 = vld [vmem:[%s6311_s1 + $0x630] sm:$0xff]  ;;  %v436_v14 = vld [vmem:[%s6311_s1 + $0x618] sm:$0xff] }
  0xc1   : > { %1204 = vmatprep.subr.mxu1 %v472_v42  ;;  %1128 = vmatpush2.msra.mxu0 %v343_v43  ;;  %v307_v15 = vld [vmem:[%s6311_s1 + $0x210] sm:$0xff]  ;;  %v560_v17 = vld [vmem:[%s6311_s1 + $0x9f8] sm:$0xff] }
  0xc2   : > { %1205 = vmatpush2.msra.mxu1 %v471_v44  ;;  %1129 = vmatprep.subr.mxu0 %v340_v45  ;;  %v435_v16 = vld [vmem:[%s6311_s1 + $0x610] sm:$0xff]  ;;  %v688_v19 = vld [vmem:[%s6311_s1 + $0xdf8] sm:$0xff] }
  0xc3   : > { %1206 = vmatprep.subr.mxu1 %v468_v46  ;;  %1130 = vmatpush2.msra.mxu0 %v339_v47  ;;  %v559_v21 = vld [vmem:[%s6311_s1 + $0x9f0] sm:$0xff]  ;;  %v2929_v23 = vld [vmem:[%s3371_s13 + $0x18] sm:$0xff] }
  0xc4   : > { %1207 = vmatpush2.msra.mxu1 %v467_v48  ;;  %1131 = vmatprep.subr.mxu0 %v336_v49  ;;  %v687_v22 = vld [vmem:[%s6311_s1 + $0xdf0] sm:$0xff]  ;;  %v556_v24 = vld [vmem:[%s6311_s1 + $0x9d8] sm:$0xff] }
  0xc5   : > { %1208 = vmatprep.subr.mxu1 %v464_v50  ;;  %1132 = vmatpush2.msra.mxu0 %v335_v51  ;;  %v684_v25 = vld [vmem:[%s6311_s1 + $0xdd8] sm:$0xff]  ;;  %v2930_v26 = vld [vmem:[%s3371_s13 + $0x10] sm:$0xff] }
  0xc6   : > { %1209 = vmatpush2.msra.mxu1 %v463_v52  ;;  %1133 = vmatprep.subr.mxu0 %v332_v53  ;;  %v555_v27 = vld [vmem:[%s6311_s1 + $0x9d0] sm:$0xff]  ;;  %v552_v30 = vld [vmem:[%s6311_s1 + $0x9b8] sm:$0xff] }
  0xc7   : > { %1210 = vmatprep.subr.mxu1 %v460_v54  ;;  %1134 = vmatpush2.msra.mxu0 %v331_v55  ;;  %v683_v29 = vld [vmem:[%s6311_s1 + $0xdd0] sm:$0xff]  ;;  %v680_v31 = vld [vmem:[%s6311_s1 + $0xdb8] sm:$0xff] }
  0xc8   : > { %1211 = vmatpush2.msra.mxu1 %v459_v56  ;;  %1135 = vmatprep.subr.mxu0 %v328_v57  ;;  %v551_v32 = vld [vmem:[%s6311_s1 + $0x9b0] sm:$0xff]  ;;  %v548_v34 = vld [vmem:[%s6311_s1 + $0x998] sm:$0xff] }
  0xc9   : > { %1212 = vmatprep.subr.mxu1 %v456_v58  ;;  %1136 = vmatpush2.msra.mxu0 %v327_v59  ;;  %v679_v33 = vld [vmem:[%s6311_s1 + $0xdb0] sm:$0xff]  ;;  %v676_v35 = vld [vmem:[%s6311_s1 + $0xd98] sm:$0xff] }
  0xca   : > { %1213 = vmatpush2.msra.mxu1 %v455_v60  ;;  %1137 = vmatprep.subr.mxu0 %v324_v61  ;;  %v547_v36 = vld [vmem:[%s6311_s1 + $0x990] sm:$0xff]  ;;  %v544_v38 = vld [vmem:[%s6311_s1 + $0x978] sm:$0xff] }
  0xcb   : > { %1214 = vmatprep.subr.mxu1 %v452_v62  ;;  %1138 = vmatpush2.msra.mxu0 %v323_v63  ;;  %v675_v37 = vld [vmem:[%s6311_s1 + $0xd90] sm:$0xff]  ;;  %v672_v39 = vld [vmem:[%s6311_s1 + $0xd78] sm:$0xff] }
  0xcc   : > { %1215 = vmatpush2.msra.mxu1 %v451_v0  ;;  %1139 = vmatprep.subr.mxu0 %v320_v1  ;;  %v543_v40 = vld [vmem:[%s6311_s1 + $0x970] sm:$0xff]  ;;  %v540_v42 = vld [vmem:[%s6311_s1 + $0x958] sm:$0xff] }
  0xcd   : > { %1216 = vmatprep.subr.mxu1 %v448_v2  ;;  %1140 = vmatpush2.msra.mxu0 %v319_v3  ;;  %v671_v41 = vld [vmem:[%s6311_s1 + $0xd70] sm:$0xff]  ;;  %v668_v43 = vld [vmem:[%s6311_s1 + $0xd58] sm:$0xff] }
  0xce   : > { %1217 = vmatpush2.msra.mxu1 %v447_v4  ;;  %1141 = vmatprep.subr.mxu0 %v316_v5  ;;  %v539_v44 = vld [vmem:[%s6311_s1 + $0x950] sm:$0xff]  ;;  %v536_v46 = vld [vmem:[%s6311_s1 + $0x938] sm:$0xff] }
  0xcf   : > { %1218 = vmatprep.subr.mxu1 %v444_v6  ;;  %1142 = vmatpush2.msra.mxu0 %v315_v7  ;;  %v667_v45 = vld [vmem:[%s6311_s1 + $0xd50] sm:$0xff]  ;;  %v664_v47 = vld [vmem:[%s6311_s1 + $0xd38] sm:$0xff] }
  0xd0   : > { %1219 = vmatpush2.msra.mxu1 %v443_v8  ;;  %1143 = vmatprep.subr.mxu0 %v312_v9  ;;  %v535_v48 = vld [vmem:[%s6311_s1 + $0x930] sm:$0xff]  ;;  %v532_v50 = vld [vmem:[%s6311_s1 + $0x918] sm:$0xff] }
  0xd1   : > { %1220 = vmatprep.subr.mxu1 %v440_v10  ;;  %1144 = vmatpush2.msra.mxu0 %v311_v11  ;;  %v663_v49 = vld [vmem:[%s6311_s1 + $0xd30] sm:$0xff]  ;;  %v660_v51 = vld [vmem:[%s6311_s1 + $0xd18] sm:$0xff] }
  0xd2   : > { %1221 = vmatpush2.msra.mxu1 %v439_v12  ;;  %1145 = vmatprep.subr.mxu0 %v308_v13  ;;  %v531_v52 = vld [vmem:[%s6311_s1 + $0x910] sm:$0xff]  ;;  %v528_v54 = vld [vmem:[%s6311_s1 + $0x8f8] sm:$0xff] }
  0xd3   : > { %1222 = vmatprep.subr.mxu1 %v436_v14  ;;  %1146 = vmatpush2.msra.mxu0 %v307_v15  ;;  %v659_v53 = vld [vmem:[%s6311_s1 + $0xd10] sm:$0xff]  ;;  %v656_v55 = vld [vmem:[%s6311_s1 + $0xcf8] sm:$0xff] }
  0xd4   : > { %1147 = vmatprep.mubr.f32.mxu0 %v2927_v18  ;;  %1223 = vmatpush2.msra.mxu1 %v435_v16  ;;  %v527_v56 = vld [vmem:[%s6311_s1 + $0x8f0] sm:$0xff]  ;;  %v524_v58 = vld [vmem:[%s6311_s1 + $0x8d8] sm:$0xff] }
  0xd5   : > { %1148 = vmatmul.mubr.f32.vlgmr.msra.gmra.mxu0 %v2928_v20  ;;  %1224 = vmatprep.mubr.f32.mxu1 %v2929_v23  ;;  %v655_v57 = vld [vmem:[%s6311_s1 + $0xcf0] sm:$0xff]  ;;  %v652_v59 = vld [vmem:[%s6311_s1 + $0xcd8] sm:$0xff] }
  0xd6   : > { %1237 = vmatprep.subr.mxu0 %v560_v17  ;;  %1314 = vmatprep.subr.mxu1 %v688_v19  ;;  %v523_v60 = vld [vmem:[%s6311_s1 + $0x8d0] sm:$0xff]  ;;  %v520_v62 = vld [vmem:[%s6311_s1 + $0x8b8] sm:$0xff] }
  0xd7   : > { %1225 = vmatmul.mubr.f32.vlgmr.msra.gmra.mxu1 %v2930_v26  ;;  %1238 = vmatpush1.msra.mxu0 %v559_v21  ;;  %v651_v61 = vld [vmem:[%s6311_s1 + $0xcd0] sm:$0xff]  ;;  %v648_v63 = vld [vmem:[%s6311_s1 + $0xcb8] sm:$0xff] }
  0xd8   : > { %1315 = vmatpush1.msra.mxu1 %v687_v22  ;;  %1239 = vmatprep.subr.mxu0 %v556_v24  ;;  %v519_v0 = vld [vmem:[%s6311_s1 + $0x8b0] sm:$0xff]  ;;  %v516_v2 = vld [vmem:[%s6311_s1 + $0x898] sm:$0xff] }
  0xd9   : > { %1316 = vmatprep.subr.mxu1 %v684_v25  ;;  %1240 = vmatpush1.msra.mxu0 %v555_v27  ;;  %v647_v1 = vld [vmem:[%s6311_s1 + $0xcb0] sm:$0xff]  ;;  %v644_v3 = vld [vmem:[%s6311_s1 + $0xc98] sm:$0xff] }
  0xda   : > { %1317 = vmatpush1.msra.mxu1 %v683_v29  ;;  %1241 = vmatprep.subr.mxu0 %v552_v30  ;;  %v515_v4 = vld [vmem:[%s6311_s1 + $0x890] sm:$0xff]  ;;  %v512_v6 = vld [vmem:[%s6311_s1 + $0x878] sm:$0xff] }
  0xdb   : > { %1318 = vmatprep.subr.mxu1 %v680_v31  ;;  %1242 = vmatpush1.msra.mxu0 %v551_v32  ;;  %v643_v5 = vld [vmem:[%s6311_s1 + $0xc90] sm:$0xff]  ;;  %v640_v7 = vld [vmem:[%s6311_s1 + $0xc78] sm:$0xff] }
  0xdc   : > { %1319 = vmatpush1.msra.mxu1 %v679_v33  ;;  %1243 = vmatprep.subr.mxu0 %v548_v34  ;;  %v511_v8 = vld [vmem:[%s6311_s1 + $0x870] sm:$0xff]  ;;  %v508_v10 = vld [vmem:[%s6311_s1 + $0x858] sm:$0xff] }
  0xdd   : > { %1320 = vmatprep.subr.mxu1 %v676_v35  ;;  %1244 = vmatpush1.msra.mxu0 %v547_v36  ;;  %v639_v9 = vld [vmem:[%s6311_s1 + $0xc70] sm:$0xff]  ;;  %v636_v11 = vld [vmem:[%s6311_s1 + $0xc58] sm:$0xff] }
  0xde   : > { %1321 = vmatpush1.msra.mxu1 %v675_v37  ;;  %1245 = vmatprep.subr.mxu0 %v544_v38  ;;  %v507_v12 = vld [vmem:[%s6311_s1 + $0x850] sm:$0xff]  ;;  %v504_v14 = vld [vmem:[%s6311_s1 + $0x838] sm:$0xff] }
  0xdf   : > { %1322 = vmatprep.subr.mxu1 %v672_v39  ;;  %1246 = vmatpush1.msra.mxu0 %v543_v40  ;;  %v635_v13 = vld [vmem:[%s6311_s1 + $0xc50] sm:$0xff]  ;;  %v632_v15 = vld [vmem:[%s6311_s1 + $0xc38] sm:$0xff] }
  0xe0   : > { %1323 = vmatpush1.msra.mxu1 %v671_v41  ;;  %1247 = vmatprep.subr.mxu0 %v540_v42  ;;  %v503_v16 = vld [vmem:[%s6311_s1 + $0x830] sm:$0xff]  ;;  %v500_v18 = vld [vmem:[%s6311_s1 + $0x818] sm:$0xff] }
  0xe1   : > { %1324 = vmatprep.subr.mxu1 %v668_v43  ;;  %1248 = vmatpush1.msra.mxu0 %v539_v44  ;;  %v631_v17 = vld [vmem:[%s6311_s1 + $0xc30] sm:$0xff]  ;;  %v628_v19 = vld [vmem:[%s6311_s1 + $0xc18] sm:$0xff] }
  0xe2   : > { %1325 = vmatpush1.msra.mxu1 %v667_v45  ;;  %1249 = vmatprep.subr.mxu0 %v536_v46  ;;  %v499_v20 = vld [vmem:[%s6311_s1 + $0x810] sm:$0xff]  ;;  %v624_v22 = vld [vmem:[%s6311_s1 + $0xbf8] sm:$0xff] }
  0xe3   : > { %1326 = vmatprep.subr.mxu1 %v664_v47  ;;  %1250 = vmatpush1.msra.mxu0 %v535_v48  ;;  %v627_v21 = vld [vmem:[%s6311_s1 + $0xc10] sm:$0xff]  ;;  %v752_v23 = vld [vmem:[%s6311_s1 + $0xff8] sm:$0xff] }
  0xe4   : > { %1327 = vmatpush1.msra.mxu1 %v663_v49  ;;  %1251 = vmatprep.subr.mxu0 %v532_v50  ;;  %v623_v24 = vld [vmem:[%s6311_s1 + $0xbf0] sm:$0xff]  ;;  %v620_v26 = vld [vmem:[%s6311_s1 + $0xbd8] sm:$0xff] }
  0xe5   : > { %1328 = vmatprep.subr.mxu1 %v660_v51  ;;  %1252 = vmatpush1.msra.mxu0 %v531_v52  ;;  %v751_v25 = vld [vmem:[%s6311_s1 + $0xff0] sm:$0xff]  ;;  %v748_v27 = vld [vmem:[%s6311_s1 + $0xfd8] sm:$0xff] }
  0xe6   : > { %1329 = vmatpush1.msra.mxu1 %v659_v53  ;;  %1253 = vmatprep.subr.mxu0 %v528_v54  ;;  %v619_v29 = vld [vmem:[%s6311_s1 + $0xbd0] sm:$0xff]  ;;  %v616_v31 = vld [vmem:[%s6311_s1 + $0xbb8] sm:$0xff] }
  0xe7   : > { %1330 = vmatprep.subr.mxu1 %v656_v55  ;;  %1254 = vmatpush1.msra.mxu0 %v527_v56  ;;  %v747_v30 = vld [vmem:[%s6311_s1 + $0xfd0] sm:$0xff]  ;;  %v744_v32 = vld [vmem:[%s6311_s1 + $0xfb8] sm:$0xff] }
  0xe8   : > { %1331 = vmatpush1.msra.mxu1 %v655_v57  ;;  %1255 = vmatprep.subr.mxu0 %v524_v58  ;;  %v615_v33 = vld [vmem:[%s6311_s1 + $0xbb0] sm:$0xff]  ;;  %v612_v35 = vld [vmem:[%s6311_s1 + $0xb98] sm:$0xff] }
  0xe9   : > { %1332 = vmatprep.subr.mxu1 %v652_v59  ;;  %1256 = vmatpush1.msra.mxu0 %v523_v60  ;;  %v743_v34 = vld [vmem:[%s6311_s1 + $0xfb0] sm:$0xff]  ;;  %v740_v36 = vld [vmem:[%s6311_s1 + $0xf98] sm:$0xff] }
  0xea   : > { %1333 = vmatpush1.msra.mxu1 %v651_v61  ;;  %1257 = vmatprep.subr.mxu0 %v520_v62  ;;  %v611_v37 = vld [vmem:[%s6311_s1 + $0xb90] sm:$0xff]  ;;  %v608_v39 = vld [vmem:[%s6311_s1 + $0xb78] sm:$0xff] }
  0xeb   : > { %1334 = vmatprep.subr.mxu1 %v648_v63  ;;  %1258 = vmatpush1.msra.mxu0 %v519_v0  ;;  %v739_v38 = vld [vmem:[%s6311_s1 + $0xf90] sm:$0xff]  ;;  %v736_v40 = vld [vmem:[%s6311_s1 + $0xf78] sm:$0xff] }
  0xec   : > { %1335 = vmatpush1.msra.mxu1 %v647_v1  ;;  %1259 = vmatprep.subr.mxu0 %v516_v2  ;;  %v607_v41 = vld [vmem:[%s6311_s1 + $0xb70] sm:$0xff]  ;;  %v604_v43 = vld [vmem:[%s6311_s1 + $0xb58] sm:$0xff] }
  0xed   : > { %1336 = vmatprep.subr.mxu1 %v644_v3  ;;  %1260 = vmatpush1.msra.mxu0 %v515_v4  ;;  %v735_v42 = vld [vmem:[%s6311_s1 + $0xf70] sm:$0xff]  ;;  %v732_v44 = vld [vmem:[%s6311_s1 + $0xf58] sm:$0xff] }
  0xee   : > { %1337 = vmatpush1.msra.mxu1 %v643_v5  ;;  %1261 = vmatprep.subr.mxu0 %v512_v6  ;;  %v603_v45 = vld [vmem:[%s6311_s1 + $0xb50] sm:$0xff]  ;;  %v600_v47 = vld [vmem:[%s6311_s1 + $0xb38] sm:$0xff] }
  0xef   : > { %1338 = vmatprep.subr.mxu1 %v640_v7  ;;  %1262 = vmatpush1.msra.mxu0 %v511_v8  ;;  %v731_v46 = vld [vmem:[%s6311_s1 + $0xf50] sm:$0xff]  ;;  %v728_v48 = vld [vmem:[%s6311_s1 + $0xf38] sm:$0xff] }
  0xf0   : > { %1339 = vmatpush1.msra.mxu1 %v639_v9  ;;  %1263 = vmatprep.subr.mxu0 %v508_v10  ;;  %v599_v49 = vld [vmem:[%s6311_s1 + $0xb30] sm:$0xff]  ;;  %v596_v51 = vld [vmem:[%s6311_s1 + $0xb18] sm:$0xff] }
  0xf1   : > { %1340 = vmatprep.subr.mxu1 %v636_v11  ;;  %1264 = vmatpush1.msra.mxu0 %v507_v12  ;;  %v727_v50 = vld [vmem:[%s6311_s1 + $0xf30] sm:$0xff]  ;;  %v724_v52 = vld [vmem:[%s6311_s1 + $0xf18] sm:$0xff] }
  0xf2   : > { %1341 = vmatpush1.msra.mxu1 %v635_v13  ;;  %1265 = vmatprep.subr.mxu0 %v504_v14  ;;  %v595_v53 = vld [vmem:[%s6311_s1 + $0xb10] sm:$0xff]  ;;  %v592_v55 = vld [vmem:[%s6311_s1 + $0xaf8] sm:$0xff]  ;;  %v2931_v13 = vld [vmem:[%s3371_s13 + $0x48] sm:$0xff] }
  0xf3   : > { %1342 = vmatprep.subr.mxu1 %v632_v15  ;;  %1266 = vmatpush1.msra.mxu0 %v503_v16  ;;  %v723_v54 = vld [vmem:[%s6311_s1 + $0xf10] sm:$0xff]  ;;  %v720_v56 = vld [vmem:[%s6311_s1 + $0xef8] sm:$0xff]  ;;  %v2932_v15 = vld [vmem:[%s3371_s13 + $0x40] sm:$0xff] }
  0xf4   : > { %1343 = vmatpush1.msra.mxu1 %v631_v17  ;;  %1267 = vmatprep.subr.mxu0 %v500_v18  ;;  %v591_v57 = vld [vmem:[%s6311_s1 + $0xaf0] sm:$0xff]  ;;  %v588_v59 = vld [vmem:[%s6311_s1 + $0xad8] sm:$0xff] }
  0xf5   : > { %1344 = vmatprep.subr.mxu1 %v628_v19  ;;  %1268 = vmatpush1.msra.mxu0 %v499_v20  ;;  %v719_v58 = vld [vmem:[%s6311_s1 + $0xef0] sm:$0xff]  ;;  %v716_v60 = vld [vmem:[%s6311_s1 + $0xed8] sm:$0xff] }
  0xf6   : > { %1345 = vmatpush1.msra.mxu1 %v627_v21  ;;  %1269 = vmatprep.subr.mxu0 %v624_v22  ;;  %v587_v61 = vld [vmem:[%s6311_s1 + $0xad0] sm:$0xff]  ;;  %v584_v63 = vld [vmem:[%s6311_s1 + $0xab8] sm:$0xff] }
  0xf7   : > { %1346 = vmatprep.subr.mxu1 %v752_v23  ;;  %1270 = vmatpush2.msra.mxu0 %v623_v24  ;;  %v715_v62 = vld [vmem:[%s6311_s1 + $0xed0] sm:$0xff]  ;;  %v712_v0 = vld [vmem:[%s6311_s1 + $0xeb8] sm:$0xff] }
  0xf8   : > { %1347 = vmatpush2.msra.mxu1 %v751_v25  ;;  %1271 = vmatprep.subr.mxu0 %v620_v26  ;;  %v583_v1 = vld [vmem:[%s6311_s1 + $0xab0] sm:$0xff]  ;;  %v580_v3 = vld [vmem:[%s6311_s1 + $0xa98] sm:$0xff] }
  0xf9   : > { %1348 = vmatprep.subr.mxu1 %v748_v27  ;;  %1272 = vmatpush2.msra.mxu0 %v619_v29  ;;  %v711_v2 = vld [vmem:[%s6311_s1 + $0xeb0] sm:$0xff]  ;;  %v708_v4 = vld [vmem:[%s6311_s1 + $0xe98] sm:$0xff]  ;;  %v2935_v27 = vld [vmem:[%s3371_s13 + $0x28] sm:$0xff] }
  0xfa   : > { %1349 = vmatpush2.msra.mxu1 %v747_v30  ;;  %1273 = vmatprep.subr.mxu0 %v616_v31  ;;  %v579_v5 = vld [vmem:[%s6311_s1 + $0xa90] sm:$0xff]  ;;  %v576_v7 = vld [vmem:[%s6311_s1 + $0xa78] sm:$0xff]  ;;  %v2937_v30 = vld [vmem:[%s3371_s13 + $0x20] sm:$0xff] }
  0xfb   : > { %1350 = vmatprep.subr.mxu1 %v744_v32  ;;  %1274 = vmatpush2.msra.mxu0 %v615_v33  ;;  %v707_v6 = vld [vmem:[%s6311_s1 + $0xe90] sm:$0xff]  ;;  %v704_v8 = vld [vmem:[%s6311_s1 + $0xe78] sm:$0xff]  ;;  %v2939_v32 = vld [vmem:[%s3371_s13 + $0x68] sm:$0xff] }
  0xfc   : > { %1351 = vmatpush2.msra.mxu1 %v743_v34  ;;  %1275 = vmatprep.subr.mxu0 %v612_v35  ;;  %v575_v9 = vld [vmem:[%s6311_s1 + $0xa70] sm:$0xff]  ;;  %v572_v11 = vld [vmem:[%s6311_s1 + $0xa58] sm:$0xff]  ;;  %v2941_v34 = vld [vmem:[%s3371_s13 + $0x60] sm:$0xff]  ;;  %v2950_v35 = vmov 0.0  }
  0xfd   : > { %1352 = vmatprep.subr.mxu1 %v740_v36  ;;  %1276 = vmatpush2.msra.mxu0 %v611_v37  ;;  %v703_v10 = vld [vmem:[%s6311_s1 + $0xe70] sm:$0xff]  ;;  %v700_v12 = vld [vmem:[%s6311_s1 + $0xe58] sm:$0xff]  ;;  %v755_v37 = vlaneseq }
  0xfe   : > { %1353 = vmatpush2.msra.mxu1 %v739_v38  ;;  %1277 = vmatprep.subr.mxu0 %v608_v39  ;;  %v571_v14 = vld [vmem:[%s6311_s1 + $0xa50] sm:$0xff]  ;;  %v568_v17 = vld [vmem:[%s6311_s1 + $0xa38] sm:$0xff] }
  0xff   : > { %1354 = vmatprep.subr.mxu1 %v736_v40  ;;  %1278 = vmatpush2.msra.mxu0 %v607_v41  ;;  %v699_v16 = vld [vmem:[%s6311_s1 + $0xe50] sm:$0xff]  ;;  %v696_v18 = vld [vmem:[%s6311_s1 + $0xe38] sm:$0xff]  ;;  %v4580_v40 = vshrl.u32 %v755_v37, 7  ;;  %v1626_v37 = vld [vmem:[%s6314_s4 + $0x140] sm:$0xff] }
 0x100   : > { %1355 = vmatpush2.msra.mxu1 %v735_v42  ;;  %1279 = vmatprep.subr.mxu0 %v604_v43  ;;  %v2933_v19 = vld [vmem:[%s3371_s13 + $0x58] sm:$0xff]  ;;  %v567_v20 = vld [vmem:[%s6311_s1 + $0xa30] sm:$0xff] }
 0x101   : > { %1356 = vmatprep.subr.mxu1 %v732_v44  ;;  %1280 = vmatpush2.msra.mxu0 %v603_v45  ;;  %v695_v21 = vld [vmem:[%s6311_s1 + $0xe30] sm:$0xff]  ;;  %v564_v22 = vld [vmem:[%s6311_s1 + $0xa18] sm:$0xff]  ;;  %v761_v45 = vsub.s32 1, %v4580_v40 }
 0x102   : > { %1357 = vmatpush2.msra.mxu1 %v731_v46  ;;  %1281 = vmatprep.subr.mxu0 %v600_v47  ;;  %v692_v23 = vld [vmem:[%s6311_s1 + $0xe18] sm:$0xff]  ;;  %v2934_v24 = vld [vmem:[%s3371_s13 + $0x50] sm:$0xff]  ;;  %v757_v46 = vsub.s32 0, %v4580_v40 }
 0x103   : > { %1358 = vmatprep.subr.mxu1 %v728_v48  ;;  %1282 = vmatpush2.msra.mxu0 %v599_v49  ;;  %v563_v25 = vld [vmem:[%s6311_s1 + $0xa10] sm:$0xff]  ;;  %v2936_v29 = vld [vmem:[%s3371_s13 + $0x38] sm:$0xff] }
 0x104   : > { %1359 = vmatpush2.msra.mxu1 %v727_v50  ;;  %1283 = vmatprep.subr.mxu0 %v596_v51  ;;  %v691_v26 = vld [vmem:[%s6311_s1 + $0xe10] sm:$0xff]  ;;  %v2940_v33 = vld [vmem:[%s3371_s13 + $0x78] sm:$0xff] }
 0x105   : > { %1360 = vmatprep.subr.mxu1 %v724_v52  ;;  %1284 = vmatpush2.msra.mxu0 %v595_v53  ;;  %v2938_v31 = vld [vmem:[%s3371_s13 + $0x30] sm:$0xff] }
 0x106   : > { %1361 = vmatpush2.msra.mxu1 %v723_v54  ;;  %1285 = vmatprep.subr.mxu0 %v592_v55 }
 0x107   : > { %1362 = vmatprep.subr.mxu1 %v720_v56  ;;  %1286 = vmatpush2.msra.mxu0 %v591_v57 }
 0x108   : > { %1363 = vmatpush2.msra.mxu1 %v719_v58  ;;  %1287 = vmatprep.subr.mxu0 %v588_v59 }
 0x109   : > { %1364 = vmatprep.subr.mxu1 %v716_v60  ;;  %1288 = vmatpush2.msra.mxu0 %v587_v61 }
 0x10a   : > { %1365 = vmatpush2.msra.mxu1 %v715_v62  ;;  %1289 = vmatprep.subr.mxu0 %v584_v63 }
 0x10b   : > { %1366 = vmatprep.subr.mxu1 %v712_v0  ;;  %1290 = vmatpush2.msra.mxu0 %v583_v1 }
 0x10c   : > { %1367 = vmatpush2.msra.mxu1 %v711_v2  ;;  %1291 = vmatprep.subr.mxu0 %v580_v3 }
 0x10d   : > { %1368 = vmatprep.subr.mxu1 %v708_v4  ;;  %1292 = vmatpush2.msra.mxu0 %v579_v5  ;;  %v841_v36 = vpop.f32.mrf.mxu0 }
 0x10e   : > { %1369 = vmatpush2.msra.mxu1 %v707_v6  ;;  %1293 = vmatprep.subr.mxu0 %v576_v7 }
 0x10f   : > { %1370 = vmatprep.subr.mxu1 %v704_v8  ;;  %1153 = vmatprep.mubr.f32.mxu0 %v2931_v13  ;;  %v918_v38 = vpop.f32.mrf.mxu1  ;;  %v843_v39 = vpop.f32.mrf.mxu0  ;;  %v1707_v13 = vld [vmem:[%s6314_s4 + $0x3c8] sm:$0xff] }
 0x110   : > { %1294 = vmatpush2.msra.mxu0 %v575_v9  ;;  %1371 = vmatpush2.msra.mxu1 %v703_v10  ;;  %v4594_v10 = vld [vmem:[%s6313_s3] sm:$0xff] }
 0x111   : > { %1154 = vmatmul.mubr.f32.gmra.mxu0 %v2932_v15  ;;  %1295 = vmatprep.subr.mxu0 %v572_v11  ;;  %v920_v42 = vpop.f32.mrf.mxu1  ;;  %v4602_v11 = vld [vmem:[%s6313_s3 + $0x8] sm:$0xff]  ;;  %v4624_v15 = vld [vmem:[%s6313_s3 + $0x18] sm:$0xff] }
 0x112   : > { %1372 = vmatprep.subr.mxu1 %v700_v12  ;;  %1230 = vmatprep.mubr.f32.mxu1 %v2933_v19  ;;  %v4610_v12 = vld [vmem:[%s6313_s3 + $0x10] sm:$0xff]  ;;  %v1690_v19 = vld [vmem:[%s6314_s4 + $0x340] sm:$0xff] }
 0x113   : > { %1296 = vmatpush2.msra.mxu0 %v571_v14  ;;  %1373 = vmatpush2.msra.mxu1 %v699_v16  ;;  %v1706_v14 = vld [vmem:[%s6314_s4 + $0x3c0] sm:$0xff]  ;;  %v1699_v16 = vld [vmem:[%s6314_s4 + $0x388] sm:$0xff] }
 0x114   : > { %1297 = vmatprep.subr.mxu0 %v568_v17  ;;  %1231 = vmatmul.mubr.f32.gmra.mxu1 %v2934_v24  ;;  %v1698_v17 = vld [vmem:[%s6314_s4 + $0x380] sm:$0xff]  ;;  %v1667_v24 = vld [vmem:[%s6314_s4 + $0x288] sm:$0xff] }
 0x115   : > { %1374 = vmatprep.subr.mxu1 %v696_v18  ;;  %1298 = vmatpush2.msra.mxu0 %v567_v20  ;;  %v1691_v18 = vld [vmem:[%s6314_s4 + $0x348] sm:$0xff] }
 0x116   : > { %1375 = vmatpush2.msra.mxu1 %v695_v21  ;;  %1299 = vmatprep.subr.mxu0 %v564_v22  ;;  %v1683_v20 = vld [vmem:[%s6314_s4 + $0x308] sm:$0xff]  ;;  %v1682_v21 = vld [vmem:[%s6314_s4 + $0x300] sm:$0xff] }
 0x117   : > { %1376 = vmatprep.subr.mxu1 %v692_v23  ;;  %1300 = vmatpush2.msra.mxu0 %v563_v25  ;;  %v1675_v22 = vld [vmem:[%s6314_s4 + $0x2c8] sm:$0xff]  ;;  %v1674_v23 = vld [vmem:[%s6314_s4 + $0x2c0] sm:$0xff] }
 0x118   : > { %1301 = vmatprep.mubr.f32.mxu0 %v2935_v27  ;;  %1377 = vmatpush2.msra.mxu1 %v691_v26  ;;  %v1666_v25 = vld [vmem:[%s6314_s4 + $0x280] sm:$0xff]  ;;  %v1659_v26 = vld [vmem:[%s6314_s4 + $0x248] sm:$0xff] }
 0x119   : > { %1378 = vmatprep.mubr.f32.mxu1 %v2936_v29  ;;  %1302 = vmatmul.mubr.f32.vlgmr.msra.gmra.mxu0 %v2937_v30  ;;  %v1658_v27 = vld [vmem:[%s6314_s4 + $0x240] sm:$0xff]  ;;  %v1651_v29 = vld [vmem:[%s6314_s4 + $0x208] sm:$0xff] }
 0x11a   : > { %1379 = vmatmul.mubr.f32.vlgmr.msra.gmra.mxu1 %v2938_v31  ;;  %1307 = vmatprep.mubr.f32.mxu0 %v2939_v32  ;;  %v1650_v30 = vld [vmem:[%s6314_s4 + $0x200] sm:$0xff]  ;;  %v1643_v31 = vld [vmem:[%s6314_s4 + $0x1c8] sm:$0xff] }
 0x11b   : > { %1384 = vmatprep.mubr.f32.mxu1 %v2940_v33  ;;  %v1642_v32 = vld [vmem:[%s6314_s4 + $0x1c0] sm:$0xff]  ;;  %v1635_v33 = vld [vmem:[%s6314_s4 + $0x188] sm:$0xff] }
 0x11d   : > { %1308 = vmatmul.mubr.f32.gmra.mxu0 %v2941_v34  ;;  %v1634_v34 = vld [vmem:[%s6314_s4 + $0x180] sm:$0xff] }
 0x11e   : > { %1385 = vmatmul.mubr.f32.gmra.mxu1 %v3830_v28  ;;  %1472 = vmatprep.mubr.f32.mxu0 %v2950_v35  ;;  %v4586_v28 = vld [vmem:[%s6312_s2] sm:$0xf] }
 0x11f   : > { %1561 = vmatprep.mubr.f32.mxu1 %v2950_v35  ;;  %v762_v49 = vrot.slane %v4586_v28, %v761_v45  ;;  %v758_v50 = vrot.slane %v4586_v28, %v757_v46  ;;  %v1595_v45 = vld [vmem:[%s6314_s4 + $0x48] sm:$0xff]  ;;  %v1594_v46 = vld [vmem:[%s6314_s4 + $0x40] sm:$0xff] }
 0x121   : > { %v844_v55 = vadd.f32 %v843_v39, %v762_v49  ;;  %v842_v56 = vadd.f32 %v841_v36, %v758_v50  ;;  %v1627_v36 = vld [vmem:[%s6314_s4 + $0x148] sm:$0xff]  ;;  %v1618_v39 = vld [vmem:[%s6314_s4 + $0x100] sm:$0xff] }
 0x123   : > { %v921_v62 = vadd.f32 %v920_v42, %v844_v55  ;;  %v919_v0 = vadd.f32 %v918_v38, %v842_v56  ;;  %v1619_v38 = vld [vmem:[%s6314_s4 + $0x108] sm:$0xff]  ;;  %v1610_v42 = vld [vmem:[%s6314_s4 + $0xc0] sm:$0xff] }
 0x124   : > { %v1811_v55 = vld [vmem:[%s6314_s4 + $0x708] sm:$0xff]  ;;  %v1810_v56 = vld [vmem:[%s6314_s4 + $0x700] sm:$0xff] }
 0x14a   : > { %v847_v41 = vpop.f32.mrf.mxu0 }
 0x14b   : > { %v848_v54 = vadd.f32 %v847_v41, %v758_v50  ;;  %v1611_v41 = vld [vmem:[%s6314_s4 + $0xc8] sm:$0xff]  ;;  %v1834_v50 = vld [vmem:[%s6314_s4 + $0x7c0] sm:$0xff] }
 0x14c   : > { %v849_v43 = vpop.f32.mrf.mxu0 }
 0x14d   : > { %v924_v44 = vpop.f32.mrf.mxu1  ;;  %v850_v53 = vadd.f32 %v849_v43, %v762_v49  ;;  %v1603_v43 = vld [vmem:[%s6314_s4 + $0x88] sm:$0xff] }
 0x14e   : > { %v925_v60 = vadd.f32 %v924_v44, %v848_v54  ;;  %v1602_v44 = vld [vmem:[%s6314_s4 + $0x80] sm:$0xff]  ;;  %v1835_v49 = vld [vmem:[%s6314_s4 + $0x7c8] sm:$0xff] }
 0x14f   : > { %v926_v47 = vpop.f32.mrf.mxu1  ;;  %v1818_v54 = vld [vmem:[%s6314_s4 + $0x740] sm:$0xff] }
 0x150   : > { %v927_v59 = vadd.f32 %v926_v47, %v850_v53  ;;  %v1587_v47 = vld [vmem:[%s6314_s4 + $0x8] sm:$0xff] }
 0x151   : > { %v995_v48 = vpop.f32.mrf.mxu0  ;;  %v1819_v53 = vld [vmem:[%s6314_s4 + $0x748] sm:$0xff] }
 0x152   : > { %v996_v4 = vadd.f32 %v995_v48, %v919_v0  ;;  %v1586_v48 = vld [vmem:[%s6314_s4] sm:$0xff] }
 0x153   : > { %v1072_v51 = vpop.f32.mrf.mxu1  ;;  %v997_v52 = vpop.f32.mrf.mxu0  ;;  %v1778_v0 = vld [vmem:[%s6314_s4 + $0x600] sm:$0xff] }
 0x154   : > { %v998_v3 = vadd.f32 %v997_v52, %v921_v62  ;;  %v1073_v9 = vadd.f32 %v1072_v51, %v996_v4  ;;  %v1827_v51 = vld [vmem:[%s6314_s4 + $0x788] sm:$0xff]  ;;  %v1826_v52 = vld [vmem:[%s6314_s4 + $0x780] sm:$0xff] }
 0x155   : > { %v1074_v57 = vpop.f32.mrf.mxu1  ;;  %v1786_v62 = vld [vmem:[%s6314_s4 + $0x640] sm:$0xff] }
 0x156   : > { %v1075_v8 = vadd.f32 %v1074_v57, %v998_v3  ;;  %v1803_v57 = vld [vmem:[%s6314_s4 + $0x6c8] sm:$0xff]  ;;  %v1762_v4 = vld [vmem:[%s6314_s4 + $0x580] sm:$0xff] }
 0x157   : > { %v1001_v58 = vpop.f32.mrf.mxu0  ;;  %v1763_v3 = vld [vmem:[%s6314_s4 + $0x588] sm:$0xff] }
 0x158   : > { %v1002_v1 = vadd.f32 %v1001_v58, %v925_v60  ;;  %v1802_v58 = vld [vmem:[%s6314_s4 + $0x6c0] sm:$0xff] }
 0x159   : > { %v1003_v61 = vpop.f32.mrf.mxu0  ;;  %v1794_v60 = vld [vmem:[%s6314_s4 + $0x680] sm:$0xff] }
 0x15a   : > { %v1004_v63 = vadd.f32 %v1003_v61, %v927_v59  ;;  %v1078_v2 = vpop.f32.mrf.mxu1  ;;  %v1795_v59 = vld [vmem:[%s6314_s4 + $0x688] sm:$0xff] }
 0x15b   : > { %v1079_v7 = vadd.f32 %v1078_v2, %v1002_v1  ;;  %v1787_v61 = vld [vmem:[%s6314_s4 + $0x648] sm:$0xff]  ;;  %v1770_v2 = vld [vmem:[%s6314_s4 + $0x5c0] sm:$0xff] }
 0x15c   : > { %v1080_v5 = vpop.f32.mrf.mxu1  ;;  %v1771_v1 = vld [vmem:[%s6314_s4 + $0x5c8] sm:$0xff] }
 0x15d   : > { %v1081_v6 = vadd.f32 %v1080_v5, %v1004_v63  ;;  %v1779_v63 = vld [vmem:[%s6314_s4 + $0x608] sm:$0xff] }
 0x15e   : > { %v1755_v5 = vld [vmem:[%s6314_s4 + $0x548] sm:$0xff] }
 0x15f   : > { %1436 = vmatprep.subr.mxu0 %v1081_v6  ;;  %v1754_v6 = vld [vmem:[%s6314_s4 + $0x540] sm:$0xff] }
 0x160   : > { %1437 = vmatpush1.msra.mxu0 %v1079_v7  ;;  %v1747_v7 = vld [vmem:[%s6314_s4 + $0x508] sm:$0xff] }
 0x161   : > { %1438 = vmatprep.subr.mxu0 %v1075_v8  ;;  %v1746_v8 = vld [vmem:[%s6314_s4 + $0x500] sm:$0xff] }
 0x162   : > { %1439 = vmatpush1.msra.mxu0 %v1073_v9  ;;  %v1739_v9 = vld [vmem:[%s6314_s4 + $0x4c8] sm:$0xff] }
 0x163   : > { %2906 = vmatmul.mubr.msk.f32.vlgmr.msra.gmra.mxu0 %vm1395_vm0, %v4594_v10  ;;  %2098 = vmatprep.subr.mxu0 %v1707_v13  ;;  %v1738_v13 = vld [vmem:[%s6314_s4 + $0x4c0] sm:$0xff] }
 0x164   : > { %1478 = vmatprep.mubr.f32.mxu0 %v2950_v35  ;;  %2099 = vmatpush1.msra.mxu0 %v1706_v14  ;;  %v1731_v14 = vld [vmem:[%s6314_s4 + $0x488] sm:$0xff] }
 0x165   : > { %2100 = vmatprep.subr.mxu0 %v1699_v16  ;;  %v1730_v16 = vld [vmem:[%s6314_s4 + $0x480] sm:$0xff] }
 0x166   : > { %2101 = vmatpush1.msra.mxu0 %v1698_v17  ;;  %v1723_v17 = vld [vmem:[%s6314_s4 + $0x448] sm:$0xff] }
 0x167   : > { %2907 = vmatmul.mubr.msk.f32.gmra.mxu0 %vm1395_vm0, %v4602_v11  ;;  %2102 = vmatprep.subr.mxu0 %v1691_v18  ;;  %v1722_v18 = vld [vmem:[%s6314_s4 + $0x440] sm:$0xff] }
 0x168   : > { %1484 = vmatprep.mubr.f32.mxu0 %v2950_v35  ;;  %2103 = vmatpush1.msra.mxu0 %v1690_v19  ;;  %v1715_v19 = vld [vmem:[%s6314_s4 + $0x408] sm:$0xff] }
 0x169   : > { %2104 = vmatprep.subr.mxu0 %v1683_v20  ;;  %v1714_v20 = vld [vmem:[%s6314_s4 + $0x400] sm:$0xff] }
 0x16a   : > { %2105 = vmatpush1.msra.mxu0 %v1682_v21  ;;  %v1709_v21 = vld [vmem:[%s6314_s4 + $0x3d8] sm:$0xff] }
 0x16b   : > { %2908 = vmatmul.mubr.msk.f32.gmra.mxu0 %vm1395_vm0, %v4610_v12  ;;  %2106 = vmatprep.subr.mxu0 %v1675_v22 }
 0x16c   : > { %1490 = vmatprep.mubr.f32.mxu0 %v2950_v35  ;;  %2107 = vmatpush1.msra.mxu0 %v1674_v23 }
 0x16d   : > { %2108 = vmatprep.subr.mxu0 %v1667_v24 }
 0x16e   : > { %2109 = vmatpush1.msra.mxu0 %v1666_v25  ;;  %v769_v25 = vsub.s32 3, %v4580_v40 }
 0x16f   : > { %2909 = vmatmul.mubr.msk.f32.gmra.mxu0 %vm1395_vm0, %v4624_v15  ;;  %2110 = vmatprep.subr.mxu0 %v1659_v26 }
 0x170   : > { %2111 = vmatpush1.msra.mxu0 %v1658_v27  ;;  %v765_v27 = vsub.s32 2, %v4580_v40 }
 0x171   : > { %2112 = vmatprep.subr.mxu0 %v1651_v29 }
 0x172   : > { %2113 = vmatpush1.msra.mxu0 %v1650_v30 }
 0x173   : > { %2114 = vmatprep.subr.mxu0 %v1643_v31  ;;  %v770_v31 = vrot.slane %v4586_v28, %v769_v25  ;;  %v1842_v25 = vld [vmem:[%s6314_s4 + $0x800] sm:$0xff] }
 0x174   : > { %2115 = vmatpush1.msra.mxu0 %v1642_v32 }
 0x175   : > { %2116 = vmatprep.subr.mxu0 %v1635_v33  ;;  %v766_v33 = vrot.slane %v4586_v28, %v765_v27  ;;  %v2090_v27 = vld [vmem:[%s6314_s4 + $0xfc0] sm:$0xff] }
 0x176   : > { %2117 = vmatpush1.msra.mxu0 %v1634_v34 }
 0x177   : > { %2118 = vmatprep.subr.mxu0 %v1627_v36 }
 0x178   : > { %2119 = vmatpush1.msra.mxu0 %v1626_v37 }
 0x179   : > { %2120 = vmatprep.subr.mxu0 %v1619_v38 }
 0x17a   : > { %2121 = vmatpush1.msra.mxu0 %v1618_v39 }
 0x17b   : > { %2122 = vmatprep.subr.mxu0 %v1611_v41 }
 0x17c   : > { %2123 = vmatpush1.msra.mxu0 %v1610_v42 }
 0x17d   : > { %2124 = vmatprep.subr.mxu0 %v1603_v43 }
 0x17e   : > { %2125 = vmatpush1.msra.mxu0 %v1602_v44 }
 0x17f   : > { %2126 = vmatprep.subr.mxu0 %v1595_v45 }
 0x180   : > { %2127 = vmatpush1.msra.mxu0 %v1594_v46 }
 0x181   : > { %2128 = vmatprep.subr.mxu0 %v1587_v47 }
 0x182   : > { %2129 = vmatpush1.msra.mxu0 %v1586_v48 }
 0x183   : > { %2130 = vmatprep.subr.mxu0 %v1835_v49 }
 0x184   : > { %2131 = vmatpush2.msra.mxu0 %v1834_v50 }
 0x185   : > { %2132 = vmatprep.subr.mxu0 %v1827_v51 }
 0x186   : > { %2133 = vmatpush2.msra.mxu0 %v1826_v52 }
 0x187   : > { %2134 = vmatprep.subr.mxu0 %v1819_v53 }
 0x188   : > { %2135 = vmatpush2.msra.mxu0 %v1818_v54 }
 0x189   : > { %2136 = vmatprep.subr.mxu0 %v1811_v55 }
 0x18a   : > { %2137 = vmatpush2.msra.mxu0 %v1810_v56 }
 0x18b   : > { %2138 = vmatprep.subr.mxu0 %v1803_v57 }
 0x18c   : > { %2139 = vmatpush2.msra.mxu0 %v1802_v58 }
 0x18d   : > { %2140 = vmatprep.subr.mxu0 %v1795_v59  ;;  %v1963_v59 = vld [vmem:[%s6314_s4 + $0xbc8] sm:$0xff] }
 0x18e   : > { %2141 = vmatpush2.msra.mxu0 %v1794_v60  ;;  %v1962_v60 = vld [vmem:[%s6314_s4 + $0xbc0] sm:$0xff] }
 0x18f   : > { %2142 = vmatprep.subr.mxu0 %v1787_v61  ;;  %v1955_v61 = vld [vmem:[%s6314_s4 + $0xb88] sm:$0xff] }
 0x190   : > { %2143 = vmatpush2.msra.mxu0 %v1786_v62  ;;  %v1954_v62 = vld [vmem:[%s6314_s4 + $0xb80] sm:$0xff] }
 0x191   : > { %2144 = vmatprep.subr.mxu0 %v1779_v63  ;;  %v1947_v63 = vld [vmem:[%s6314_s4 + $0xb48] sm:$0xff] }
 0x192   : > { %2145 = vmatpush2.msra.mxu0 %v1778_v0  ;;  %v1939_v0 = vld [vmem:[%s6314_s4 + $0xb08] sm:$0xff] }
 0x193   : > { %2146 = vmatprep.subr.mxu0 %v1771_v1  ;;  %v1938_v1 = vld [vmem:[%s6314_s4 + $0xb00] sm:$0xff] }
 0x194   : > { %2147 = vmatpush2.msra.mxu0 %v1770_v2  ;;  %v1931_v2 = vld [vmem:[%s6314_s4 + $0xac8] sm:$0xff] }
 0x195   : > { %2148 = vmatprep.subr.mxu0 %v1763_v3  ;;  %v1149_v22 = vpop.f32.mrf.mxu0  ;;  %v1923_v3 = vld [vmem:[%s6314_s4 + $0xa88] sm:$0xff] }
 0x196   : > { %2149 = vmatpush2.msra.mxu0 %v1762_v4  ;;  %v1150_v42 = vadd.f32 %v1149_v22, %v766_v33  ;;  %v1922_v4 = vld [vmem:[%s6314_s4 + $0xa80] sm:$0xff]  ;;  %v1851_v22 = vld [vmem:[%s6314_s4 + $0x848] sm:$0xff] }
 0x197   : > { %2150 = vmatprep.subr.mxu0 %v1755_v5  ;;  %v1226_v23 = vpop.f32.mrf.mxu1  ;;  %v1151_v24 = vpop.f32.mrf.mxu0  ;;  %v1915_v5 = vld [vmem:[%s6314_s4 + $0xa48] sm:$0xff] }
 0x198   : > { %2151 = vmatpush2.msra.mxu0 %v1754_v6  ;;  %v1152_v39 = vadd.f32 %v1151_v24, %v770_v31  ;;  %v1227_v49 = vadd.f32 %v1226_v23, %v1150_v42  ;;  %v1906_v6 = vld [vmem:[%s6314_s4 + $0xa00] sm:$0xff]  ;;  %v1843_v24 = vld [vmem:[%s6314_s4 + $0x808] sm:$0xff] }
 0x199   : > { %2152 = vmatprep.subr.mxu0 %v1747_v7  ;;  %v1228_v26 = vpop.f32.mrf.mxu1  ;;  %v1899_v7 = vld [vmem:[%s6314_s4 + $0x9c8] sm:$0xff]  ;;  %v1850_v23 = vld [vmem:[%s6314_s4 + $0x840] sm:$0xff] }
 0x19a   : > { %2153 = vmatpush2.msra.mxu0 %v1746_v8  ;;  %v1229_v40 = vadd.f32 %v1228_v26, %v1152_v39  ;;  %v1891_v8 = vld [vmem:[%s6314_s4 + $0x988] sm:$0xff]  ;;  %v2050_v39 = vld [vmem:[%s6314_s4 + $0xe80] sm:$0xff] }
 0x19b   : > { %2154 = vmatprep.subr.mxu0 %v1739_v9  ;;  %v1890_v9 = vld [vmem:[%s6314_s4 + $0x980] sm:$0xff]  ;;  %v2091_v26 = vld [vmem:[%s6314_s4 + $0xfc8] sm:$0xff] }
 0x19c   : > { %2155 = vmatpush2.msra.mxu0 %v1738_v13  ;;  %v1883_v13 = vld [vmem:[%s6314_s4 + $0x948] sm:$0xff]  ;;  %v2042_v42 = vld [vmem:[%s6314_s4 + $0xe40] sm:$0xff] }
 0x19d   : > { %2156 = vmatprep.subr.mxu0 %v1731_v14  ;;  %v1882_v14 = vld [vmem:[%s6314_s4 + $0x940] sm:$0xff] }
 0x19e   : > { %2157 = vmatpush2.msra.mxu0 %v1730_v16  ;;  %v1875_v16 = vld [vmem:[%s6314_s4 + $0x908] sm:$0xff] }
 0x19f   : > { %2158 = vmatprep.subr.mxu0 %v1723_v17  ;;  %v1874_v17 = vld [vmem:[%s6314_s4 + $0x900] sm:$0xff] }
 0x1a0   : > { %2159 = vmatpush2.msra.mxu0 %v1722_v18  ;;  %v1867_v18 = vld [vmem:[%s6314_s4 + $0x8c8] sm:$0xff] }
 0x1a1   : > { %2160 = vmatprep.subr.mxu0 %v1715_v19  ;;  %v1866_v19 = vld [vmem:[%s6314_s4 + $0x8c0] sm:$0xff] }
 0x1a2   : > { %2161 = vmatpush2.msra.mxu0 %v1714_v20  ;;  %v1859_v20 = vld [vmem:[%s6314_s4 + $0x888] sm:$0xff] }
 0x1a3   : > { %2276 = vmatprep.subr.mxu0 %v1709_v21  ;;  %v1858_v21 = vld [vmem:[%s6314_s4 + $0x880] sm:$0xff] }
 0x1d1   : > { %v1155_v29 = vpop.f32.mrf.mxu0 }
 0x1d2   : > { %v1156_v36 = vadd.f32 %v1155_v29, %v766_v33  ;;  %v2083_v29 = vld [vmem:[%s6314_s4 + $0xf88] sm:$0xff] }
 0x1d3   : > { %v1157_v34 = vpop.f32.mrf.mxu0  ;;  %v2067_v33 = vld [vmem:[%s6314_s4 + $0xf08] sm:$0xff] }
 0x1d4   : > { %v1232_v30 = vpop.f32.mrf.mxu1  ;;  %v1158_v41 = vadd.f32 %v1157_v34, %v770_v31  ;;  %v2075_v31 = vld [vmem:[%s6314_s4 + $0xf48] sm:$0xff]  ;;  %v2066_v34 = vld [vmem:[%s6314_s4 + $0xf00] sm:$0xff] }
 0x1d5   : > { %v1233_v45 = vadd.f32 %v1232_v30, %v1156_v36  ;;  %v2082_v30 = vld [vmem:[%s6314_s4 + $0xf80] sm:$0xff]  ;;  %v2059_v36 = vld [vmem:[%s6314_s4 + $0xec8] sm:$0xff] }
 0x1d6   : > { %v1234_v32 = vpop.f32.mrf.mxu1 }
 0x1d7   : > { %v1235_v48 = vadd.f32 %v1234_v32, %v1158_v41  ;;  %v2074_v32 = vld [vmem:[%s6314_s4 + $0xf40] sm:$0xff]  ;;  %v2043_v41 = vld [vmem:[%s6314_s4 + $0xe48] sm:$0xff] }
 0x1d9   : > { %v1303_v37 = vpop.f32.mrf.mxu0 }
 0x1da   : > { %v1380_v38 = vpop.f32.mrf.mxu1  ;;  %v1304_v28 = vadd.f32 %v1303_v37, %v1227_v49  ;;  %v2058_v37 = vld [vmem:[%s6314_s4 + $0xec0] sm:$0xff] }
 0x1db   : > { %v1305_v43 = vpop.f32.mrf.mxu0  ;;  %v2010_v49 = vld [vmem:[%s6314_s4 + $0xd40] sm:$0xff] }
 0x1dc   : > { %v1382_v44 = vpop.f32.mrf.mxu1  ;;  %v1306_v52 = vadd.f32 %v1305_v43, %v1229_v40  ;;  %v1381_v58 = vadd.f32 %v1380_v38, %v1304_v28  ;;  %v2051_v38 = vld [vmem:[%s6314_s4 + $0xe88] sm:$0xff]  ;;  %v2018_v40 = vld [vmem:[%s6314_s4 + $0xd80] sm:$0xff] }
 0x1dd   : > { %v1309_v46 = vpop.f32.mrf.mxu0  ;;  %v2035_v43 = vld [vmem:[%s6314_s4 + $0xe08] sm:$0xff] }
 0x1de   : > { %v1386_v47 = vpop.f32.mrf.mxu1  ;;  %v1310_v50 = vadd.f32 %v1309_v46, %v1233_v45  ;;  %v1383_v57 = vadd.f32 %v1382_v44, %v1306_v52  ;;  %v2034_v44 = vld [vmem:[%s6314_s4 + $0xe00] sm:$0xff]  ;;  %v2027_v45 = vld [vmem:[%s6314_s4 + $0xdc8] sm:$0xff] }
 0x1df   : > { %v1311_v51 = vpop.f32.mrf.mxu0  ;;  %v2026_v46 = vld [vmem:[%s6314_s4 + $0xdc0] sm:$0xff]  ;;  %v1995_v52 = vld [vmem:[%s6314_s4 + $0xcc8] sm:$0xff] }
 0x1e0   : > { %v1312_v53 = vadd.f32 %v1311_v51, %v1235_v48  ;;  %v1388_v54 = vpop.f32.mrf.mxu1  ;;  %v1387_v56 = vadd.f32 %v1386_v47, %v1310_v50  ;;  %v2019_v47 = vld [vmem:[%s6314_s4 + $0xd88] sm:$0xff]  ;;  %v2002_v51 = vld [vmem:[%s6314_s4 + $0xd00] sm:$0xff] }
 0x1e1   : > { %v2011_v48 = vld [vmem:[%s6314_s4 + $0xd48] sm:$0xff] }
 0x1e2   : > { %v1389_v55 = vadd.f32 %v1388_v54, %v1312_v53  ;;  %v2003_v50 = vld [vmem:[%s6314_s4 + $0xd08] sm:$0xff]  ;;  %v1994_v53 = vld [vmem:[%s6314_s4 + $0xcc0] sm:$0xff] }
 0x1e3   : > { %v1987_v28 = vld [vmem:[%s6314_s4 + $0xc88] sm:$0xff]  ;;  %v1986_v54 = vld [vmem:[%s6314_s4 + $0xc80] sm:$0xff] }
 0x1e4   : > { %1525 = vmatprep.subr.mxu1 %v1389_v55  ;;  %v1979_v55 = vld [vmem:[%s6314_s4 + $0xc48] sm:$0xff] }
 0x1e5   : > { %1526 = vmatpush1.msra.mxu1 %v1387_v56 }
 0x1e6   : > { %1527 = vmatprep.subr.mxu1 %v1383_v57 }
 0x1e7   : > { %1528 = vmatpush1.msra.mxu1 %v1381_v58  ;;  %v1708_v58 = vld [vmem:[%s6314_s4 + $0x3d0] sm:$0xff] }
 0x1e8   : > { %2910 = vmatmul.mubr.msk.f32.vlgmr.msra.gmra.mxu1 %vm1395_vm0, %v4594_v10  ;;  %2187 = vmatprep.subr.mxu1 %v1963_v59  ;;  %v1946_v10 = vld [vmem:[%s6314_s4 + $0xb40] sm:$0xff]  ;;  %v1701_v59 = vld [vmem:[%s6314_s4 + $0x398] sm:$0xff] }
 0x1e9   : > { %1567 = vmatprep.mubr.f32.mxu1 %v2950_v35  ;;  %2188 = vmatpush1.msra.mxu1 %v1962_v60  ;;  %v1700_v60 = vld [vmem:[%s6314_s4 + $0x390] sm:$0xff] }
 0x1ea   : > { %2189 = vmatprep.subr.mxu1 %v1955_v61 }
 0x1eb   : > { %2190 = vmatpush1.msra.mxu1 %v1954_v62  ;;  %v1978_v62 = vld [vmem:[%s6314_s4 + $0xc40] sm:$0xff] }
 0x1ec   : > { %2911 = vmatmul.mubr.msk.f32.gmra.mxu1 %vm1395_vm0, %v4602_v11  ;;  %2191 = vmatprep.subr.mxu1 %v1947_v63  ;;  %v1930_v11 = vld [vmem:[%s6314_s4 + $0xac0] sm:$0xff]  ;;  %v1693_v63 = vld [vmem:[%s6314_s4 + $0x358] sm:$0xff] }
 0x1ed   : > { %1573 = vmatprep.mubr.f32.mxu1 %v2950_v35  ;;  %2192 = vmatpush1.msra.mxu1 %v1946_v10  ;;  %v1971_v10 = vld [vmem:[%s6314_s4 + $0xc08] sm:$0xff] }
 0x1ee   : > { %2193 = vmatprep.subr.mxu1 %v1939_v0  ;;  %v1692_v0 = vld [vmem:[%s6314_s4 + $0x350] sm:$0xff] }
 0x1ef   : > { %2194 = vmatpush1.msra.mxu1 %v1938_v1 }
 0x1f0   : > { %2912 = vmatmul.mubr.msk.f32.gmra.mxu1 %vm1395_vm0, %v4610_v12  ;;  %2195 = vmatprep.subr.mxu1 %v1931_v2  ;;  %v1914_v12 = vld [vmem:[%s6314_s4 + $0xa40] sm:$0xff] }
 0x1f1   : > { %1579 = vmatprep.mubr.f32.mxu1 %v2950_v35  ;;  %2196 = vmatpush1.msra.mxu1 %v1930_v11  ;;  %v1907_v35 = vld [vmem:[%s6314_s4 + $0xa08] sm:$0xff]  ;;  %v1970_v2 = vld [vmem:[%s6314_s4 + $0xc00] sm:$0xff]  ;;  %v1685_v11 = vld [vmem:[%s6314_s4 + $0x318] sm:$0xff] }
 0x1f2   : > { %2197 = vmatprep.subr.mxu1 %v1923_v3  ;;  %v1965_v3 = vld [vmem:[%s6314_s4 + $0xbd8] sm:$0xff] }
 0x1f3   : > { %2198 = vmatpush1.msra.mxu1 %v1922_v4  ;;  %v1684_v4 = vld [vmem:[%s6314_s4 + $0x310] sm:$0xff] }
 0x1f4   : > { %2913 = vmatmul.mubr.msk.f32.gmra.mxu1 %vm1395_vm0, %v4624_v15  ;;  %2199 = vmatprep.subr.mxu1 %v1915_v5  ;;  %v1898_v15 = vld [vmem:[%s6314_s4 + $0x9c0] sm:$0xff] }
 0x1f5   : > { %2200 = vmatpush1.msra.mxu1 %v1914_v12  ;;  %v1677_v12 = vld [vmem:[%s6314_s4 + $0x2d8] sm:$0xff] }
 0x1f6   : > { %2201 = vmatprep.subr.mxu1 %v1907_v35  ;;  %v1676_v35 = vld [vmem:[%s6314_s4 + $0x2d0] sm:$0xff] }
 0x1f7   : > { %2202 = vmatpush1.msra.mxu1 %v1906_v6 }
 0x1f8   : > { %2203 = vmatprep.subr.mxu1 %v1899_v7  ;;  %v1669_v7 = vld [vmem:[%s6314_s4 + $0x298] sm:$0xff] }
 0x1f9   : > { %2204 = vmatpush1.msra.mxu1 %v1898_v15  ;;  %v1668_v15 = vld [vmem:[%s6314_s4 + $0x290] sm:$0xff] }
 0x1fa   : > { %2205 = vmatprep.subr.mxu1 %v1891_v8 }
 0x1fb   : > { %2206 = vmatpush1.msra.mxu1 %v1890_v9  ;;  %v1661_v9 = vld [vmem:[%s6314_s4 + $0x258] sm:$0xff] }
 0x1fc   : > { %2207 = vmatprep.subr.mxu1 %v1883_v13  ;;  %v1660_v13 = vld [vmem:[%s6314_s4 + $0x250] sm:$0xff] }
 0x1fd   : > { %2208 = vmatpush1.msra.mxu1 %v1882_v14 }
 0x1fe   : > { %2209 = vmatprep.subr.mxu1 %v1875_v16  ;;  %v1653_v16 = vld [vmem:[%s6314_s4 + $0x218] sm:$0xff] }
 0x1ff   : > { %2210 = vmatpush1.msra.mxu1 %v1874_v17  ;;  %v1652_v17 = vld [vmem:[%s6314_s4 + $0x210] sm:$0xff] }
 0x200   : > { %2211 = vmatprep.subr.mxu1 %v1867_v18  ;;  %v1645_v18 = vld [vmem:[%s6314_s4 + $0x1d8] sm:$0xff] }
 0x201   : > { %2212 = vmatpush1.msra.mxu1 %v1866_v19  ;;  %v1644_v19 = vld [vmem:[%s6314_s4 + $0x1d0] sm:$0xff] }
 0x202   : > { %2213 = vmatprep.subr.mxu1 %v1859_v20  ;;  %v1637_v20 = vld [vmem:[%s6314_s4 + $0x198] sm:$0xff] }
 0x203   : > { %2214 = vmatpush1.msra.mxu1 %v1858_v21  ;;  %v1636_v21 = vld [vmem:[%s6314_s4 + $0x190] sm:$0xff] }
 0x204   : > { %2215 = vmatprep.subr.mxu1 %v1851_v22  ;;  %v1629_v22 = vld [vmem:[%s6314_s4 + $0x158] sm:$0xff] }
 0x205   : > { %2216 = vmatpush1.msra.mxu1 %v1850_v23  ;;  %v1628_v23 = vld [vmem:[%s6314_s4 + $0x150] sm:$0xff] }
 0x206   : > { %2217 = vmatprep.subr.mxu1 %v1843_v24  ;;  %v1621_v24 = vld [vmem:[%s6314_s4 + $0x118] sm:$0xff] }
 0x207   : > { %2218 = vmatpush1.msra.mxu1 %v1842_v25  ;;  %v1620_v25 = vld [vmem:[%s6314_s4 + $0x110] sm:$0xff] }
 0x208   : > { %2219 = vmatprep.subr.mxu1 %v2091_v26  ;;  %v1613_v26 = vld [vmem:[%s6314_s4 + $0xd8] sm:$0xff] }
 0x209   : > { %2220 = vmatpush2.msra.mxu1 %v2090_v27  ;;  %v1612_v27 = vld [vmem:[%s6314_s4 + $0xd0] sm:$0xff] }
 0x20a   : > { %2221 = vmatprep.subr.mxu1 %v2083_v29  ;;  %v1605_v29 = vld [vmem:[%s6314_s4 + $0x98] sm:$0xff] }
 0x20b   : > { %2222 = vmatpush2.msra.mxu1 %v2082_v30  ;;  %v1604_v30 = vld [vmem:[%s6314_s4 + $0x90] sm:$0xff] }
 0x20c   : > { %2223 = vmatprep.subr.mxu1 %v2075_v31  ;;  %v1597_v31 = vld [vmem:[%s6314_s4 + $0x58] sm:$0xff] }
 0x20d   : > { %2224 = vmatpush2.msra.mxu1 %v2074_v32  ;;  %v1596_v32 = vld [vmem:[%s6314_s4 + $0x50] sm:$0xff] }
 0x20e   : > { %2225 = vmatprep.subr.mxu1 %v2067_v33  ;;  %v1589_v33 = vld [vmem:[%s6314_s4 + $0x18] sm:$0xff] }
 0x20f   : > { %2226 = vmatpush2.msra.mxu1 %v2066_v34  ;;  %v1588_v34 = vld [vmem:[%s6314_s4 + $0x10] sm:$0xff] }
 0x210   : > { %2227 = vmatprep.subr.mxu1 %v2059_v36  ;;  %v1837_v36 = vld [vmem:[%s6314_s4 + $0x7d8] sm:$0xff] }
 0x211   : > { %2228 = vmatpush2.msra.mxu1 %v2058_v37  ;;  %v1836_v37 = vld [vmem:[%s6314_s4 + $0x7d0] sm:$0xff] }
 0x212   : > { %2229 = vmatprep.subr.mxu1 %v2051_v38  ;;  %v1829_v38 = vld [vmem:[%s6314_s4 + $0x798] sm:$0xff] }
 0x213   : > { %2230 = vmatpush2.msra.mxu1 %v2050_v39  ;;  %v1828_v39 = vld [vmem:[%s6314_s4 + $0x790] sm:$0xff] }
 0x214   : > { %2231 = vmatprep.subr.mxu1 %v2043_v41  ;;  %v1821_v41 = vld [vmem:[%s6314_s4 + $0x758] sm:$0xff] }
 0x215   : > { %2232 = vmatpush2.msra.mxu1 %v2042_v42  ;;  %v1820_v42 = vld [vmem:[%s6314_s4 + $0x750] sm:$0xff] }
 0x216   : > { %2233 = vmatprep.subr.mxu1 %v2035_v43  ;;  %v1813_v43 = vld [vmem:[%s6314_s4 + $0x718] sm:$0xff] }
 0x217   : > { %2234 = vmatpush2.msra.mxu1 %v2034_v44  ;;  %v1812_v44 = vld [vmem:[%s6314_s4 + $0x710] sm:$0xff] }
 0x218   : > { %2235 = vmatprep.subr.mxu1 %v2027_v45  ;;  %v1805_v45 = vld [vmem:[%s6314_s4 + $0x6d8] sm:$0xff] }
 0x219   : > { %2236 = vmatpush2.msra.mxu1 %v2026_v46  ;;  %v1804_v46 = vld [vmem:[%s6314_s4 + $0x6d0] sm:$0xff] }
 0x21a   : > { %2237 = vmatprep.subr.mxu1 %v2019_v47  ;;  %v1797_v47 = vld [vmem:[%s6314_s4 + $0x698] sm:$0xff] }
 0x21b   : > { %2238 = vmatpush2.msra.mxu1 %v2018_v40  ;;  %v1796_v40 = vld [vmem:[%s6314_s4 + $0x690] sm:$0xff] }
 0x21c   : > { %2239 = vmatprep.subr.mxu1 %v2011_v48  ;;  %v1789_v48 = vld [vmem:[%s6314_s4 + $0x658] sm:$0xff] }
 0x21d   : > { %2240 = vmatpush2.msra.mxu1 %v2010_v49  ;;  %v1788_v49 = vld [vmem:[%s6314_s4 + $0x650] sm:$0xff] }
 0x21e   : > { %2241 = vmatprep.subr.mxu1 %v2003_v50  ;;  %v1781_v50 = vld [vmem:[%s6314_s4 + $0x618] sm:$0xff] }
 0x21f   : > { %2242 = vmatpush2.msra.mxu1 %v2002_v51  ;;  %v1780_v51 = vld [vmem:[%s6314_s4 + $0x610] sm:$0xff] }
 0x220   : > { %2243 = vmatprep.subr.mxu1 %v1995_v52  ;;  %v1773_v52 = vld [vmem:[%s6314_s4 + $0x5d8] sm:$0xff] }
 0x221   : > { %2244 = vmatpush2.msra.mxu1 %v1994_v53  ;;  %v1772_v53 = vld [vmem:[%s6314_s4 + $0x5d0] sm:$0xff] }
 0x222   : > { %2245 = vmatprep.subr.mxu1 %v1987_v28  ;;  %v1765_v28 = vld [vmem:[%s6314_s4 + $0x598] sm:$0xff] }
 0x223   : > { %v5015_v56 = vpop.f32.mrf.mxu0  ;;  %2246 = vmatpush2.msra.mxu1 %v1986_v54  ;;  %v1764_v54 = vld [vmem:[%s6314_s4 + $0x590] sm:$0xff] }
 0x224   : > { %2247 = vmatprep.subr.mxu1 %v1979_v55  ;;  %v1757_v55 = vld [vmem:[%s6314_s4 + $0x558] sm:$0xff] }
 0x225   : > { %v5017_v57 = vpop.f32.mrf.mxu0  ;;  %2248 = vmatpush2.msra.mxu1 %v1978_v62  ;;  %v1741_v62 = vld [vmem:[%s6314_s4 + $0x4d8] sm:$0xff] }
 0x226   : > { %2162 = vmatprep.mubr.f32.mxu0 %v5017_v57  ;;  %2249 = vmatprep.subr.mxu1 %v1971_v10  ;;  %v1733_v10 = vld [vmem:[%s6314_s4 + $0x498] sm:$0xff] }
 0x227   : > { %2163 = vmatmul.mubr.f32.vlgmr.msra.gmra.mxu0 %v5015_v56  ;;  %v5030_v61 = vpop.f32.mrf.mxu0  ;;  %2250 = vmatpush2.msra.mxu1 %v1970_v2  ;;  %v1725_v2 = vld [vmem:[%s6314_s4 + $0x458] sm:$0xff] }
 0x228   : > { %2277 = vmatpush1.msra.mxu0 %v1708_v58  ;;  %2365 = vmatprep.subr.mxu1 %v1965_v3  ;;  %v1756_v58 = vld [vmem:[%s6314_s4 + $0x550] sm:$0xff]  ;;  %v1717_v3 = vld [vmem:[%s6314_s4 + $0x418] sm:$0xff] }
 0x229   : > { %2278 = vmatprep.subr.mxu0 %v1701_v59  ;;  %v5044_v1 = vpop.f32.mrf.mxu0  ;;  %v1749_v59 = vld [vmem:[%s6314_s4 + $0x518] sm:$0xff] }
 0x22a   : > { %2279 = vmatpush1.msra.mxu0 %v1700_v60  ;;  %2168 = vmatprep.mubr.f32.mxu0 %v5044_v1  ;;  %v1748_v60 = vld [vmem:[%s6314_s4 + $0x510] sm:$0xff] }
 0x22b   : > { %2280 = vmatprep.subr.mxu0 %v1693_v63  ;;  %v5059_v5 = vpop.f32.mrf.mxu0  ;;  %2169 = vmatmul.mubr.f32.gmra.mxu0 %v5030_v61  ;;  %v1740_v63 = vld [vmem:[%s6314_s4 + $0x4d0] sm:$0xff] }
 0x22c   : > { %2281 = vmatpush1.msra.mxu0 %v1692_v0  ;;  %v1732_v0 = vld [vmem:[%s6314_s4 + $0x490] sm:$0xff] }
 0x22d   : > { %2282 = vmatprep.subr.mxu0 %v1685_v11  ;;  %v5068_v6 = vpop.f32.mrf.mxu0  ;;  %v1724_v11 = vld [vmem:[%s6314_s4 + $0x450] sm:$0xff] }
 0x22e   : > { %2283 = vmatpush1.msra.mxu0 %v1684_v4  ;;  %2174 = vmatprep.mubr.f32.mxu0 %v5068_v6  ;;  %v1716_v4 = vld [vmem:[%s6314_s4 + $0x410] sm:$0xff] }
 0x22f   : > { %2284 = vmatprep.subr.mxu0 %v1677_v12  ;;  %v5077_v8 = vpop.f32.mrf.mxu0  ;;  %2175 = vmatmul.mubr.f32.gmra.mxu0 %v5059_v5  ;;  %v1711_v12 = vld [vmem:[%s6314_s4 + $0x3e8] sm:$0xff] }
 0x230   : > { %2285 = vmatpush1.msra.mxu0 %v1676_v35  ;;  %v1710_v35 = vld [vmem:[%s6314_s4 + $0x3e0] sm:$0xff] }
 0x231   : > { %2286 = vmatprep.subr.mxu0 %v1669_v7  ;;  %v5086_v14 = vpop.f32.mrf.mxu0  ;;  %v1703_v7 = vld [vmem:[%s6314_s4 + $0x3a8] sm:$0xff] }
 0x232   : > { %2287 = vmatpush1.msra.mxu0 %v1668_v15  ;;  %2180 = vmatprep.mubr.f32.mxu0 %v5086_v14  ;;  %v1702_v15 = vld [vmem:[%s6314_s4 + $0x3a0] sm:$0xff] }
 0x233   : > { %2288 = vmatprep.subr.mxu0 %v1661_v9  ;;  %2181 = vmatmul.mubr.f32.gmra.mxu0 %v5077_v8  ;;  %v1695_v9 = vld [vmem:[%s6314_s4 + $0x368] sm:$0xff] }
 0x234   : > { %2289 = vmatpush1.msra.mxu0 %v1660_v13  ;;  %2340 = vmatprep.mubr.f32.mxu0 %v5017_v57  ;;  %v1694_v13 = vld [vmem:[%s6314_s4 + $0x360] sm:$0xff] }
 0x235   : > { %2290 = vmatprep.subr.mxu0 %v1653_v16  ;;  %v1687_v16 = vld [vmem:[%s6314_s4 + $0x328] sm:$0xff] }
 0x236   : > { %2291 = vmatpush1.msra.mxu0 %v1652_v17  ;;  %v1686_v17 = vld [vmem:[%s6314_s4 + $0x320] sm:$0xff] }
 0x237   : > { %2292 = vmatprep.subr.mxu0 %v1645_v18  ;;  %v1679_v18 = vld [vmem:[%s6314_s4 + $0x2e8] sm:$0xff] }
 0x238   : > { %2293 = vmatpush1.msra.mxu0 %v1644_v19  ;;  %v1678_v19 = vld [vmem:[%s6314_s4 + $0x2e0] sm:$0xff] }
 0x239   : > { %2294 = vmatprep.subr.mxu0 %v1637_v20  ;;  %v1671_v20 = vld [vmem:[%s6314_s4 + $0x2a8] sm:$0xff] }
 0x23a   : > { %2295 = vmatpush1.msra.mxu0 %v1636_v21  ;;  %v1670_v21 = vld [vmem:[%s6314_s4 + $0x2a0] sm:$0xff] }
 0x23b   : > { %2296 = vmatprep.subr.mxu0 %v1629_v22  ;;  %v1663_v22 = vld [vmem:[%s6314_s4 + $0x268] sm:$0xff] }
 0x23c   : > { %2297 = vmatpush1.msra.mxu0 %v1628_v23  ;;  %v1662_v23 = vld [vmem:[%s6314_s4 + $0x260] sm:$0xff] }
 0x23d   : > { %2298 = vmatprep.subr.mxu0 %v1621_v24  ;;  %v1655_v24 = vld [vmem:[%s6314_s4 + $0x228] sm:$0xff] }
 0x23e   : > { %2299 = vmatpush1.msra.mxu0 %v1620_v25  ;;  %v1654_v25 = vld [vmem:[%s6314_s4 + $0x220] sm:$0xff] }
 0x23f   : > { %2300 = vmatprep.subr.mxu0 %v1613_v26  ;;  %v1647_v26 = vld [vmem:[%s6314_s4 + $0x1e8] sm:$0xff] }
 0x240   : > { %2301 = vmatpush1.msra.mxu0 %v1612_v27  ;;  %v1646_v27 = vld [vmem:[%s6314_s4 + $0x1e0] sm:$0xff] }
 0x241   : > { %2302 = vmatprep.subr.mxu0 %v1605_v29  ;;  %v1639_v29 = vld [vmem:[%s6314_s4 + $0x1a8] sm:$0xff] }
 0x242   : > { %2303 = vmatpush1.msra.mxu0 %v1604_v30  ;;  %v1638_v30 = vld [vmem:[%s6314_s4 + $0x1a0] sm:$0xff] }
 0x243   : > { %2304 = vmatprep.subr.mxu0 %v1597_v31  ;;  %v1631_v31 = vld [vmem:[%s6314_s4 + $0x168] sm:$0xff] }
 0x244   : > { %2305 = vmatpush1.msra.mxu0 %v1596_v32  ;;  %v1630_v32 = vld [vmem:[%s6314_s4 + $0x160] sm:$0xff] }
 0x245   : > { %2306 = vmatprep.subr.mxu0 %v1589_v33  ;;  %v1623_v33 = vld [vmem:[%s6314_s4 + $0x128] sm:$0xff] }
 0x246   : > { %2307 = vmatpush1.msra.mxu0 %v1588_v34  ;;  %v1622_v34 = vld [vmem:[%s6314_s4 + $0x120] sm:$0xff] }
 0x247   : > { %2308 = vmatprep.subr.mxu0 %v1837_v36  ;;  %v1615_v36 = vld [vmem:[%s6314_s4 + $0xe8] sm:$0xff] }
 0x248   : > { %2309 = vmatpush2.msra.mxu0 %v1836_v37  ;;  %v1614_v37 = vld [vmem:[%s6314_s4 + $0xe0] sm:$0xff] }
 0x249   : > { %2310 = vmatprep.subr.mxu0 %v1829_v38  ;;  %v1607_v38 = vld [vmem:[%s6314_s4 + $0xa8] sm:$0xff] }
 0x24a   : > { %2311 = vmatpush2.msra.mxu0 %v1828_v39  ;;  %v1606_v39 = vld [vmem:[%s6314_s4 + $0xa0] sm:$0xff] }
 0x24b   : > { %2312 = vmatprep.subr.mxu0 %v1821_v41  ;;  %v1599_v41 = vld [vmem:[%s6314_s4 + $0x68] sm:$0xff] }
 0x24c   : > { %2313 = vmatpush2.msra.mxu0 %v1820_v42  ;;  %v1598_v42 = vld [vmem:[%s6314_s4 + $0x60] sm:$0xff] }
 0x24d   : > { %2314 = vmatprep.subr.mxu0 %v1813_v43  ;;  %v1591_v43 = vld [vmem:[%s6314_s4 + $0x28] sm:$0xff] }
 0x24e   : > { %2315 = vmatpush2.msra.mxu0 %v1812_v44  ;;  %v1590_v44 = vld [vmem:[%s6314_s4 + $0x20] sm:$0xff] }
 0x24f   : > { %2316 = vmatprep.subr.mxu0 %v1805_v45  ;;  %v1839_v45 = vld [vmem:[%s6314_s4 + $0x7e8] sm:$0xff] }
 0x250   : > { %2317 = vmatpush2.msra.mxu0 %v1804_v46  ;;  %v1838_v46 = vld [vmem:[%s6314_s4 + $0x7e0] sm:$0xff] }
 0x251   : > { %2318 = vmatprep.subr.mxu0 %v1797_v47  ;;  %v1831_v47 = vld [vmem:[%s6314_s4 + $0x7a8] sm:$0xff] }
 0x252   : > { %2319 = vmatpush2.msra.mxu0 %v1796_v40  ;;  %v1830_v40 = vld [vmem:[%s6314_s4 + $0x7a0] sm:$0xff] }
 0x253   : > { %2320 = vmatprep.subr.mxu0 %v1789_v48  ;;  %v1823_v48 = vld [vmem:[%s6314_s4 + $0x768] sm:$0xff] }
 0x254   : > { %2321 = vmatpush2.msra.mxu0 %v1788_v49  ;;  %v1822_v49 = vld [vmem:[%s6314_s4 + $0x760] sm:$0xff] }
 0x255   : > { %2322 = vmatprep.subr.mxu0 %v1781_v50  ;;  %v1815_v50 = vld [vmem:[%s6314_s4 + $0x728] sm:$0xff] }
 0x256   : > { %2323 = vmatpush2.msra.mxu0 %v1780_v51  ;;  %v1814_v51 = vld [vmem:[%s6314_s4 + $0x720] sm:$0xff] }
 0x257   : > { %2324 = vmatprep.subr.mxu0 %v1773_v52  ;;  %v1807_v52 = vld [vmem:[%s6314_s4 + $0x6e8] sm:$0xff] }
 0x258   : > { %2325 = vmatpush2.msra.mxu0 %v1772_v53  ;;  %v1806_v53 = vld [vmem:[%s6314_s4 + $0x6e0] sm:$0xff] }
 0x259   : > { %2326 = vmatprep.subr.mxu0 %v1765_v28  ;;  %v1799_v28 = vld [vmem:[%s6314_s4 + $0x6a8] sm:$0xff] }
 0x25a   : > { %2327 = vmatpush2.msra.mxu0 %v1764_v54  ;;  %v1798_v54 = vld [vmem:[%s6314_s4 + $0x6a0] sm:$0xff] }
 0x25b   : > { %2328 = vmatprep.subr.mxu0 %v1757_v55  ;;  %v1791_v55 = vld [vmem:[%s6314_s4 + $0x668] sm:$0xff] }
 0x25c   : > { %2329 = vmatpush2.msra.mxu0 %v1756_v58  ;;  %v1790_v58 = vld [vmem:[%s6314_s4 + $0x660] sm:$0xff] }
 0x25d   : > { %2330 = vmatprep.subr.mxu0 %v1749_v59  ;;  %v1783_v59 = vld [vmem:[%s6314_s4 + $0x628] sm:$0xff] }
 0x25e   : > { %2331 = vmatpush2.msra.mxu0 %v1748_v60  ;;  %v1782_v60 = vld [vmem:[%s6314_s4 + $0x620] sm:$0xff] }
 0x25f   : > { %2332 = vmatprep.subr.mxu0 %v1741_v62  ;;  %v1775_v62 = vld [vmem:[%s6314_s4 + $0x5e8] sm:$0xff] }
 0x260   : > { %2333 = vmatpush2.msra.mxu0 %v1740_v63  ;;  %v1774_v63 = vld [vmem:[%s6314_s4 + $0x5e0] sm:$0xff] }
 0x261   : > { %2334 = vmatprep.subr.mxu0 %v1733_v10  ;;  %v1767_v10 = vld [vmem:[%s6314_s4 + $0x5a8] sm:$0xff] }
 0x262   : > { %2335 = vmatpush2.msra.mxu0 %v1732_v0  ;;  %v1766_v0 = vld [vmem:[%s6314_s4 + $0x5a0] sm:$0xff] }
 0x263   : > { %2336 = vmatprep.subr.mxu0 %v1725_v2  ;;  %v1759_v2 = vld [vmem:[%s6314_s4 + $0x568] sm:$0xff] }
 0x264   : > { %2337 = vmatpush2.msra.mxu0 %v1724_v11  ;;  %v1758_v11 = vld [vmem:[%s6314_s4 + $0x560] sm:$0xff] }
 0x265   : > { %2338 = vmatprep.subr.mxu0 %v1717_v3  ;;  %v1751_v3 = vld [vmem:[%s6314_s4 + $0x528] sm:$0xff] }
 0x266   : > { %2339 = vmatpush2.msra.mxu0 %v1716_v4  ;;  %v1750_v4 = vld [vmem:[%s6314_s4 + $0x520] sm:$0xff] }
 0x267   : > { %2454 = vmatprep.subr.mxu0 %v1711_v12  ;;  %2341 = vmatmul.mubr.f32.vlgmr.msra.gmra.mxu0 %v5015_v56  ;;  %v1743_v12 = vld [vmem:[%s6314_s4 + $0x4e8] sm:$0xff] }
 0x268   : > { %2455 = vmatpush1.msra.mxu0 %v1710_v35  ;;  %2346 = vmatprep.mubr.f32.mxu0 %v5044_v1  ;;  %v1742_v35 = vld [vmem:[%s6314_s4 + $0x4e0] sm:$0xff] }
 0x269   : > { %2456 = vmatprep.subr.mxu0 %v1703_v7  ;;  %v1735_v7 = vld [vmem:[%s6314_s4 + $0x4a8] sm:$0xff] }
 0x26a   : > { %2457 = vmatpush1.msra.mxu0 %v1702_v15  ;;  %v1734_v15 = vld [vmem:[%s6314_s4 + $0x4a0] sm:$0xff] }
 0x26b   : > { %2458 = vmatprep.subr.mxu0 %v1695_v9  ;;  %2347 = vmatmul.mubr.f32.gmra.mxu0 %v5030_v61  ;;  %v1727_v9 = vld [vmem:[%s6314_s4 + $0x468] sm:$0xff] }
 0x26c   : > { %2459 = vmatpush1.msra.mxu0 %v1694_v13  ;;  %2352 = vmatprep.mubr.f32.mxu0 %v5068_v6  ;;  %v1726_v13 = vld [vmem:[%s6314_s4 + $0x460] sm:$0xff] }
 0x26d   : > { %2460 = vmatprep.subr.mxu0 %v1687_v16  ;;  %v1719_v16 = vld [vmem:[%s6314_s4 + $0x428] sm:$0xff] }
 0x26e   : > { %2461 = vmatpush1.msra.mxu0 %v1686_v17  ;;  %v1718_v17 = vld [vmem:[%s6314_s4 + $0x420] sm:$0xff] }
 0x26f   : > { %2462 = vmatprep.subr.mxu0 %v1679_v18  ;;  %2353 = vmatmul.mubr.f32.gmra.mxu0 %v5059_v5  ;;  %v1713_v18 = vld [vmem:[%s6314_s4 + $0x3f8] sm:$0xff] }
 0x270   : > { %2463 = vmatpush1.msra.mxu0 %v1678_v19  ;;  %2358 = vmatprep.mubr.f32.mxu0 %v5086_v14  ;;  %v1712_v19 = vld [vmem:[%s6314_s4 + $0x3f0] sm:$0xff] }
 0x271   : > { %2464 = vmatprep.subr.mxu0 %v1671_v20  ;;  %v1705_v20 = vld [vmem:[%s6314_s4 + $0x3b8] sm:$0xff] }
 0x272   : > { %2465 = vmatpush1.msra.mxu0 %v1670_v21  ;;  %v1704_v21 = vld [vmem:[%s6314_s4 + $0x3b0] sm:$0xff] }
 0x273   : > { %2466 = vmatprep.subr.mxu0 %v1663_v22  ;;  %2359 = vmatmul.mubr.f32.gmra.mxu0 %v5077_v8 }
 0x274   : > { %2467 = vmatpush1.msra.mxu0 %v1662_v23  ;;  %2518 = vmatprep.mubr.f32.mxu0 %v5017_v57  ;;  %v1697_v23 = vld [vmem:[%s6314_s4 + $0x378] sm:$0xff] }
 0x275   : > { %2468 = vmatprep.subr.mxu0 %v1655_v24 }
 0x276   : > { %2469 = vmatpush1.msra.mxu0 %v1654_v25  ;;  %v1964_v25 = vld [vmem:[%s6314_s4 + $0xbd0] sm:$0xff] }
 0x277   : > { %2470 = vmatprep.subr.mxu0 %v1647_v26  ;;  %v1696_v26 = vld [vmem:[%s6314_s4 + $0x370] sm:$0xff] }
 0x278   : > { %2471 = vmatpush1.msra.mxu0 %v1646_v27  ;;  %v1957_v27 = vld [vmem:[%s6314_s4 + $0xb98] sm:$0xff] }
 0x279   : > { %2472 = vmatprep.subr.mxu0 %v1639_v29  ;;  %v1689_v29 = vld [vmem:[%s6314_s4 + $0x338] sm:$0xff] }
 0x27a   : > { %2473 = vmatpush1.msra.mxu0 %v1638_v30 }
 0x27b   : > { %2474 = vmatprep.subr.mxu0 %v1631_v31  ;;  %v1956_v31 = vld [vmem:[%s6314_s4 + $0xb90] sm:$0xff] }
 0x27c   : > { %2475 = vmatpush1.msra.mxu0 %v1630_v32  ;;  %v1949_v32 = vld [vmem:[%s6314_s4 + $0xb58] sm:$0xff] }
 0x27d   : > { %2476 = vmatprep.subr.mxu0 %v1623_v33 }
 0x27e   : > { %2477 = vmatpush1.msra.mxu0 %v1622_v34  ;;  %v1948_v34 = vld [vmem:[%s6314_s4 + $0xb50] sm:$0xff] }
 0x27f   : > { %2478 = vmatprep.subr.mxu0 %v1615_v36  ;;  %v1941_v36 = vld [vmem:[%s6314_s4 + $0xb18] sm:$0xff] }
 0x280   : > { %2479 = vmatpush1.msra.mxu0 %v1614_v37  ;;  %v1688_v37 = vld [vmem:[%s6314_s4 + $0x330] sm:$0xff] }
 0x281   : > { %2480 = vmatprep.subr.mxu0 %v1607_v38 }
 0x282   : > { %2481 = vmatpush1.msra.mxu0 %v1606_v39  ;;  %v1940_v39 = vld [vmem:[%s6314_s4 + $0xb10] sm:$0xff] }
 0x283   : > { %2482 = vmatprep.subr.mxu0 %v1599_v41  ;;  %v1933_v41 = vld [vmem:[%s6314_s4 + $0xad8] sm:$0xff] }
 0x284   : > { %2483 = vmatpush1.msra.mxu0 %v1598_v42 }
 0x285   : > { %2484 = vmatprep.subr.mxu0 %v1591_v43  ;;  %v1681_v43 = vld [vmem:[%s6314_s4 + $0x2f8] sm:$0xff] }
 0x286   : > { %2485 = vmatpush1.msra.mxu0 %v1590_v44  ;;  %v1932_v44 = vld [vmem:[%s6314_s4 + $0xad0] sm:$0xff] }
 0x287   : > { %2486 = vmatprep.subr.mxu0 %v1839_v45  ;;  %v1680_v45 = vld [vmem:[%s6314_s4 + $0x2f0] sm:$0xff] }
 0x288   : > { %2487 = vmatpush2.msra.mxu0 %v1838_v46 }
 0x289   : > { %2488 = vmatprep.subr.mxu0 %v1831_v47  ;;  %v1925_v47 = vld [vmem:[%s6314_s4 + $0xa98] sm:$0xff] }
 0x28a   : > { %2489 = vmatpush2.msra.mxu0 %v1830_v40  ;;  %v1673_v40 = vld [vmem:[%s6314_s4 + $0x2b8] sm:$0xff] }
 0x28b   : > { %2490 = vmatprep.subr.mxu0 %v1823_v48  ;;  %v1924_v48 = vld [vmem:[%s6314_s4 + $0xa90] sm:$0xff] }
 0x28c   : > { %2491 = vmatpush2.msra.mxu0 %v1822_v49 }
 0x28d   : > { %2492 = vmatprep.subr.mxu0 %v1815_v50  ;;  %v1672_v50 = vld [vmem:[%s6314_s4 + $0x2b0] sm:$0xff] }
 0x28e   : > { %2493 = vmatpush2.msra.mxu0 %v1814_v51  ;;  %v1917_v51 = vld [vmem:[%s6314_s4 + $0xa58] sm:$0xff] }
 0x28f   : > { %2494 = vmatprep.subr.mxu0 %v1807_v52  ;;  %v1665_v52 = vld [vmem:[%s6314_s4 + $0x278] sm:$0xff] }
 0x290   : > { %2495 = vmatpush2.msra.mxu0 %v1806_v53  ;;  %v1916_v53 = vld [vmem:[%s6314_s4 + $0xa50] sm:$0xff] }
 0x291   : > { %2496 = vmatprep.subr.mxu0 %v1799_v28  ;;  %v1664_v28 = vld [vmem:[%s6314_s4 + $0x270] sm:$0xff] }
 0x292   : > { %2497 = vmatpush2.msra.mxu0 %v1798_v54  ;;  %v1909_v54 = vld [vmem:[%s6314_s4 + $0xa18] sm:$0xff] }
 0x293   : > { %2498 = vmatprep.subr.mxu0 %v1791_v55  ;;  %v1657_v55 = vld [vmem:[%s6314_s4 + $0x238] sm:$0xff] }
 0x294   : > { %2499 = vmatpush2.msra.mxu0 %v1790_v58  ;;  %v1908_v58 = vld [vmem:[%s6314_s4 + $0xa10] sm:$0xff] }
 0x295   : > { %2500 = vmatprep.subr.mxu0 %v1783_v59  ;;  %v1656_v59 = vld [vmem:[%s6314_s4 + $0x230] sm:$0xff] }
 0x296   : > { %2501 = vmatpush2.msra.mxu0 %v1782_v60  ;;  %v1901_v60 = vld [vmem:[%s6314_s4 + $0x9d8] sm:$0xff] }
 0x297   : > { %2502 = vmatprep.subr.mxu0 %v1775_v62  ;;  %v1649_v62 = vld [vmem:[%s6314_s4 + $0x1f8] sm:$0xff] }
 0x298   : > { %2503 = vmatpush2.msra.mxu0 %v1774_v63  ;;  %v1900_v63 = vld [vmem:[%s6314_s4 + $0x9d0] sm:$0xff] }
 0x299   : > { %2504 = vmatprep.subr.mxu0 %v1767_v10  ;;  %v1893_v10 = vld [vmem:[%s6314_s4 + $0x998] sm:$0xff] }
 0x29a   : > { %2505 = vmatpush2.msra.mxu0 %v1766_v0  ;;  %v1641_v0 = vld [vmem:[%s6314_s4 + $0x1b8] sm:$0xff] }
 0x29b   : > { %2506 = vmatprep.subr.mxu0 %v1759_v2  ;;  %v1892_v2 = vld [vmem:[%s6314_s4 + $0x990] sm:$0xff] }
 0x29c   : > { %2507 = vmatpush2.msra.mxu0 %v1758_v11  ;;  %v1640_v11 = vld [vmem:[%s6314_s4 + $0x1b0] sm:$0xff] }
 0x29d   : > { %2508 = vmatprep.subr.mxu0 %v1751_v3  ;;  %v1885_v3 = vld [vmem:[%s6314_s4 + $0x958] sm:$0xff] }
 0x29e   : > { %2509 = vmatpush2.msra.mxu0 %v1750_v4  ;;  %v1633_v4 = vld [vmem:[%s6314_s4 + $0x178] sm:$0xff] }
 0x29f   : > { %2510 = vmatprep.subr.mxu0 %v1743_v12  ;;  %v1884_v12 = vld [vmem:[%s6314_s4 + $0x950] sm:$0xff] }
 0x2a0   : > { %2511 = vmatpush2.msra.mxu0 %v1742_v35  ;;  %v1632_v35 = vld [vmem:[%s6314_s4 + $0x170] sm:$0xff] }
 0x2a1   : > { %2512 = vmatprep.subr.mxu0 %v1735_v7  ;;  %v1877_v7 = vld [vmem:[%s6314_s4 + $0x918] sm:$0xff] }
 0x2a2   : > { %2513 = vmatpush2.msra.mxu0 %v1734_v15  ;;  %v1625_v15 = vld [vmem:[%s6314_s4 + $0x138] sm:$0xff] }
 0x2a3   : > { %2514 = vmatprep.subr.mxu0 %v1727_v9  ;;  %v1876_v9 = vld [vmem:[%s6314_s4 + $0x910] sm:$0xff] }
 0x2a4   : > { %2515 = vmatpush2.msra.mxu0 %v1726_v13  ;;  %v1624_v13 = vld [vmem:[%s6314_s4 + $0x130] sm:$0xff] }
 0x2a5   : > { %2516 = vmatprep.subr.mxu0 %v1719_v16  ;;  %v1869_v16 = vld [vmem:[%s6314_s4 + $0x8d8] sm:$0xff] }
 0x2a6   : > { %2517 = vmatpush2.msra.mxu0 %v1718_v17  ;;  %v1617_v17 = vld [vmem:[%s6314_s4 + $0xf8] sm:$0xff] }
 0x2a7   : > { %2519 = vmatmul.mubr.f32.vlgmr.msra.gmra.mxu0 %v5015_v56  ;;  %2632 = vmatprep.subr.mxu0 %v1713_v18  ;;  %v1868_v18 = vld [vmem:[%s6314_s4 + $0x8d0] sm:$0xff] }
 0x2a8   : > { %v5454_v22 = vpop.f32.mrf.mxu1  ;;  %2633 = vmatpush1.msra.mxu0 %v1712_v19  ;;  %2524 = vmatprep.mubr.f32.mxu0 %v5044_v1  ;;  %v1616_v19 = vld [vmem:[%s6314_s4 + $0xf0] sm:$0xff] }
 0x2a9   : > { %2634 = vmatprep.subr.mxu0 %v1705_v20  ;;  %v1861_v20 = vld [vmem:[%s6314_s4 + $0x898] sm:$0xff] }
 0x2aa   : > { %v5460_v24 = vpop.f32.mrf.mxu1  ;;  %2635 = vmatpush1.msra.mxu0 %v1704_v21  ;;  %v1609_v21 = vld [vmem:[%s6314_s4 + $0xb8] sm:$0xff] }
 0x2ab   : > { %2251 = vmatprep.mubr.f32.mxu1 %v5460_v24  ;;  %2525 = vmatmul.mubr.f32.gmra.mxu0 %v5030_v61 }
 0x2ac   : > { %v5476_v30 = vpop.f32.mrf.mxu1  ;;  %2252 = vmatmul.mubr.f32.vlgmr.msra.gmra.mxu1 %v5454_v22  ;;  %2636 = vmatprep.subr.mxu0 %v1697_v23  ;;  %v1860_v23 = vld [vmem:[%s6314_s4 + $0x890] sm:$0xff] }
 0x2ad   : > { %2366 = vmatpush1.msra.mxu1 %v1964_v25  ;;  %2637 = vmatpush1.msra.mxu0 %v1696_v26  ;;  %v1608_v25 = vld [vmem:[%s6314_s4 + $0xb0] sm:$0xff]  ;;  %v1853_v26 = vld [vmem:[%s6314_s4 + $0x858] sm:$0xff] }
 0x2ae   : > { %2367 = vmatprep.subr.mxu1 %v1957_v27  ;;  %v5485_v33 = vpop.f32.mrf.mxu1  ;;  %2638 = vmatprep.subr.mxu0 %v1689_v29  ;;  %v1601_v27 = vld [vmem:[%s6314_s4 + $0x78] sm:$0xff]  ;;  %v1852_v29 = vld [vmem:[%s6314_s4 + $0x850] sm:$0xff] }
 0x2af   : > { %2368 = vmatpush1.msra.mxu1 %v1956_v31  ;;  %2257 = vmatprep.mubr.f32.mxu1 %v5485_v33  ;;  %v1600_v31 = vld [vmem:[%s6314_s4 + $0x70] sm:$0xff] }
 0x2b0   : > { %2369 = vmatprep.subr.mxu1 %v1949_v32  ;;  %v5497_v38 = vpop.f32.mrf.mxu1  ;;  %2258 = vmatmul.mubr.f32.gmra.mxu1 %v5476_v30  ;;  %v1845_v32 = vld [vmem:[%s6314_s4 + $0x818] sm:$0xff] }
 0x2b1   : > { %2370 = vmatpush1.msra.mxu1 %v1948_v34  ;;  %2530 = vmatprep.mubr.f32.mxu0 %v5068_v6  ;;  %v1593_v34 = vld [vmem:[%s6314_s4 + $0x38] sm:$0xff] }
 0x2b2   : > { %2371 = vmatprep.subr.mxu1 %v1941_v36  ;;  %v5507_v42 = vpop.f32.mrf.mxu1  ;;  %2639 = vmatpush1.msra.mxu0 %v1688_v37  ;;  %v1844_v36 = vld [vmem:[%s6314_s4 + $0x810] sm:$0xff] }
 0x2b3   : > { %2372 = vmatpush1.msra.mxu1 %v1940_v39  ;;  %2263 = vmatprep.mubr.f32.mxu1 %v5507_v42  ;;  %v1592_v37 = vld [vmem:[%s6314_s4 + $0x30] sm:$0xff]  ;;  %v2093_v39 = vld [vmem:[%s6314_s4 + $0xfd8] sm:$0xff] }
 0x2b4   : > { %2373 = vmatprep.subr.mxu1 %v1933_v41  ;;  %2531 = vmatmul.mubr.f32.gmra.mxu0 %v5059_v5  ;;  %v5520_v46 = vpop.f32.mrf.mxu1  ;;  %v1841_v41 = vld [vmem:[%s6314_s4 + $0x7f8] sm:$0xff] }
 0x2b5   : > { %2640 = vmatprep.subr.mxu0 %v1681_v43  ;;  %2264 = vmatmul.mubr.f32.gmra.mxu1 %v5497_v38  ;;  %v2092_v43 = vld [vmem:[%s6314_s4 + $0xfd0] sm:$0xff] }
 0x2b6   : > { %2374 = vmatpush1.msra.mxu1 %v1932_v44  ;;  %2641 = vmatpush1.msra.mxu0 %v1680_v45  ;;  %v5532_v49 = vpop.f32.mrf.mxu1  ;;  %v1840_v44 = vld [vmem:[%s6314_s4 + $0x7f0] sm:$0xff]  ;;  %v2085_v45 = vld [vmem:[%s6314_s4 + $0xf98] sm:$0xff] }
 0x2b7   : > { %2375 = vmatprep.subr.mxu1 %v1925_v47  ;;  %2642 = vmatprep.subr.mxu0 %v1673_v40  ;;  %v1833_v47 = vld [vmem:[%s6314_s4 + $0x7b8] sm:$0xff]  ;;  %v2084_v40 = vld [vmem:[%s6314_s4 + $0xf90] sm:$0xff] }
 0x2b8   : > { %2376 = vmatpush1.msra.mxu1 %v1924_v48  ;;  %2536 = vmatprep.mubr.f32.mxu0 %v5086_v14  ;;  %v1832_v48 = vld [vmem:[%s6314_s4 + $0x7b0] sm:$0xff] }
 0x2b9   : > { %2643 = vmatpush1.msra.mxu0 %v1672_v50  ;;  %2269 = vmatprep.mubr.f32.mxu1 %v5532_v49  ;;  %v2077_v50 = vld [vmem:[%s6314_s4 + $0xf58] sm:$0xff] }
 0x2ba   : > { %2377 = vmatprep.subr.mxu1 %v1917_v51  ;;  %2537 = vmatmul.mubr.f32.gmra.mxu0 %v5077_v8  ;;  %v1825_v51 = vld [vmem:[%s6314_s4 + $0x778] sm:$0xff] }
 0x2bb   : > { %2644 = vmatprep.subr.mxu0 %v1665_v52  ;;  %2270 = vmatmul.mubr.f32.gmra.mxu1 %v5520_v46  ;;  %v2076_v52 = vld [vmem:[%s6314_s4 + $0xf50] sm:$0xff] }
 0x2bc   : > { %2378 = vmatpush1.msra.mxu1 %v1916_v53  ;;  %2645 = vmatpush1.msra.mxu0 %v1664_v28  ;;  %v1824_v53 = vld [vmem:[%s6314_s4 + $0x770] sm:$0xff]  ;;  %v2069_v28 = vld [vmem:[%s6314_s4 + $0xf18] sm:$0xff] }
 0x2bd   : > { %2696 = vmatprep.mubr.f32.mxu0 %v5017_v57  ;;  %2379 = vmatprep.subr.mxu1 %v1909_v54  ;;  %v1648_v57 = vld [vmem:[%s6314_s4 + $0x1f0] sm:$0xff]  ;;  %v1817_v54 = vld [vmem:[%s6314_s4 + $0x738] sm:$0xff] }
 0x2be   : > { %2429 = vmatprep.mubr.f32.mxu1 %v5460_v24  ;;  %2646 = vmatprep.subr.mxu0 %v1657_v55  ;;  %v2068_v55 = vld [vmem:[%s6314_s4 + $0xf10] sm:$0xff] }
 0x2bf   : > { %2380 = vmatpush1.msra.mxu1 %v1908_v58  ;;  %2647 = vmatpush1.msra.mxu0 %v1656_v59  ;;  %v1816_v58 = vld [vmem:[%s6314_s4 + $0x730] sm:$0xff]  ;;  %v2061_v59 = vld [vmem:[%s6314_s4 + $0xed8] sm:$0xff] }
 0x2c0   : > { %2381 = vmatprep.subr.mxu1 %v1901_v60  ;;  %2648 = vmatprep.subr.mxu0 %v1649_v62  ;;  %v1809_v60 = vld [vmem:[%s6314_s4 + $0x6f8] sm:$0xff]  ;;  %v2060_v62 = vld [vmem:[%s6314_s4 + $0xed0] sm:$0xff] }
 0x2c1   : > { %2382 = vmatpush1.msra.mxu1 %v1900_v63  ;;  %2649 = vmatpush1.msra.mxu0 %v1648_v57  ;;  %v1808_v63 = vld [vmem:[%s6314_s4 + $0x6f0] sm:$0xff]  ;;  %v2053_v57 = vld [vmem:[%s6314_s4 + $0xe98] sm:$0xff] }
 0x2c2   : > { %2383 = vmatprep.subr.mxu1 %v1893_v10  ;;  %2650 = vmatprep.subr.mxu0 %v1641_v0  ;;  %v1801_v10 = vld [vmem:[%s6314_s4 + $0x6b8] sm:$0xff]  ;;  %v2052_v0 = vld [vmem:[%s6314_s4 + $0xe90] sm:$0xff] }
 0x2c3   : > { %2384 = vmatpush1.msra.mxu1 %v1892_v2  ;;  %2651 = vmatpush1.msra.mxu0 %v1640_v11  ;;  %v1800_v2 = vld [vmem:[%s6314_s4 + $0x6b0] sm:$0xff]  ;;  %v2045_v11 = vld [vmem:[%s6314_s4 + $0xe58] sm:$0xff] }
 0x2c4   : > { %2385 = vmatprep.subr.mxu1 %v1885_v3  ;;  %2652 = vmatprep.subr.mxu0 %v1633_v4  ;;  %v1793_v3 = vld [vmem:[%s6314_s4 + $0x678] sm:$0xff]  ;;  %v2044_v4 = vld [vmem:[%s6314_s4 + $0xe50] sm:$0xff] }
 0x2c5   : > { %2386 = vmatpush1.msra.mxu1 %v1884_v12  ;;  %2653 = vmatpush1.msra.mxu0 %v1632_v35  ;;  %v1792_v12 = vld [vmem:[%s6314_s4 + $0x670] sm:$0xff]  ;;  %v2037_v35 = vld [vmem:[%s6314_s4 + $0xe18] sm:$0xff] }
 0x2c6   : > { %2387 = vmatprep.subr.mxu1 %v1877_v7  ;;  %2654 = vmatprep.subr.mxu0 %v1625_v15  ;;  %v1785_v7 = vld [vmem:[%s6314_s4 + $0x638] sm:$0xff]  ;;  %v2036_v15 = vld [vmem:[%s6314_s4 + $0xe10] sm:$0xff] }
 0x2c7   : > { %2388 = vmatpush1.msra.mxu1 %v1876_v9  ;;  %2655 = vmatpush1.msra.mxu0 %v1624_v13  ;;  %v1784_v9 = vld [vmem:[%s6314_s4 + $0x630] sm:$0xff]  ;;  %v2029_v13 = vld [vmem:[%s6314_s4 + $0xdd8] sm:$0xff] }
 0x2c8   : > { %2389 = vmatprep.subr.mxu1 %v1869_v16  ;;  %2656 = vmatprep.subr.mxu0 %v1617_v17  ;;  %v1777_v16 = vld [vmem:[%s6314_s4 + $0x5f8] sm:$0xff]  ;;  %v2028_v17 = vld [vmem:[%s6314_s4 + $0xdd0] sm:$0xff] }
 0x2c9   : > { %2390 = vmatpush1.msra.mxu1 %v1868_v18  ;;  %2657 = vmatpush1.msra.mxu0 %v1616_v19  ;;  %v1776_v18 = vld [vmem:[%s6314_s4 + $0x5f0] sm:$0xff]  ;;  %v2021_v19 = vld [vmem:[%s6314_s4 + $0xd98] sm:$0xff] }
 0x2ca   : > { %2391 = vmatprep.subr.mxu1 %v1861_v20  ;;  %2658 = vmatprep.subr.mxu0 %v1609_v21  ;;  %v1769_v20 = vld [vmem:[%s6314_s4 + $0x5b8] sm:$0xff]  ;;  %v2020_v21 = vld [vmem:[%s6314_s4 + $0xd90] sm:$0xff] }
 0x2cb   : > { %2392 = vmatpush1.msra.mxu1 %v1860_v23  ;;  %2659 = vmatpush1.msra.mxu0 %v1608_v25  ;;  %v1768_v23 = vld [vmem:[%s6314_s4 + $0x5b0] sm:$0xff]  ;;  %v2013_v25 = vld [vmem:[%s6314_s4 + $0xd58] sm:$0xff] }
 0x2cc   : > { %2393 = vmatprep.subr.mxu1 %v1853_v26  ;;  %2660 = vmatprep.subr.mxu0 %v1601_v27  ;;  %v1761_v26 = vld [vmem:[%s6314_s4 + $0x578] sm:$0xff]  ;;  %v2012_v27 = vld [vmem:[%s6314_s4 + $0xd50] sm:$0xff] }
 0x2cd   : > { %2394 = vmatpush1.msra.mxu1 %v1852_v29  ;;  %2661 = vmatpush1.msra.mxu0 %v1600_v31  ;;  %v1760_v29 = vld [vmem:[%s6314_s4 + $0x570] sm:$0xff]  ;;  %v2005_v31 = vld [vmem:[%s6314_s4 + $0xd18] sm:$0xff] }
 0x2ce   : > { %2395 = vmatprep.subr.mxu1 %v1845_v32  ;;  %2662 = vmatprep.subr.mxu0 %v1593_v34  ;;  %v1753_v32 = vld [vmem:[%s6314_s4 + $0x538] sm:$0xff]  ;;  %v2004_v34 = vld [vmem:[%s6314_s4 + $0xd10] sm:$0xff] }
 0x2cf   : > { %2396 = vmatpush1.msra.mxu1 %v1844_v36  ;;  %2663 = vmatpush1.msra.mxu0 %v1592_v37  ;;  %v1752_v36 = vld [vmem:[%s6314_s4 + $0x530] sm:$0xff]  ;;  %v1997_v37 = vld [vmem:[%s6314_s4 + $0xcd8] sm:$0xff] }
 0x2d0   : > { %2397 = vmatprep.subr.mxu1 %v2093_v39  ;;  %2664 = vmatprep.subr.mxu0 %v1841_v41  ;;  %v1745_v39 = vld [vmem:[%s6314_s4 + $0x4f8] sm:$0xff]  ;;  %v1996_v41 = vld [vmem:[%s6314_s4 + $0xcd0] sm:$0xff] }
 0x2d1   : > { %2398 = vmatpush2.msra.mxu1 %v2092_v43  ;;  %2665 = vmatpush2.msra.mxu0 %v1840_v44  ;;  %v1744_v43 = vld [vmem:[%s6314_s4 + $0x4f0] sm:$0xff]  ;;  %v1989_v44 = vld [vmem:[%s6314_s4 + $0xc98] sm:$0xff] }
 0x2d2   : > { %2399 = vmatprep.subr.mxu1 %v2085_v45  ;;  %2666 = vmatprep.subr.mxu0 %v1833_v47  ;;  %v1737_v45 = vld [vmem:[%s6314_s4 + $0x4b8] sm:$0xff]  ;;  %v1988_v47 = vld [vmem:[%s6314_s4 + $0xc90] sm:$0xff] }
 0x2d3   : > { %2400 = vmatpush2.msra.mxu1 %v2084_v40  ;;  %2667 = vmatpush2.msra.mxu0 %v1832_v48  ;;  %v1736_v40 = vld [vmem:[%s6314_s4 + $0x4b0] sm:$0xff]  ;;  %v1981_v48 = vld [vmem:[%s6314_s4 + $0xc58] sm:$0xff] }
 0x2d4   : > { %2401 = vmatprep.subr.mxu1 %v2077_v50  ;;  %2668 = vmatprep.subr.mxu0 %v1825_v51  ;;  %v1729_v50 = vld [vmem:[%s6314_s4 + $0x478] sm:$0xff]  ;;  %v1980_v51 = vld [vmem:[%s6314_s4 + $0xc50] sm:$0xff] }
 0x2d5   : > { %2402 = vmatpush2.msra.mxu1 %v2076_v52  ;;  %2669 = vmatpush2.msra.mxu0 %v1824_v53  ;;  %v1728_v52 = vld [vmem:[%s6314_s4 + $0x470] sm:$0xff]  ;;  %v1973_v53 = vld [vmem:[%s6314_s4 + $0xc18] sm:$0xff] }
 0x2d6   : > { %2403 = vmatprep.subr.mxu1 %v2069_v28  ;;  %2670 = vmatprep.subr.mxu0 %v1817_v54  ;;  %v1721_v28 = vld [vmem:[%s6314_s4 + $0x438] sm:$0xff]  ;;  %v1972_v54 = vld [vmem:[%s6314_s4 + $0xc10] sm:$0xff] }
 0x2d7   : > { %2404 = vmatpush2.msra.mxu1 %v2068_v55  ;;  %2671 = vmatpush2.msra.mxu0 %v1816_v58  ;;  %v1720_v55 = vld [vmem:[%s6314_s4 + $0x430] sm:$0xff]  ;;  %v1967_v58 = vld [vmem:[%s6314_s4 + $0xbe8] sm:$0xff] }
 0x2d8   : > { %2405 = vmatprep.subr.mxu1 %v2061_v59  ;;  %2672 = vmatprep.subr.mxu0 %v1809_v60  ;;  %v1966_v59 = vld [vmem:[%s6314_s4 + $0xbe0] sm:$0xff]  ;;  %v1959_v60 = vld [vmem:[%s6314_s4 + $0xba8] sm:$0xff] }
 0x2d9   : > { %2406 = vmatpush2.msra.mxu1 %v2060_v62  ;;  %2673 = vmatpush2.msra.mxu0 %v1808_v63  ;;  %v1958_v62 = vld [vmem:[%s6314_s4 + $0xba0] sm:$0xff]  ;;  %v1951_v63 = vld [vmem:[%s6314_s4 + $0xb68] sm:$0xff] }
 0x2da   : > { %2407 = vmatprep.subr.mxu1 %v2053_v57  ;;  %2674 = vmatprep.subr.mxu0 %v1801_v10  ;;  %v1950_v57 = vld [vmem:[%s6314_s4 + $0xb60] sm:$0xff]  ;;  %v1935_v10 = vld [vmem:[%s6314_s4 + $0xae8] sm:$0xff] }
 0x2db   : > { %2408 = vmatpush2.msra.mxu1 %v2052_v0  ;;  %2675 = vmatpush2.msra.mxu0 %v1800_v2  ;;  %v1934_v0 = vld [vmem:[%s6314_s4 + $0xae0] sm:$0xff]  ;;  %v1919_v2 = vld [vmem:[%s6314_s4 + $0xa68] sm:$0xff] }
 0x2dc   : > { %2409 = vmatprep.subr.mxu1 %v2045_v11  ;;  %2676 = vmatprep.subr.mxu0 %v1793_v3  ;;  %v1918_v11 = vld [vmem:[%s6314_s4 + $0xa60] sm:$0xff]  ;;  %v1903_v3 = vld [vmem:[%s6314_s4 + $0x9e8] sm:$0xff] }
 0x2dd   : > { %2410 = vmatpush2.msra.mxu1 %v2044_v4  ;;  %2677 = vmatpush2.msra.mxu0 %v1792_v12  ;;  %v1902_v4 = vld [vmem:[%s6314_s4 + $0x9e0] sm:$0xff]  ;;  %v1895_v12 = vld [vmem:[%s6314_s4 + $0x9a8] sm:$0xff] }
 0x2de   : > { %2411 = vmatprep.subr.mxu1 %v2037_v35  ;;  %2678 = vmatprep.subr.mxu0 %v1785_v7  ;;  %v1887_v35 = vld [vmem:[%s6314_s4 + $0x968] sm:$0xff]  ;;  %v1886_v7 = vld [vmem:[%s6314_s4 + $0x960] sm:$0xff] }
 0x2df   : > { %2412 = vmatpush2.msra.mxu1 %v2036_v15  ;;  %2679 = vmatpush2.msra.mxu0 %v1784_v9  ;;  %v1879_v15 = vld [vmem:[%s6314_s4 + $0x928] sm:$0xff]  ;;  %v1878_v9 = vld [vmem:[%s6314_s4 + $0x920] sm:$0xff] }
 0x2e0   : > { %2413 = vmatprep.subr.mxu1 %v2029_v13  ;;  %2680 = vmatprep.subr.mxu0 %v1777_v16  ;;  %v1871_v13 = vld [vmem:[%s6314_s4 + $0x8e8] sm:$0xff]  ;;  %v1870_v16 = vld [vmem:[%s6314_s4 + $0x8e0] sm:$0xff] }
 0x2e1   : > { %2414 = vmatpush2.msra.mxu1 %v2028_v17  ;;  %2681 = vmatpush2.msra.mxu0 %v1776_v18  ;;  %v1863_v17 = vld [vmem:[%s6314_s4 + $0x8a8] sm:$0xff]  ;;  %v1862_v18 = vld [vmem:[%s6314_s4 + $0x8a0] sm:$0xff] }
 0x2e2   : > { %2415 = vmatprep.subr.mxu1 %v2021_v19  ;;  %2682 = vmatprep.subr.mxu0 %v1769_v20  ;;  %v1855_v19 = vld [vmem:[%s6314_s4 + $0x868] sm:$0xff]  ;;  %v1854_v20 = vld [vmem:[%s6314_s4 + $0x860] sm:$0xff] }
 0x2e3   : > { %2416 = vmatpush2.msra.mxu1 %v2020_v21  ;;  %2683 = vmatpush2.msra.mxu0 %v1768_v23  ;;  %v1847_v21 = vld [vmem:[%s6314_s4 + $0x828] sm:$0xff]  ;;  %v1846_v23 = vld [vmem:[%s6314_s4 + $0x820] sm:$0xff] }
 0x2e4   : > { %2417 = vmatprep.subr.mxu1 %v2013_v25  ;;  %2684 = vmatprep.subr.mxu0 %v1761_v26  ;;  %v2095_v25 = vld [vmem:[%s6314_s4 + $0xfe8] sm:$0xff]  ;;  %v2094_v26 = vld [vmem:[%s6314_s4 + $0xfe0] sm:$0xff] }
 0x2e5   : > { %2418 = vmatpush2.msra.mxu1 %v2012_v27  ;;  %2685 = vmatpush2.msra.mxu0 %v1760_v29  ;;  %v2087_v27 = vld [vmem:[%s6314_s4 + $0xfa8] sm:$0xff]  ;;  %v2086_v29 = vld [vmem:[%s6314_s4 + $0xfa0] sm:$0xff] }
 0x2e6   : > { %2419 = vmatprep.subr.mxu1 %v2005_v31  ;;  %2686 = vmatprep.subr.mxu0 %v1753_v32  ;;  %v2079_v31 = vld [vmem:[%s6314_s4 + $0xf68] sm:$0xff]  ;;  %v2078_v32 = vld [vmem:[%s6314_s4 + $0xf60] sm:$0xff] }
 0x2e7   : > { %2420 = vmatpush2.msra.mxu1 %v2004_v34  ;;  %2687 = vmatpush2.msra.mxu0 %v1752_v36  ;;  %v2071_v34 = vld [vmem:[%s6314_s4 + $0xf28] sm:$0xff]  ;;  %v2070_v36 = vld [vmem:[%s6314_s4 + $0xf20] sm:$0xff] }
 0x2e8   : > { %2421 = vmatprep.subr.mxu1 %v1997_v37  ;;  %2688 = vmatprep.subr.mxu0 %v1745_v39  ;;  %v2063_v37 = vld [vmem:[%s6314_s4 + $0xee8] sm:$0xff]  ;;  %v2062_v39 = vld [vmem:[%s6314_s4 + $0xee0] sm:$0xff] }
 0x2e9   : > { %2422 = vmatpush2.msra.mxu1 %v1996_v41  ;;  %2689 = vmatpush2.msra.mxu0 %v1744_v43  ;;  %v2055_v41 = vld [vmem:[%s6314_s4 + $0xea8] sm:$0xff]  ;;  %v2054_v43 = vld [vmem:[%s6314_s4 + $0xea0] sm:$0xff] }
 0x2ea   : > { %2423 = vmatprep.subr.mxu1 %v1989_v44  ;;  %2690 = vmatprep.subr.mxu0 %v1737_v45  ;;  %v2047_v44 = vld [vmem:[%s6314_s4 + $0xe68] sm:$0xff]  ;;  %v2046_v45 = vld [vmem:[%s6314_s4 + $0xe60] sm:$0xff] }
 0x2eb   : > { %2424 = vmatpush2.msra.mxu1 %v1988_v47  ;;  %2691 = vmatpush2.msra.mxu0 %v1736_v40  ;;  %v2039_v47 = vld [vmem:[%s6314_s4 + $0xe28] sm:$0xff]  ;;  %v2038_v40 = vld [vmem:[%s6314_s4 + $0xe20] sm:$0xff] }
 0x2ec   : > { %2425 = vmatprep.subr.mxu1 %v1981_v48  ;;  %2692 = vmatprep.subr.mxu0 %v1729_v50  ;;  %v2031_v48 = vld [vmem:[%s6314_s4 + $0xde8] sm:$0xff]  ;;  %v2030_v50 = vld [vmem:[%s6314_s4 + $0xde0] sm:$0xff] }
 0x2ed   : > { %2426 = vmatpush2.msra.mxu1 %v1980_v51  ;;  %2693 = vmatpush2.msra.mxu0 %v1728_v52  ;;  %v2023_v51 = vld [vmem:[%s6314_s4 + $0xda8] sm:$0xff]  ;;  %v2022_v52 = vld [vmem:[%s6314_s4 + $0xda0] sm:$0xff] }
 0x2ee   : > { %2427 = vmatprep.subr.mxu1 %v1973_v53  ;;  %2694 = vmatprep.subr.mxu0 %v1721_v28  ;;  %v2015_v53 = vld [vmem:[%s6314_s4 + $0xd68] sm:$0xff]  ;;  %v2014_v28 = vld [vmem:[%s6314_s4 + $0xd60] sm:$0xff] }
 0x2ef   : > { %2428 = vmatpush2.msra.mxu1 %v1972_v54  ;;  %2695 = vmatpush2.msra.mxu0 %v1720_v55  ;;  %v2007_v54 = vld [vmem:[%s6314_s4 + $0xd28] sm:$0xff]  ;;  %v2006_v55 = vld [vmem:[%s6314_s4 + $0xd20] sm:$0xff] }
 0x2f0   : > { %2430 = vmatmul.mubr.f32.vlgmr.msra.gmra.mxu1 %v5454_v22  ;;  %2543 = vmatprep.subr.mxu1 %v1967_v58  ;;  %v1999_v58 = vld [vmem:[%s6314_s4 + $0xce8] sm:$0xff] }
 0x2f1   : > { %2697 = vmatmul.mubr.f32.vlgmr.msra.gmra.mxu0 %v5015_v56  ;;  %2435 = vmatprep.mubr.f32.mxu1 %v5485_v33  ;;  %v1943_v56 = vld [vmem:[%s6314_s4 + $0xb28] sm:$0xff] }
 0x2f2   : > { %2544 = vmatpush1.msra.mxu1 %v1966_v59  ;;  %2702 = vmatprep.mubr.f32.mxu0 %v5044_v1  ;;  %v1942_v1 = vld [vmem:[%s6314_s4 + $0xb20] sm:$0xff] }
 0x2f3   : > { %2545 = vmatprep.subr.mxu1 %v1959_v60  ;;  %v1998_v59 = vld [vmem:[%s6314_s4 + $0xce0] sm:$0xff]  ;;  %v1991_v60 = vld [vmem:[%s6314_s4 + $0xca8] sm:$0xff] }
 0x2f4   : > { %2546 = vmatpush1.msra.mxu1 %v1958_v62  ;;  %v1990_v62 = vld [vmem:[%s6314_s4 + $0xca0] sm:$0xff] }
 0x2f5   : > { %2436 = vmatmul.mubr.f32.gmra.mxu1 %v5476_v30  ;;  %2547 = vmatprep.subr.mxu1 %v1951_v63  ;;  %v1983_v63 = vld [vmem:[%s6314_s4 + $0xc68] sm:$0xff] }
 0x2f6   : > { %2703 = vmatmul.mubr.f32.gmra.mxu0 %v5030_v61  ;;  %2441 = vmatprep.mubr.f32.mxu1 %v5507_v42  ;;  %v1927_v61 = vld [vmem:[%s6314_s4 + $0xaa8] sm:$0xff] }
 0x2f7   : > { %2548 = vmatpush1.msra.mxu1 %v1950_v57  ;;  %2708 = vmatprep.mubr.f32.mxu0 %v5068_v6  ;;  %v1926_v6 = vld [vmem:[%s6314_s4 + $0xaa0] sm:$0xff] }
 0x2f8   : > { %2549 = vmatprep.subr.mxu1 %v1943_v56  ;;  %v1982_v57 = vld [vmem:[%s6314_s4 + $0xc60] sm:$0xff]  ;;  %v1975_v56 = vld [vmem:[%s6314_s4 + $0xc28] sm:$0xff] }
 0x2f9   : > { %2550 = vmatpush1.msra.mxu1 %v1942_v1  ;;  %v1974_v1 = vld [vmem:[%s6314_s4 + $0xc20] sm:$0xff] }
 0x2fa   : > { %2442 = vmatmul.mubr.f32.gmra.mxu1 %v5497_v38  ;;  %2551 = vmatprep.subr.mxu1 %v1935_v10  ;;  %v1969_v10 = vld [vmem:[%s6314_s4 + $0xbf8] sm:$0xff] }
 0x2fb   : > { %2709 = vmatmul.mubr.f32.gmra.mxu0 %v5059_v5  ;;  %2447 = vmatprep.mubr.f32.mxu1 %v5532_v49  ;;  %v1911_v5 = vld [vmem:[%s6314_s4 + $0xa28] sm:$0xff] }
 0x2fc   : > { %2552 = vmatpush1.msra.mxu1 %v1934_v0  ;;  %2714 = vmatprep.mubr.f32.mxu0 %v5086_v14  ;;  %v1910_v14 = vld [vmem:[%s6314_s4 + $0xa20] sm:$0xff]  ;;  %v1968_v0 = vld [vmem:[%s6314_s4 + $0xbf0] sm:$0xff] }
 0x2fd   : > { %2553 = vmatprep.subr.mxu1 %v1927_v61  ;;  %v1961_v61 = vld [vmem:[%s6314_s4 + $0xbb8] sm:$0xff] }
 0x2fe   : > { %2554 = vmatpush1.msra.mxu1 %v1926_v6  ;;  %v1960_v6 = vld [vmem:[%s6314_s4 + $0xbb0] sm:$0xff] }
 0x2ff   : > { %2448 = vmatmul.mubr.f32.gmra.mxu1 %v5520_v46  ;;  %2555 = vmatprep.subr.mxu1 %v1919_v2  ;;  %v1953_v2 = vld [vmem:[%s6314_s4 + $0xb78] sm:$0xff] }
 0x300   : > { %2715 = vmatmul.mubr.f32.gmra.mxu0 %v5077_v8  ;;  %2556 = vmatpush1.msra.mxu1 %v1918_v11  ;;  %v1894_v8 = vld [vmem:[%s6314_s4 + $0x9a0] sm:$0xff]  ;;  %v1952_v11 = vld [vmem:[%s6314_s4 + $0xb70] sm:$0xff] }
 0x301   : > { %2607 = vmatprep.mubr.f32.mxu1 %v5460_v24  ;;  %2557 = vmatprep.subr.mxu1 %v1911_v5  ;;  %v1945_v5 = vld [vmem:[%s6314_s4 + $0xb38] sm:$0xff] }
 0x302   : > { %2558 = vmatpush1.msra.mxu1 %v1910_v14  ;;  %v1944_v14 = vld [vmem:[%s6314_s4 + $0xb30] sm:$0xff] }
 0x303   : > { %2559 = vmatprep.subr.mxu1 %v1903_v3  ;;  %v1937_v3 = vld [vmem:[%s6314_s4 + $0xaf8] sm:$0xff] }
 0x304   : > { %2560 = vmatpush1.msra.mxu1 %v1902_v4  ;;  %v1936_v4 = vld [vmem:[%s6314_s4 + $0xaf0] sm:$0xff] }
 0x305   : > { %2561 = vmatprep.subr.mxu1 %v1895_v12  ;;  %v1929_v12 = vld [vmem:[%s6314_s4 + $0xab8] sm:$0xff] }
 0x306   : > { %2562 = vmatpush1.msra.mxu1 %v1894_v8  ;;  %v1928_v8 = vld [vmem:[%s6314_s4 + $0xab0] sm:$0xff] }
 0x307   : > { %2563 = vmatprep.subr.mxu1 %v1887_v35  ;;  %v1921_v35 = vld [vmem:[%s6314_s4 + $0xa78] sm:$0xff] }
 0x308   : > { %2564 = vmatpush1.msra.mxu1 %v1886_v7  ;;  %v1920_v7 = vld [vmem:[%s6314_s4 + $0xa70] sm:$0xff] }
 0x309   : > { %2565 = vmatprep.subr.mxu1 %v1879_v15  ;;  %v1913_v15 = vld [vmem:[%s6314_s4 + $0xa38] sm:$0xff] }
 0x30a   : > { %2566 = vmatpush1.msra.mxu1 %v1878_v9  ;;  %v1912_v9 = vld [vmem:[%s6314_s4 + $0xa30] sm:$0xff] }
 0x30b   : > { %2567 = vmatprep.subr.mxu1 %v1871_v13  ;;  %v1905_v13 = vld [vmem:[%s6314_s4 + $0x9f8] sm:$0xff] }
 0x30c   : > { %2568 = vmatpush1.msra.mxu1 %v1870_v16  ;;  %v1904_v16 = vld [vmem:[%s6314_s4 + $0x9f0] sm:$0xff] }
 0x30d   : > { %2569 = vmatprep.subr.mxu1 %v1863_v17  ;;  %v1897_v17 = vld [vmem:[%s6314_s4 + $0x9b8] sm:$0xff] }
 0x30e   : > { %2570 = vmatpush1.msra.mxu1 %v1862_v18  ;;  %v1896_v18 = vld [vmem:[%s6314_s4 + $0x9b0] sm:$0xff] }
 0x30f   : > { %2571 = vmatprep.subr.mxu1 %v1855_v19  ;;  %v1888_v19 = vld [vmem:[%s6314_s4 + $0x970] sm:$0xff] }
 0x310   : > { %2572 = vmatpush1.msra.mxu1 %v1854_v20  ;;  %v1881_v20 = vld [vmem:[%s6314_s4 + $0x938] sm:$0xff] }
 0x311   : > { %2573 = vmatprep.subr.mxu1 %v1847_v21  ;;  %v1880_v21 = vld [vmem:[%s6314_s4 + $0x930] sm:$0xff] }
 0x312   : > { %2574 = vmatpush1.msra.mxu1 %v1846_v23  ;;  %v1873_v23 = vld [vmem:[%s6314_s4 + $0x8f8] sm:$0xff] }
 0x313   : > { %2575 = vmatprep.subr.mxu1 %v2095_v25  ;;  %v1872_v25 = vld [vmem:[%s6314_s4 + $0x8f0] sm:$0xff] }
 0x314   : > { %2576 = vmatpush2.msra.mxu1 %v2094_v26  ;;  %v1865_v26 = vld [vmem:[%s6314_s4 + $0x8b8] sm:$0xff] }
 0x315   : > { %2577 = vmatprep.subr.mxu1 %v2087_v27  ;;  %v1864_v27 = vld [vmem:[%s6314_s4 + $0x8b0] sm:$0xff] }
 0x316   : > { %2578 = vmatpush2.msra.mxu1 %v2086_v29  ;;  %v1857_v29 = vld [vmem:[%s6314_s4 + $0x878] sm:$0xff] }
 0x317   : > { %2579 = vmatprep.subr.mxu1 %v2079_v31  ;;  %v1856_v31 = vld [vmem:[%s6314_s4 + $0x870] sm:$0xff] }
 0x318   : > { %2580 = vmatpush2.msra.mxu1 %v2078_v32  ;;  %v1849_v32 = vld [vmem:[%s6314_s4 + $0x838] sm:$0xff] }
 0x319   : > { %2581 = vmatprep.subr.mxu1 %v2071_v34  ;;  %v1848_v34 = vld [vmem:[%s6314_s4 + $0x830] sm:$0xff] }
 0x31a   : > { %2582 = vmatpush2.msra.mxu1 %v2070_v36  ;;  %v2097_v36 = vld [vmem:[%s6314_s4 + $0xff8] sm:$0xff] }
 0x31b   : > { %2583 = vmatprep.subr.mxu1 %v2063_v37  ;;  %v2096_v37 = vld [vmem:[%s6314_s4 + $0xff0] sm:$0xff] }
 0x31c   : > { %2584 = vmatpush2.msra.mxu1 %v2062_v39  ;;  %v2089_v39 = vld [vmem:[%s6314_s4 + $0xfb8] sm:$0xff] }
 0x31d   : > { %2585 = vmatprep.subr.mxu1 %v2055_v41  ;;  %v2088_v41 = vld [vmem:[%s6314_s4 + $0xfb0] sm:$0xff] }
 0x31e   : > { %2586 = vmatpush2.msra.mxu1 %v2054_v43  ;;  %v2081_v43 = vld [vmem:[%s6314_s4 + $0xf78] sm:$0xff] }
 0x31f   : > { %2587 = vmatprep.subr.mxu1 %v2047_v44  ;;  %v2080_v44 = vld [vmem:[%s6314_s4 + $0xf70] sm:$0xff] }
 0x320   : > { %2588 = vmatpush2.msra.mxu1 %v2046_v45  ;;  %v2073_v45 = vld [vmem:[%s6314_s4 + $0xf38] sm:$0xff] }
 0x321   : > { %2589 = vmatprep.subr.mxu1 %v2039_v47  ;;  %v2072_v47 = vld [vmem:[%s6314_s4 + $0xf30] sm:$0xff] }
 0x322   : > { %2590 = vmatpush2.msra.mxu1 %v2038_v40  ;;  %v2065_v40 = vld [vmem:[%s6314_s4 + $0xef8] sm:$0xff] }
 0x323   : > { %2591 = vmatprep.subr.mxu1 %v2031_v48  ;;  %v2064_v48 = vld [vmem:[%s6314_s4 + $0xef0] sm:$0xff] }
 0x324   : > { %2592 = vmatpush2.msra.mxu1 %v2030_v50  ;;  %v2057_v50 = vld [vmem:[%s6314_s4 + $0xeb8] sm:$0xff] }
 0x325   : > { %2593 = vmatprep.subr.mxu1 %v2023_v51  ;;  %v2056_v51 = vld [vmem:[%s6314_s4 + $0xeb0] sm:$0xff] }
 0x326   : > { %2594 = vmatpush2.msra.mxu1 %v2022_v52  ;;  %v2049_v52 = vld [vmem:[%s6314_s4 + $0xe78] sm:$0xff] }
 0x327   : > { %2595 = vmatprep.subr.mxu1 %v2015_v53  ;;  %v2048_v53 = vld [vmem:[%s6314_s4 + $0xe70] sm:$0xff] }
 0x328   : > { %2596 = vmatpush2.msra.mxu1 %v2014_v28  ;;  %v2041_v28 = vld [vmem:[%s6314_s4 + $0xe38] sm:$0xff] }
 0x329   : > { %2597 = vmatprep.subr.mxu1 %v2007_v54  ;;  %v2040_v54 = vld [vmem:[%s6314_s4 + $0xe30] sm:$0xff] }
 0x32a   : > { %2598 = vmatpush2.msra.mxu1 %v2006_v55  ;;  %v2033_v55 = vld [vmem:[%s6314_s4 + $0xdf8] sm:$0xff] }
 0x32b   : > { %2599 = vmatprep.subr.mxu1 %v1999_v58  ;;  %v2164_v58 = vpop.f32.mrf.mxu0 }
 0x32c   : > { %2600 = vmatpush2.msra.mxu1 %v1998_v59  ;;  %v2032_v59 = vld [vmem:[%s6314_s4 + $0xdf0] sm:$0xff] }
 0x32d   : > { %2601 = vmatprep.subr.mxu1 %v1991_v60  ;;  %v2025_v60 = vld [vmem:[%s6314_s4 + $0xdb8] sm:$0xff] }
 0x32e   : > { %2602 = vmatpush2.msra.mxu1 %v1990_v62  ;;  %v2024_v62 = vld [vmem:[%s6314_s4 + $0xdb0] sm:$0xff] }
 0x32f   : > { %2603 = vmatprep.subr.mxu1 %v1983_v63  ;;  %v2017_v63 = vld [vmem:[%s6314_s4 + $0xd78] sm:$0xff] }
 0x330   : > { %2604 = vmatpush2.msra.mxu1 %v1982_v57  ;;  %v2166_v57 = vpop.f32.mrf.mxu0 }
 0x331   : > { %2605 = vmatprep.subr.mxu1 %v1975_v56  ;;  %v2016_v56 = vld [vmem:[%s6314_s4 + $0xd70] sm:$0xff] }
 0x332   : > { %2606 = vmatpush2.msra.mxu1 %v1974_v1  ;;  %v2009_v1 = vld [vmem:[%s6314_s4 + $0xd38] sm:$0xff] }
 0x333   : > { %2608 = vmatmul.mubr.f32.vlgmr.msra.gmra.mxu1 %v5454_v22  ;;  %2721 = vmatprep.subr.mxu1 %v1969_v10  ;;  %v2008_v10 = vld [vmem:[%s6314_s4 + $0xd30] sm:$0xff] }
 0x334   : > { %2613 = vmatprep.mubr.f32.mxu1 %v5485_v33  ;;  %2722 = vmatpush1.msra.mxu1 %v1968_v0  ;;  %v2001_v0 = vld [vmem:[%s6314_s4 + $0xcf8] sm:$0xff] }
 0x335   : > { %2723 = vmatprep.subr.mxu1 %v1961_v61  ;;  %v2170_v61 = vpop.f32.mrf.mxu0 }
 0x336   : > { %2724 = vmatpush1.msra.mxu1 %v1960_v6  ;;  %v2000_v6 = vld [vmem:[%s6314_s4 + $0xcf0] sm:$0xff] }
 0x337   : > { %2614 = vmatmul.mubr.f32.gmra.mxu1 %v5476_v30  ;;  %2725 = vmatprep.subr.mxu1 %v1953_v2  ;;  %v1993_v2 = vld [vmem:[%s6314_s4 + $0xcb8] sm:$0xff] }
 0x338   : > { %2619 = vmatprep.mubr.f32.mxu1 %v5507_v42  ;;  %2726 = vmatpush1.msra.mxu1 %v1952_v11  ;;  %v1992_v11 = vld [vmem:[%s6314_s4 + $0xcb0] sm:$0xff] }
 0x339   : > { %2727 = vmatprep.subr.mxu1 %v1945_v5  ;;  %v1985_v5 = vld [vmem:[%s6314_s4 + $0xc78] sm:$0xff] }
 0x33a   : > { %2728 = vmatpush1.msra.mxu1 %v1944_v14 }
 0x33b   : > { %2620 = vmatmul.mubr.f32.gmra.mxu1 %v5497_v38  ;;  %2729 = vmatprep.subr.mxu1 %v1937_v3  ;;  %v2172_v3 = vpop.f32.mrf.mxu0 }
 0x33c   : > { %2625 = vmatprep.mubr.f32.mxu1 %v5532_v49  ;;  %2730 = vmatpush1.msra.mxu1 %v1936_v4  ;;  %v1984_v4 = vld [vmem:[%s6314_s4 + $0xc70] sm:$0xff] }
 0x33d   : > { %2731 = vmatprep.subr.mxu1 %v1929_v12 }
 0x33e   : > { %2732 = vmatpush1.msra.mxu1 %v1928_v8  ;;  %v1977_v8 = vld [vmem:[%s6314_s4 + $0xc38] sm:$0xff] }
 0x33f   : > { %2626 = vmatmul.mubr.f32.gmra.mxu1 %v5520_v46  ;;  %2733 = vmatprep.subr.mxu1 %v1921_v35 }
 0x340   : > { %2734 = vmatpush1.msra.mxu1 %v1920_v7  ;;  %2785 = vmatprep.mubr.f32.mxu1 %v5460_v24  ;;  %v1889_v24 = vld [vmem:[%s6314_s4 + $0x978] sm:$0xff]  ;;  %v1976_v7 = vld [vmem:[%s6314_s4 + $0xc30] sm:$0xff] }
 0x341   : > { %2735 = vmatprep.subr.mxu1 %v1913_v15 }
 0x342   : > { %2736 = vmatpush1.msra.mxu1 %v1912_v9 }
 0x343   : > { %2737 = vmatprep.subr.mxu1 %v1905_v13  ;;  %v2176_v13 = vpop.f32.mrf.mxu0 }
 0x344   : > { %2738 = vmatpush1.msra.mxu1 %v1904_v16 }
 0x345   : > { %2739 = vmatprep.subr.mxu1 %v1897_v17 }
 0x346   : > { %2740 = vmatpush1.msra.mxu1 %v1896_v18 }
 0x347   : > { %2741 = vmatprep.subr.mxu1 %v1889_v24  ;;  %v2178_v24 = vpop.f32.mrf.mxu0 }
 0x348   : > { %2742 = vmatpush1.msra.mxu1 %v1888_v19 }
 0x349   : > { %2743 = vmatprep.subr.mxu1 %v1881_v20 }
 0x34a   : > { %2744 = vmatpush1.msra.mxu1 %v1880_v21 }
 0x34b   : > { %2745 = vmatprep.subr.mxu1 %v1873_v23 }
 0x34c   : > { %2746 = vmatpush1.msra.mxu1 %v1872_v25  ;;  %v2182_v25 = vpop.f32.mrf.mxu0 }
 0x34d   : > { %2747 = vmatprep.subr.mxu1 %v1865_v26 }
 0x34e   : > { %2748 = vmatpush1.msra.mxu1 %v1864_v27  ;;  %v2184_v26 = vpop.f32.mrf.mxu0 }
 0x34f   : > { %2749 = vmatprep.subr.mxu1 %v1857_v29 }
 0x350   : > { %2750 = vmatpush1.msra.mxu1 %v1856_v31 }
 0x351   : > { %2751 = vmatprep.subr.mxu1 %v1849_v32 }
 0x352   : > { %2752 = vmatpush1.msra.mxu1 %v1848_v34 }
 0x353   : > { %2753 = vmatprep.subr.mxu1 %v2097_v36 }
 0x354   : > { %2754 = vmatpush2.msra.mxu1 %v2096_v37 }
 0x355   : > { %2755 = vmatprep.subr.mxu1 %v2089_v39 }
 0x356   : > { %2756 = vmatpush2.msra.mxu1 %v2088_v41 }
 0x357   : > { %2757 = vmatprep.subr.mxu1 %v2081_v43 }
 0x358   : > { %2758 = vmatpush2.msra.mxu1 %v2080_v44 }
 0x359   : > { %2759 = vmatprep.subr.mxu1 %v2073_v45 }
 0x35a   : > { %2760 = vmatpush2.msra.mxu1 %v2072_v47 }
 0x35b   : > { %2761 = vmatprep.subr.mxu1 %v2065_v40 }
 0x35c   : > { %2762 = vmatpush2.msra.mxu1 %v2064_v48 }
 0x35d   : > { %2763 = vmatprep.subr.mxu1 %v2057_v50 }
 0x35e   : > { %2764 = vmatpush2.msra.mxu1 %v2056_v51 }
 0x35f   : > { %2765 = vmatprep.subr.mxu1 %v2049_v52 }
 0x360   : > { %2766 = vmatpush2.msra.mxu1 %v2048_v53 }
 0x361   : > { %2767 = vmatprep.subr.mxu1 %v2041_v28 }
 0x362   : > { %2768 = vmatpush2.msra.mxu1 %v2040_v54 }
 0x363   : > { %2769 = vmatprep.subr.mxu1 %v2033_v55 }
 0x364   : > { %2770 = vmatpush2.msra.mxu1 %v2032_v59 }
 0x365   : > { %2771 = vmatprep.subr.mxu1 %v2025_v60 }
 0x366   : > { %2772 = vmatpush2.msra.mxu1 %v2024_v62 }
 0x367   : > { %2773 = vmatprep.subr.mxu1 %v2017_v63 }
 0x368   : > { %2774 = vmatpush2.msra.mxu1 %v2016_v56 }
 0x369   : > { %2775 = vmatprep.subr.mxu1 %v2009_v1 }
 0x36a   : > { %2776 = vmatpush2.msra.mxu1 %v2008_v10 }
 0x36b   : > { %2777 = vmatprep.subr.mxu1 %v2001_v0 }
 0x36c   : > { %2778 = vmatpush2.msra.mxu1 %v2000_v6  ;;  %v2253_v14 = vpop.f32.mrf.mxu1 }
 0x36d   : > { %2779 = vmatprep.subr.mxu1 %v1993_v2  ;;  %v2254_v12 = vadd.f32 %v2253_v14, %v2164_v58 }
 0x36e   : > { %2780 = vmatpush2.msra.mxu1 %v1992_v11  ;;  %v2255_v35 = vpop.f32.mrf.mxu1 }
 0x36f   : > { %2781 = vmatprep.subr.mxu1 %v1985_v5  ;;  %2810 = vst [vmem:[%s6254_s19] sm:$0xff] %v2254_v12  ;;  %v2256_v15 = vadd.f32 %v2255_v35, %v2166_v57 }
 0x370   : > { %2782 = vmatpush2.msra.mxu1 %v1984_v4  ;;  %v2259_v9 = vpop.f32.mrf.mxu1 }
 0x371   : > { %2783 = vmatprep.subr.mxu1 %v1977_v8  ;;  %2811 = vst [vmem:[%s6254_s19 + $0x8] sm:$0xff] %v2256_v15  ;;  %v2260_v16 = vadd.f32 %v2259_v9, %v2170_v61 }
 0x372   : > { %2784 = vmatpush2.msra.mxu1 %v1976_v7  ;;  %v2261_v17 = vpop.f32.mrf.mxu1 }
 0x373   : > { %2786 = vmatmul.mubr.f32.vlgmr.msra.gmra.mxu1 %v5454_v22  ;;  %2818 = vst [vmem:[%s6254_s19 + $0x40] sm:$0xff] %v2260_v16  ;;  %v2262_v18 = vadd.f32 %v2261_v17, %v2172_v3 }
 0x374   : > { %2791 = vmatprep.mubr.f32.mxu1 %v5485_v33 }
 0x375   : > { %2819 = vst [vmem:[%s6254_s19 + $0x48] sm:$0xff] %v2262_v18  ;;  %v2265_v19 = vpop.f32.mrf.mxu1 }
 0x376   : > { %v2266_v20 = vadd.f32 %v2265_v19, %v2176_v13 }
 0x377   : > { %2792 = vmatmul.mubr.f32.gmra.mxu1 %v5476_v30  ;;  %v2267_v21 = vpop.f32.mrf.mxu1 }
 0x378   : > { %2797 = vmatprep.mubr.f32.mxu1 %v5507_v42  ;;  %2826 = vst [vmem:[%s6254_s19 + $0x80] sm:$0xff] %v2266_v20  ;;  %v2268_v23 = vadd.f32 %v2267_v21, %v2178_v24  ;;  %v2342_v42 = vpop.f32.mrf.mxu0 }
 0x37a   : > { %2827 = vst [vmem:[%s6254_s19 + $0x88] sm:$0xff] %v2268_v23  ;;  %v2344_v29 = vpop.f32.mrf.mxu0 }
 0x37b   : > { %2798 = vmatmul.mubr.f32.gmra.mxu1 %v5497_v38  ;;  %v2271_v22 = vpop.f32.mrf.mxu1 }
 0x37c   : > { %2803 = vmatprep.mubr.f32.mxu1 %v5532_v49  ;;  %v2272_v33 = vadd.f32 %v2271_v22, %v2182_v25  ;;  %v2348_v31 = vpop.f32.mrf.mxu0 }
 0x37d   : > { %v2273_v27 = vpop.f32.mrf.mxu1 }
 0x37e   : > { %2834 = vst [vmem:[%s6254_s19 + $0xc0] sm:$0xff] %v2272_v33  ;;  %v2274_v30 = vadd.f32 %v2273_v27, %v2184_v26  ;;  %v2350_v38 = vpop.f32.mrf.mxu0 }
 0x37f   : > { %2804 = vmatmul.mubr.f32.gmra.mxu1 %v5520_v46 }
 0x380   : > { %2835 = vst [vmem:[%s6254_s19 + $0xc8] sm:$0xff] %v2274_v30  ;;  %v2354_v37 = vpop.f32.mrf.mxu0 }
 0x382   : > { %v2356_v44 = vpop.f32.mrf.mxu0 }
 0x384   : > { %v2360_v48 = vpop.f32.mrf.mxu0 }
 0x386   : > { %v2362_v53 = vpop.f32.mrf.mxu0 }
 0x388   : > { %v2520_v55 = vpop.f32.mrf.mxu0 }
 0x38a   : > { %v2522_v58 = vpop.f32.mrf.mxu0 }
 0x38c   : > { %v2526_v59 = vpop.f32.mrf.mxu0 }
 0x38e   : > { %v2528_v60 = vpop.f32.mrf.mxu0 }
 0x390   : > { %v2532_v57 = vpop.f32.mrf.mxu0 }
 0x392   : > { %v2534_v61 = vpop.f32.mrf.mxu0 }
 0x394   : > { %v2538_v14 = vpop.f32.mrf.mxu0 }
 0x396   : > { %v2540_v35 = vpop.f32.mrf.mxu0 }
 0x3b0   : > { %v2431_v32 = vpop.f32.mrf.mxu1 }
 0x3b1   : > { %v2432_v34 = vadd.f32 %v2431_v32, %v2342_v42  ;;  %v2698_v9 = vpop.f32.mrf.mxu0 }
 0x3b2   : > { %v2433_v36 = vpop.f32.mrf.mxu1 }
 0x3b3   : > { %2812 = vst [vmem:[%s6254_s19 + $0x10] sm:$0xff] %v2432_v34  ;;  %v2434_v49 = vadd.f32 %v2433_v36, %v2344_v29  ;;  %v2700_v13 = vpop.f32.mrf.mxu0 }
 0x3b5   : > { %2813 = vst [vmem:[%s6254_s19 + $0x18] sm:$0xff] %v2434_v49  ;;  %v2437_v39 = vpop.f32.mrf.mxu1 }
 0x3b6   : > { %v2438_v41 = vadd.f32 %v2437_v39, %v2348_v31  ;;  %v2704_v16 = vpop.f32.mrf.mxu0 }
 0x3b7   : > { %v2439_v43 = vpop.f32.mrf.mxu1 }
 0x3b8   : > { %2820 = vst [vmem:[%s6254_s19 + $0x50] sm:$0xff] %v2438_v41  ;;  %v2440_v46 = vadd.f32 %v2439_v43, %v2350_v38  ;;  %v2706_v17 = vpop.f32.mrf.mxu0 }
 0x3ba   : > { %2821 = vst [vmem:[%s6254_s19 + $0x58] sm:$0xff] %v2440_v46  ;;  %v2443_v45 = vpop.f32.mrf.mxu1 }
 0x3bb   : > { %v2444_v47 = vadd.f32 %v2443_v45, %v2354_v37  ;;  %v2710_v19 = vpop.f32.mrf.mxu0 }
 0x3bc   : > { %v2445_v40 = vpop.f32.mrf.mxu1 }
 0x3bd   : > { %2828 = vst [vmem:[%s6254_s19 + $0x90] sm:$0xff] %v2444_v47  ;;  %v2446_v50 = vadd.f32 %v2445_v40, %v2356_v44  ;;  %v2712_v22 = vpop.f32.mrf.mxu0 }
 0x3bf   : > { %2829 = vst [vmem:[%s6254_s19 + $0x98] sm:$0xff] %v2446_v50  ;;  %v2449_v51 = vpop.f32.mrf.mxu1 }
 0x3c0   : > { %v2450_v52 = vadd.f32 %v2449_v51, %v2360_v48  ;;  %v2716_v42 = vpop.f32.mrf.mxu0 }
 0x3c1   : > { %v2451_v28 = vpop.f32.mrf.mxu1 }
 0x3c2   : > { %2836 = vst [vmem:[%s6254_s19 + $0xd0] sm:$0xff] %v2450_v52  ;;  %v2452_v54 = vadd.f32 %v2451_v28, %v2362_v53  ;;  %v2718_v34 = vpop.f32.mrf.mxu0 }
 0x3c4   : > { %2837 = vst [vmem:[%s6254_s19 + $0xd8] sm:$0xff] %v2452_v54 }
 0x3f3   : > { %v2609_v62 = vpop.f32.mrf.mxu1 }
 0x3f4   : > { %v2610_v63 = vadd.f32 %v2609_v62, %v2520_v55 }
 0x3f5   : > { %v2611_v56 = vpop.f32.mrf.mxu1 }
 0x3f6   : > { %2814 = vst [vmem:[%s6254_s19 + $0x20] sm:$0xff] %v2610_v63  ;;  %v2612_v1 = vadd.f32 %v2611_v56, %v2522_v58 }
 0x3f7   : > { %v2615_v10 = vpop.f32.mrf.mxu1 }
 0x3f8   : > { %2815 = vst [vmem:[%s6254_s19 + $0x28] sm:$0xff] %v2612_v1  ;;  %v2616_v0 = vadd.f32 %v2615_v10, %v2526_v59 }
 0x3f9   : > { %v2617_v6 = vpop.f32.mrf.mxu1 }
 0x3fa   : > { %2822 = vst [vmem:[%s6254_s19 + $0x60] sm:$0xff] %v2616_v0  ;;  %v2618_v2 = vadd.f32 %v2617_v6, %v2528_v60 }
 0x3fb   : > { %v2621_v11 = vpop.f32.mrf.mxu1 }
 0x3fc   : > { %2823 = vst [vmem:[%s6254_s19 + $0x68] sm:$0xff] %v2618_v2  ;;  %v2622_v5 = vadd.f32 %v2621_v11, %v2532_v57 }
 0x3fd   : > { %v2623_v3 = vpop.f32.mrf.mxu1 }
 0x3fe   : > { %2830 = vst [vmem:[%s6254_s19 + $0xa0] sm:$0xff] %v2622_v5  ;;  %v2624_v4 = vadd.f32 %v2623_v3, %v2534_v61 }
 0x3ff   : > { %v2627_v12 = vpop.f32.mrf.mxu1 }
 0x400   : > { %2831 = vst [vmem:[%s6254_s19 + $0xa8] sm:$0xff] %v2624_v4  ;;  %v2628_v8 = vadd.f32 %v2627_v12, %v2538_v14 }
 0x401   : > { %v2629_v7 = vpop.f32.mrf.mxu1 }
 0x402   : > { %2838 = vst [vmem:[%s6254_s19 + $0xe0] sm:$0xff] %v2628_v8  ;;  %v2630_v15 = vadd.f32 %v2629_v7, %v2540_v35 }
 0x404   : > { %2839 = vst [vmem:[%s6254_s19 + $0xe8] sm:$0xff] %v2630_v15 }
 0x433   : > { %v2787_v18 = vpop.f32.mrf.mxu1 }
 0x434   : > { %v2788_v24 = vadd.f32 %v2787_v18, %v2698_v9 }
 0x435   : > { %v2789_v20 = vpop.f32.mrf.mxu1 }
 0x436   : > { %2816 = vst [vmem:[%s6254_s19 + $0x30] sm:$0xff] %v2788_v24  ;;  %v2790_v21 = vadd.f32 %v2789_v20, %v2700_v13 }
 0x437   : > { %v2793_v23 = vpop.f32.mrf.mxu1 }
 0x438   : > { %2817 = vst [vmem:[%s6254_s19 + $0x38] sm:$0xff] %v2790_v21  ;;  %v2794_v25 = vadd.f32 %v2793_v23, %v2704_v16 }
 0x439   : > { %v2795_v33 = vpop.f32.mrf.mxu1 }
 0x43a   : > { %2824 = vst [vmem:[%s6254_s19 + $0x70] sm:$0xff] %v2794_v25  ;;  %v2796_v26 = vadd.f32 %v2795_v33, %v2706_v17 }
 0x43b   : > { %v2799_v27 = vpop.f32.mrf.mxu1 }
 0x43c   : > { %2825 = vst [vmem:[%s6254_s19 + $0x78] sm:$0xff] %v2796_v26  ;;  %v2800_v30 = vadd.f32 %v2799_v27, %v2710_v19 }
 0x43d   : > { %v2801_v29 = vpop.f32.mrf.mxu1 }
 0x43e   : > { %2832 = vst [vmem:[%s6254_s19 + $0xb0] sm:$0xff] %v2800_v30  ;;  %v2802_v31 = vadd.f32 %v2801_v29, %v2712_v22 }
 0x43f   : > { %v2805_v32 = vpop.f32.mrf.mxu1 }
 0x440   : > { %2833 = vst [vmem:[%s6254_s19 + $0xb8] sm:$0xff] %v2802_v31  ;;  %v2806_v38 = vadd.f32 %v2805_v32, %v2716_v42 }
 0x441   : > { %v2807_v36 = vpop.f32.mrf.mxu1 }
 0x442   : > { %2840 = vst [vmem:[%s6254_s19 + $0xf0] sm:$0xff] %v2806_v38  ;;  %v2808_v49 = vadd.f32 %v2807_v36, %v2718_v34 }
 0x444   : > { %2841 = vst [vmem:[%s6254_s19 + $0xf8] sm:$0xff] %v2808_v49 }
 0x445 PF: > { %s15_s18 = sadd.s32 1, %s2948_s18  }
 0x446   : > { %p12_p4 = scmp.ge.s32.totalorder %s15_s18, 4  }
 0x448   :  { %14 = sbr.rel (!%p12_p4) target bundleno = 1 (0x1), region = 70 }

</bundles_post_ra>
